<compile_context>
chip_gen: v6e
topology: v6e:2x2x1
jax: 0.10.0
libtpu: 0.0.40
codegen_flags: <defaults>
</compile_context>

<pallas_src>
import jax
import jax.numpy as jnp
from jax.experimental import pallas as pl
from jax.experimental.pallas import tpu as pltpu

EPS = 1e-5
LANE = 128


def _round_up(x, m):
    return -(-x // m) * m


def _pick_batch_tile(n, target):
    """Largest divisor of n that is <= target (keeps every grid step full)."""
    t = max(1, min(n, target))
    while n % t:
        t -= 1
    return t


# ---------------------------------------------------------------------------
# In-kernel helpers (operate on loaded values / refs)
# ---------------------------------------------------------------------------
def _conv2x2_taps(x4d, w_ref, out_h, out_w):
    """2x2 'valid' conv as 4 accumulating per-tap matmuls (no im2col slab).

    x4d  : (tn, Hin, Win, Cp) f32 activations, lane-dense channels.
    w_ref: (4, Cp, Cp) bf16 weights, tap order (kh,kw) = (0,0),(0,1),(1,0),(1,1).
    Operands are cast to bf16 for the MXU; accumulation stays f32.
    Returns (tn*out_h*out_w, Cp) f32.
    """
    tn = x4d.shape[0]
    Cp = x4d.shape[-1]
    rows = tn * out_h * out_w
    acc = jnp.zeros((rows, Cp), jnp.float32)
    for t, (kh, kw) in enumerate(((0, 0), (0, 1), (1, 0), (1, 1))):
        tap = x4d[:, kh:kh + out_h, kw:kw + out_w, :].reshape(rows, Cp)
        acc = acc + jnp.dot(tap.astype(jnp.bfloat16), w_ref[t],
                            preferred_element_type=jnp.float32)
    return acc


def _partial_stats(y2d):
    """Per-tile BN sums: ONE fused M=1 matmul -> [sum(y) | sum(y*y)]  (1, 2*Cp).

    Stays f32 end-to-end (bf16 here would degrade mean/var precision).  The result is
    broadcast over 8 sublanes so the (1, 8, 2*Cp) output block is fully written; the
    wrapper only reads sublane 0.
    """
    rows, Cp = y2d.shape
    ones_row = jnp.ones((1, rows), jnp.float32)
    cat = jnp.concatenate([y2d, y2d * y2d], axis=-1)                 # (rows, 2*Cp)
    s = jnp.dot(ones_row, cat, preferred_element_type=jnp.float32)   # (1, 2*Cp)
    return jnp.broadcast_to(s.reshape(1, 1, 2 * Cp), (1, 8, 2 * Cp))


# ---------------------------------------------------------------------------
# Kernels (one batch tile per grid step)
# ---------------------------------------------------------------------------
def _conv1_stats_kernel(x_ref, w1_ref, y1_ref, st1_ref, xpad_ref):
    """ZeroPad2d(1) + conv1 (pre-BN) + partial BN1 sums for one batch tile."""
    tn, H, W, Cp = x_ref.shape
    H1, W1 = H + 1, W + 1
    # ZeroPad2d(1): zero ONLY the 1-pixel halo; the interior is written once by x.
    xpad_ref[:, 0:1, :, :] = jnp.zeros((tn, 1, W + 2, Cp), jnp.float32)
    xpad_ref[:, H + 1:H + 2, :, :] = jnp.zeros((tn, 1, W + 2, Cp), jnp.float32)
    xpad_ref[:, :, 0:1, :] = jnp.zeros((tn, H + 2, 1, Cp), jnp.float32)
    xpad_ref[:, :, W + 1:W + 2, :] = jnp.zeros((tn, H + 2, 1, Cp), jnp.float32)
    xpad_ref[:, 1:H + 1, 1:W + 1, :] = x_ref[...]

    y = _conv2x2_taps(xpad_ref[...], w1_ref, H1, W1)      # (tn*H1*W1, Cp) f32
    y1_ref[...] = y.reshape(tn, H1, W1, Cp)
    st1_ref[...] = _partial_stats(y)


def _bn1_conv2_stats_kernel(y1_ref, sc1_ref, sh1_ref, w2_ref, y2_ref, st2_ref):
    """BN1 scale/shift + ReLU + conv2 (pre-BN, no padding) + partial BN2 sums."""
    tn, H1, W1, Cp = y1_ref.shape
    H, W = H1 - 1, W1 - 1
    sc = sc1_ref[...].reshape(1, 1, 1, Cp)
    sh = sh1_ref[...].reshape(1, 1, 1, Cp)
    a = jnp.maximum(y1_ref[...] * sc + sh, 0.0)           # BN1 apply + ReLU (f32)
    y = _conv2x2_taps(a, w2_ref, H, W)                    # (tn*H*W, Cp) f32
    y2_ref[...] = y.reshape(tn, H, W, Cp)
    st2_ref[...] = _partial_stats(y)


def _bn2_residual_kernel(y2_ref, x_ref, sc2_ref, sh2_ref, o_ref):
    """BN2 scale/shift + residual (straight from x, no misaligned slice) + ReLU."""
    Cp = o_ref.shape[-1]
    sc = sc2_ref[...].reshape(1, 1, 1, Cp)
    sh = sh2_ref[...].reshape(1, 1, 1, Cp)
    o_ref[...] = jnp.maximum(y2_ref[...] * sc + sh + x_ref[...], 0.0)


# ---------------------------------------------------------------------------
# Host-side parameter packing & glue
# ---------------------------------------------------------------------------
def _pack_conv_weight(w_hwio, Cp):
    """(2,2,C,C) HWIO -> (4, Cp, Cp) bf16; tap order (kh,kw); zero-padded channels."""
    C = w_hwio.shape[2]
    wp = jnp.zeros((2, 2, Cp, Cp), jnp.float32).at[:, :, :C, :C].set(w_hwio)
    return wp.reshape(4, Cp, Cp).astype(jnp.bfloat16)


def _pad_channel_vec(v, Cp):
    C = v.reshape(-1).shape[0]
    return jnp.zeros((1, Cp), jnp.float32).at[:, :C].set(v.reshape(1, C))


def prepare_block_params(p):
    """Once, host-side: pack conv weights (bf16), pad BN affine, drop dead conv biases."""
    C = p["w1"].shape[-1]
    Cp = max(LANE, _round_up(C, LANE))
    return {
        "w1": _pack_conv_weight(p["w1"], Cp),
        "w2": _pack_conv_weight(p["w2"], Cp),
        "g1": _pad_channel_vec(p["g1"], Cp),
        "bt1": _pad_channel_vec(p["bt1"], Cp),
        "g2": _pad_channel_vec(p["g2"], Cp),
        "bt2": _pad_channel_vec(p["bt2"], Cp),
        # conv biases b1/b2 intentionally dropped: they cancel exactly against the
        # batch-mean subtraction of training-mode BatchNorm.
    }


def _finalize_stats(partial, rows_total, gamma, beta):
    """Reduce per-tile sums -> global biased batch stats -> fused BN scale/shift.

    One-pass var = E[x^2] - E[x]^2 in f32 (adequate here; switch to Welford if
    cancellation ever matters at extreme batch*spatial sizes).
    Zero-padded channels: gamma=0, sums=0 -> scale=shift=0, lanes stay exactly zero.
    """
    Cp = gamma.shape[-1]
    s = jnp.sum(partial[:, 0, :], axis=0)                 # (2*Cp,)
    s1, s2 = s[:Cp], s[Cp:]
    mean = s1 / rows_total
    var = s2 / rows_total - mean * mean
    scale = gamma.reshape(-1) * jax.lax.rsqrt(var + EPS)
    shift = beta.reshape(-1) - mean * scale
    return scale.reshape(1, Cp), shift.reshape(1, Cp)


def _mosaic_params(per_step_bytes):
    """VMEM budget from the per-step working set (double-buffered blocks + scratch +
    intermediates), clamped so the request is legal on every generation (v7x: 64 MiB
    physical per TensorCore).  Batch-tile axis is 'parallel' -> both v7x TCs."""
    vmem = int(min(max(3 * per_step_bytes + (4 << 20), 16 << 20), 48 << 20))
    return pltpu.CompilerParams(dimension_semantics=("parallel",),
                                vmem_limit_bytes=vmem)


# ---------------------------------------------------------------------------
# Forward wrappers
# ---------------------------------------------------------------------------
def block_forward_nhwc(x_nhwc, packed, *, batch_tile=8):
    """NHWC in, NHWC out.  Use this end-to-end when stacking Blocks (no transposes)."""
    x = x_nhwc.astype(jnp.float32)
    N, H, W, C = x.shape
    Cp = packed["w1"].shape[-1]
    H1, W1 = H + 1, W + 1
    tn = _pick_batch_tile(N, batch_tile)
    n_tiles = N // tn
    f32 = jnp.float32

    # Channel pad once host-side (no-op at production C == Cp).
    x_p = x if C == Cp else jnp.zeros((N, H, W, Cp), f32).at[..., :C].set(x)

    tile4 = lambda shp: pl.BlockSpec(shp, lambda t: (t, 0, 0, 0))     # per-tile blocks
    const3 = lambda shp: pl.BlockSpec(shp, lambda t: (0, 0, 0))       # resident weights
    const2 = lambda shp: pl.BlockSpec(shp, lambda t: (0, 0))          # resident scale/shift
    stats_spec = pl.BlockSpec((1, 8, 2 * Cp), lambda t: (t, 0, 0))
    stats_shape = jax.ShapeDtypeStruct((n_tiles, 8, 2 * Cp), f32)

    # ---- pass 1: conv1 (pre-BN) + partial BN1 sums ---------------------------------
    blk1 = 4 * tn * Cp * (H * W + 4 * H1 * W1 + (H + 2) * (W + 2)) + 8 * Cp * Cp
    y1, st1 = pl.pallas_call(
        _conv1_stats_kernel,
        out_shape=(jax.ShapeDtypeStruct((N, H1, W1, Cp), f32), stats_shape),
        grid_spec=pltpu.PrefetchScalarGridSpec(
            num_scalar_prefetch=0, grid=(n_tiles,),
            in_specs=[tile4((tn, H, W, Cp)), const3((4, Cp, Cp))],
            out_specs=[tile4((tn, H1, W1, Cp)), stats_spec],
            scratch_shapes=[pltpu.VMEM((tn, H + 2, W + 2, Cp), f32)]),
        compiler_params=_mosaic_params(blk1),
        cost_estimate=pl.CostEstimate(
            flops=8 * N * H1 * W1 * Cp * Cp + 6 * N * H1 * W1 * Cp,
            transcendentals=0,
            bytes_accessed=4 * Cp * N * (H * W + H1 * W1) + 8 * Cp * Cp),
    )(x_p, packed["w1"])
    scale1, shift1 = _finalize_stats(st1, N * H1 * W1, packed["g1"], packed["bt1"])

    # ---- pass 2: BN1 apply + ReLU + conv2 (pre-BN) + partial BN2 sums ---------------
    blk2 = 4 * tn * Cp * (2 * H1 * W1 + 4 * H * W) + 8 * Cp * Cp
    y2, st2 = pl.pallas_call(
        _bn1_conv2_stats_kernel,
        out_shape=(jax.ShapeDtypeStruct((N, H, W, Cp), f32), stats_shape),
        grid_spec=pltpu.PrefetchScalarGridSpec(
            num_scalar_prefetch=0, grid=(n_tiles,),
            in_specs=[tile4((tn, H1, W1, Cp)), const2((1, Cp)), const2((1, Cp)),
                      const3((4, Cp, Cp))],
            out_specs=[tile4((tn, H, W, Cp)), stats_spec]),
        compiler_params=_mosaic_params(blk2),
        cost_estimate=pl.CostEstimate(
            flops=8 * N * H * W * Cp * Cp + 3 * N * H1 * W1 * Cp + 6 * N * H * W * Cp,
            transcendentals=0,
            bytes_accessed=4 * Cp * N * (H1 * W1 + H * W) + 8 * Cp * Cp),
    )(y1, scale1, shift1, packed["w2"])
    scale2, shift2 = _finalize_stats(st2, N * H * W, packed["g2"], packed["bt2"])

    # ---- pass 3: BN2 apply + residual + ReLU ----------------------------------------
    blk3 = 4 * tn * Cp * (3 * H * W)
    out = pl.pallas_call(
        _bn2_residual_kernel,
        out_shape=jax.ShapeDtypeStruct((N, H, W, Cp), f32),
        grid_spec=pltpu.PrefetchScalarGridSpec(
            num_scalar_prefetch=0, grid=(n_tiles,),
            in_specs=[tile4((tn, H, W, Cp)), tile4((tn, H, W, Cp)),
                      const2((1, Cp)), const2((1, Cp))],
            out_specs=tile4((tn, H, W, Cp))),
        compiler_params=_mosaic_params(blk3),
        cost_estimate=pl.CostEstimate(
            flops=4 * N * H * W * Cp, transcendentals=0,
            bytes_accessed=12 * N * H * W * Cp),
    )(y2, x_p, scale2, shift2)

    # Drop the zero channel-padding lanes (no-op at production C == Cp).
    return out[..., :C]


def block_forward(x_nchw, packed, *, batch_tile=8):
    """PyTorch-layout wrapper: NCHW in / NCHW out.  Prefer block_forward_nhwc when
    stacking residual blocks to avoid per-block transposes (pure HBM bandwidth)."""
    x = jnp.transpose(x_nchw, (0, 2, 3, 1))
    y = block_forward_nhwc(x, packed, batch_tile=batch_tile)
    return jnp.transpose(y, (0, 3, 1, 2))


# ---------------------------------------------------------------------------
# Synthetic params + pure-JAX reference
# ---------------------------------------------------------------------------
def init_params(key, num_channel):
    """Deterministic synthetic params matching torch Block(num_channel) shapes."""
    C = num_channel
    k1, k2, k3, k4 = jax.random.split(key, 4)
    fan_in = C * 2 * 2
    bound = 1.0 / (fan_in ** 0.5)
    return {
        # conv weights stored as HWIO (kh, kw, Cin, Cout); biases/affine as (1, C)
        "w1": jax.random.uniform(k1, (2, 2, C, C), jnp.float32, -bound, bound),
        "b1": jax.random.uniform(k2, (1, C), jnp.float32, -bound, bound),
        "w2": jax.random.uniform(k3, (2, 2, C, C), jnp.float32, -bound, bound),
        "b2": jax.random.uniform(k4, (1, C), jnp.float32, -bound, bound),
        "g1": jnp.ones((1, C), jnp.float32),
        "bt1": jnp.zeros((1, C), jnp.float32),
        "g2": jnp.ones((1, C), jnp.float32),
        "bt2": jnp.zeros((1, C), jnp.float32),
    }


def _reference_forward(x_nchw, p):
    """Pure-JAX reference (same math, INCLUDING the dead conv biases).  Convs use the
    same bf16-operand / f32-accumulate convention as the kernel; everything else f32."""
    x = jnp.transpose(x_nchw, (0, 2, 3, 1)).astype(jnp.float32)
    xp = jnp.pad(x, ((0, 0), (1, 1), (1, 1), (0, 0)))
    dn = ("NHWC", "HWIO", "NHWC")

    def conv(a, w):
        return jax.lax.conv_general_dilated(
            a.astype(jnp.bfloat16), w.astype(jnp.bfloat16), (1, 1), "VALID",
            dimension_numbers=dn, preferred_element_type=jnp.float32)

    def bn(y, g, b):
        m = y.mean((0, 1, 2), keepdims=True)
        v = ((y - m) ** 2).mean((0, 1, 2), keepdims=True)
        return (y - m) / jnp.sqrt(v + EPS) * g.reshape(1, 1, 1, -1) + b.reshape(1, 1, 1, -1)

    y = conv(xp, p["w1"]) + p["b1"].reshape(1, 1, 1, -1)
    y = jnp.maximum(bn(y, p["g1"], p["bt1"]), 0.0)
    y = conv(y, p["w2"]) + p["b2"].reshape(1, 1, 1, -1)
    y = jnp.maximum(bn(y, p["g2"], p["bt2"]) + x, 0.0)
    return jnp.transpose(y, (0, 3, 1, 2))


if __name__ == "__main__":
    key = jax.random.PRNGKey(0)
    kx, kp = jax.random.split(key)

    N, C, H, W = 4, 8, 8, 8                       # small NCHW input
    x = jax.random.normal(kx, (N, C, H, W), jnp.float32)
    params = init_params(kp, C)
    packed = prepare_block_params(params)

    # batch_tile=2 -> 2 grid steps: exercises the pipeline AND the cross-tile
    # partial-stats reduction (global batch statistics from per-tile sums).
    out = block_forward(x, packed, batch_tile=2)
    out = jax.block_until_ready(out)

    ref = _reference_forward(x, params)
    assert out.shape == (N, C, H, W)
    # bf16 matmul operands (shared convention with the reference) + accumulation-order
    # differences bound the parity gap well below 5e-3.
    assert jnp.allclose(out, ref, rtol=5e-3, atol=5e-3), "mismatch vs JAX reference"

    print("KERNEL_OK")
</pallas_src>

<mosaic_0001>
module attributes {stable_mosaic.version = 11 : i64} {
  func.func @_conv1_stats_kernel(%arg0: i32, %arg1: memref<2x8x8x128xf32, #tpu.memory_space<vmem>>, %arg2: memref<4x128x128xbf16, #tpu.memory_space<vmem>>, %arg3: memref<2x9x9x128xf32, #tpu.memory_space<vmem>>, %arg4: memref<1x8x256xf32, #tpu.memory_space<vmem>>, %arg5: memref<2x10x10x128xf32, #tpu.memory_space<vmem>>) attributes {dimension_semantics = [#tpu.dimension_semantics<parallel>], iteration_bounds = array<i64: 2>, scalar_prefetch = 0 : i64, scratch_operands = 1 : i64, tpu.core_type = #tpu.core_type<tc>, window_params = [{transform_indices = @transform_0, window_bounds = array<i64: 2, 8, 8, 128>}, {pipeline_mode = #tpu.pipeline_mode<synchronous>, transform_indices = @transform_1, window_bounds = array<i64: 4, 128, 128>}, {transform_indices = @transform_2, window_bounds = array<i64: 2, 9, 9, 128>}, {transform_indices = @transform_3, window_bounds = array<i64: 1, 8, 256>}]} {
    %cst = arith.constant 0.000000e+00 : f32
    %0 = vector.broadcast %cst : f32 to vector<2x1x10x128xf32>
    %c0 = arith.constant 0 : index
    %c0_0 = arith.constant 0 : index
    %c0_1 = arith.constant 0 : index
    %c0_2 = arith.constant 0 : index
    %1 = vector.load %arg5[%c0, %c0_0, %c0_1, %c0_2] : memref<2x10x10x128xf32, #tpu.memory_space<vmem>>, vector<2x1x10x128xf32>
    tpu.vector_store %arg5[%c0, %c0_0, %c0_1, %c0_2], %0 {strides = array<i32>} : memref<2x10x10x128xf32, #tpu.memory_space<vmem>>, vector<2x1x10x128xf32>,
    %cst_3 = arith.constant 0.000000e+00 : f32
    %2 = vector.broadcast %cst_3 : f32 to vector<2x1x10x128xf32>
    %c0_4 = arith.constant 0 : index
    %c9 = arith.constant 9 : index
    %c0_5 = arith.constant 0 : index
    %c0_6 = arith.constant 0 : index
    %3 = vector.load %arg5[%c0_4, %c9, %c0_5, %c0_6] : memref<2x10x10x128xf32, #tpu.memory_space<vmem>>, vector<2x1x10x128xf32>
    tpu.vector_store %arg5[%c0_4, %c9, %c0_5, %c0_6], %2 {strides = array<i32>} : memref<2x10x10x128xf32, #tpu.memory_space<vmem>>, vector<2x1x10x128xf32>,
    %cst_7 = arith.constant 0.000000e+00 : f32
    %4 = vector.broadcast %cst_7 : f32 to vector<2x10x1x128xf32>
    %c0_8 = arith.constant 0 : index
    %c0_9 = arith.constant 0 : index
    %c0_10 = arith.constant 0 : index
    %c0_11 = arith.constant 0 : index
    %5 = vector.load %arg5[%c0_8, %c0_9, %c0_10, %c0_11] : memref<2x10x10x128xf32, #tpu.memory_space<vmem>>, vector<2x10x1x128xf32>
    tpu.vector_store %arg5[%c0_8, %c0_9, %c0_10, %c0_11], %4 {strides = array<i32>} : memref<2x10x10x128xf32, #tpu.memory_space<vmem>>, vector<2x10x1x128xf32>,
    %cst_12 = arith.constant 0.000000e+00 : f32
    %6 = vector.broadcast %cst_12 : f32 to vector<2x10x1x128xf32>
    %c0_13 = arith.constant 0 : index
    %c0_14 = arith.constant 0 : index
    %c9_15 = arith.constant 9 : index
    %c0_16 = arith.constant 0 : index
    %7 = vector.load %arg5[%c0_13, %c0_14, %c9_15, %c0_16] : memref<2x10x10x128xf32, #tpu.memory_space<vmem>>, vector<2x10x1x128xf32>
    tpu.vector_store %arg5[%c0_13, %c0_14, %c9_15, %c0_16], %6 {strides = array<i32>} : memref<2x10x10x128xf32, #tpu.memory_space<vmem>>, vector<2x10x1x128xf32>,
    %c0_17 = arith.constant 0 : index
    %c0_18 = arith.constant 0 : index
    %c0_19 = arith.constant 0 : index
    %c0_20 = arith.constant 0 : index
    %8 = vector.load %arg1[%c0_17, %c0_18, %c0_19, %c0_20] : memref<2x8x8x128xf32, #tpu.memory_space<vmem>>, vector<2x8x8x128xf32>
    %c0_21 = arith.constant 0 : index
    %c1 = arith.constant 1 : index
    %c1_22 = arith.constant 1 : index
    %c0_23 = arith.constant 0 : index
    %9 = vector.load %arg5[%c0_21, %c1, %c1_22, %c0_23] : memref<2x10x10x128xf32, #tpu.memory_space<vmem>>, vector<2x8x8x128xf32>
    tpu.vector_store %arg5[%c0_21, %c1, %c1_22, %c0_23], %8 {strides = array<i32>} : memref<2x10x10x128xf32, #tpu.memory_space<vmem>>, vector<2x8x8x128xf32>,
    %c0_24 = arith.constant 0 : index
    %c0_25 = arith.constant 0 : index
    %c0_26 = arith.constant 0 : index
    %c0_27 = arith.constant 0 : index
    %10 = vector.load %arg5[%c0_24, %c0_25, %c0_26, %c0_27] : memref<2x10x10x128xf32, #tpu.memory_space<vmem>>, vector<2x10x10x128xf32>
    %cst_28 = arith.constant 0.000000e+00 : f32
    %11 = vector.broadcast %cst_28 : f32 to vector<162x128xf32>
    %12 = vector.extract_strided_slice %10 {offsets = [0, 0, 0, 0], sizes = [2, 9, 9, 128], strides = [1, 1, 1, 1]} : vector<2x10x10x128xf32> to vector<2x9x9x128xf32>
    %13 = vector.shape_cast %12 : vector<2x9x9x128xf32> to vector<162x128xf32>
    %14 = arith.truncf %13 : vector<162x128xf32> to vector<162x128xbf16>
    %c0_29 = arith.constant 0 : index
    %c0_30 = arith.constant 0 : index
    %c0_31 = arith.constant 0 : index
    %15 = vector.load %arg2[%c0_29, %c0_30, %c0_31] : memref<4x128x128xbf16, #tpu.memory_space<vmem>>, vector<1x128x128xbf16>
    %16 = vector.shape_cast %15 : vector<1x128x128xbf16> to vector<128x128xbf16>
    %cst_32 = arith.constant dense<0.000000e+00> : vector<162x128xf32>
    %17 = tpu.matmul %14, %16, %cst_32 {dimension_numbers = #tpu.dot_dimension_numbers<[1], [0], [0], [1], [0, 0, 1, 1], [], []>} : vector<162x128xbf16>, vector<128x128xbf16>, vector<162x128xf32> -> vector<162x128xf32>
    %18 = arith.addf %11, %17 : vector<162x128xf32>
    %19 = vector.extract_strided_slice %10 {offsets = [0, 0, 1, 0], sizes = [2, 9, 9, 128], strides = [1, 1, 1, 1]} : vector<2x10x10x128xf32> to vector<2x9x9x128xf32>
    %20 = vector.shape_cast %19 : vector<2x9x9x128xf32> to vector<162x128xf32>
    %21 = arith.truncf %20 : vector<162x128xf32> to vector<162x128xbf16>
    %c1_33 = arith.constant 1 : index
    %c0_34 = arith.constant 0 : index
    %c0_35 = arith.constant 0 : index
    %22 = vector.load %arg2[%c1_33, %c0_34, %c0_35] : memref<4x128x128xbf16, #tpu.memory_space<vmem>>, vector<1x128x128xbf16>
    %23 = vector.shape_cast %22 : vector<1x128x128xbf16> to vector<128x128xbf16>
    %cst_36 = arith.constant dense<0.000000e+00> : vector<162x128xf32>
    %24 = tpu.matmul %21, %23, %cst_36 {dimension_numbers = #tpu.dot_dimension_numbers<[1], [0], [0], [1], [0, 0, 1, 1], [], []>} : vector<162x128xbf16>, vector<128x128xbf16>, vector<162x128xf32> -> vector<162x128xf32>
    %25 = arith.addf %18, %24 : vector<162x128xf32>
    %26 = vector.extract_strided_slice %10 {offsets = [0, 1, 0, 0], sizes = [2, 9, 9, 128], strides = [1, 1, 1, 1]} : vector<2x10x10x128xf32> to vector<2x9x9x128xf32>
    %27 = vector.shape_cast %26 : vector<2x9x9x128xf32> to vector<162x128xf32>
    %28 = arith.truncf %27 : vector<162x128xf32> to vector<162x128xbf16>
    %c2 = arith.constant 2 : index
    %c0_37 = arith.constant 0 : index
    %c0_38 = arith.constant 0 : index
    %29 = vector.load %arg2[%c2, %c0_37, %c0_38] : memref<4x128x128xbf16, #tpu.memory_space<vmem>>, vector<1x128x128xbf16>
    %30 = vector.shape_cast %29 : vector<1x128x128xbf16> to vector<128x128xbf16>
    %cst_39 = arith.constant dense<0.000000e+00> : vector<162x128xf32>
    %31 = tpu.matmul %28, %30, %cst_39 {dimension_numbers = #tpu.dot_dimension_numbers<[1], [0], [0], [1], [0, 0, 1, 1], [], []>} : vector<162x128xbf16>, vector<128x128xbf16>, vector<162x128xf32> -> vector<162x128xf32>
    %32 = arith.addf %25, %31 : vector<162x128xf32>
    %33 = vector.extract_strided_slice %10 {offsets = [0, 1, 1, 0], sizes = [2, 9, 9, 128], strides = [1, 1, 1, 1]} : vector<2x10x10x128xf32> to vector<2x9x9x128xf32>
    %34 = vector.shape_cast %33 : vector<2x9x9x128xf32> to vector<162x128xf32>
    %35 = arith.truncf %34 : vector<162x128xf32> to vector<162x128xbf16>
    %c3 = arith.constant 3 : index
    %c0_40 = arith.constant 0 : index
    %c0_41 = arith.constant 0 : index
    %36 = vector.load %arg2[%c3, %c0_40, %c0_41] : memref<4x128x128xbf16, #tpu.memory_space<vmem>>, vector<1x128x128xbf16>
    %37 = vector.shape_cast %36 : vector<1x128x128xbf16> to vector<128x128xbf16>
    %cst_42 = arith.constant dense<0.000000e+00> : vector<162x128xf32>
    %38 = tpu.matmul %35, %37, %cst_42 {dimension_numbers = #tpu.dot_dimension_numbers<[1], [0], [0], [1], [0, 0, 1, 1], [], []>} : vector<162x128xbf16>, vector<128x128xbf16>, vector<162x128xf32> -> vector<162x128xf32>
    %39 = arith.addf %32, %38 : vector<162x128xf32>
    %40 = vector.shape_cast %39 : vector<162x128xf32> to vector<2x9x9x128xf32>
    %c0_43 = arith.constant 0 : index
    %c0_44 = arith.constant 0 : index
    %c0_45 = arith.constant 0 : index
    %c0_46 = arith.constant 0 : index
    %41 = vector.load %arg3[%c0_43, %c0_44, %c0_45, %c0_46] : memref<2x9x9x128xf32, #tpu.memory_space<vmem>>, vector<2x9x9x128xf32>
    tpu.vector_store %arg3[%c0_43, %c0_44, %c0_45, %c0_46], %40 {strides = array<i32>} : memref<2x9x9x128xf32, #tpu.memory_space<vmem>>, vector<2x9x9x128xf32>,
    %cst_47 = arith.constant 1.000000e+00 : f32
    %42 = vector.broadcast %cst_47 : f32 to vector<1x162xf32>
    %43 = arith.mulf %39, %39 : vector<162x128xf32>
    %44 = tpu.concatenate %39, %43 in 1 : vector<162x128xf32>, vector<162x128xf32> -> vector<162x256xf32>
    %cst_48 = arith.constant dense<0.000000e+00> : vector<1x256xf32>
    %45 = tpu.matmul %42, %44, %cst_48 {dimension_numbers = #tpu.dot_dimension_numbers<[1], [0], [0], [1], [0, 0, 1, 1], [], []>} : vector<1x162xf32>, vector<162x256xf32>, vector<1x256xf32> -> vector<1x256xf32>
    %46 = vector.shape_cast %45 : vector<1x256xf32> to vector<1x1x256xf32>
    %47 = vector.shape_cast %46 : vector<1x1x256xf32> to vector<1x1x256xf32>
    %48 = vector.broadcast %47 : vector<1x1x256xf32> to vector<1x8x256xf32>
    %c0_49 = arith.constant 0 : index
    %c0_50 = arith.constant 0 : index
    %c0_51 = arith.constant 0 : index
    %49 = vector.load %arg4[%c0_49, %c0_50, %c0_51] : memref<1x8x256xf32, #tpu.memory_space<vmem>>, vector<1x8x256xf32>
    tpu.vector_store %arg4[%c0_49, %c0_50, %c0_51], %48 {strides = array<i32>} : memref<1x8x256xf32, #tpu.memory_space<vmem>>, vector<1x8x256xf32>,
    return
  }
  func.func @transform_0(%arg0: i32) -> (i32, i32, i32, i32) {
    %c0_i32 = arith.constant 0 : i32
    %c0_i32_0 = arith.constant 0 : i32
    %c0_i32_1 = arith.constant 0 : i32
    %c0_i32_2 = arith.constant 0 : i32
    return %arg0, %c0_i32, %c0_i32_0, %c0_i32_1 : i32, i32, i32, i32
  }
  func.func @transform_1(%arg0: i32) -> (i32, i32, i32) {
    %c0_i32 = arith.constant 0 : i32
    %c0_i32_0 = arith.constant 0 : i32
    %c0_i32_1 = arith.constant 0 : i32
    %c0_i32_2 = arith.constant 0 : i32
    return %c0_i32, %c0_i32_0, %c0_i32_1 : i32, i32, i32
  }
  func.func @transform_2(%arg0: i32) -> (i32, i32, i32, i32) {
    %c0_i32 = arith.constant 0 : i32
    %c0_i32_0 = arith.constant 0 : i32
    %c0_i32_1 = arith.constant 0 : i32
    %c0_i32_2 = arith.constant 0 : i32
    return %arg0, %c0_i32, %c0_i32_0, %c0_i32_1 : i32, i32, i32, i32
  }
  func.func @transform_3(%arg0: i32) -> (i32, i32, i32) {
    %c0_i32 = arith.constant 0 : i32
    %c0_i32_0 = arith.constant 0 : i32
    %c0_i32_1 = arith.constant 0 : i32
    return %arg0, %c0_i32, %c0_i32_0 : i32, i32, i32
  }
}

</mosaic_0001>

<bundles_post_ra>
// kernel: tpu_custom_call.1
= control target key start
LH: loop header
LB: loop body
LE: loop exit
PB: predicated region body
PF: predicated region fallthrough
CT: control target
= control target key end

     0   :  { %9 = vsyncpa [#allocation4], 0  ;;  %s11398_s0 = inlined_call_operand.hbm [shape: f32[4,8,8,128], index: 0, kind: input, shape index: {}]   ;;  %s11399_s1 = inlined_call_operand.hbm [shape: bf16[4,128,128], index: 1, kind: input, shape index: {}]   ;;  %s11400_s2 = inlined_call_operand.vmem [shape: f32[4,9,9,128], index: 2, kind: output, shape index: {0}]   ;;  %s11401_s3 = inlined_call_operand.hbm [shape: f32[2,8,256], index: 3, kind: output, shape index: {1}]  }
   0x1   :  { %11 = vsyncpa [#allocation4 + $0x1], 0 }
   0x2   :  { %12 = vsyncpa [#allocation7], 0 }
   0x3   :  { %13 = vsyncpa [#allocation5], 0 }
   0x4   :  { %15 = vsyncpa [#allocation5 + $0x1], 0  ;;  %s8849_s12 = smov 0   ;;  %s8851_s13 = smov 0  }
   0x5   :  { %s8853_s14 = smov 0   ;;  %s8855_s15 = smov 0  }
   0x6 LB: > { %s8870_s16 = sadd.s32 4294967295, %s8816_s15   ;;  %s8106_s17 = sadd.s32 4294967294, %s8816_s15   ;;  %s8816_s15 = sphi %s8855_s15, %s11744_s15   ;;  %s8812_s14 = sphi %s8853_s14, %s11743_s14   ;;  %s8808_s13 = sphi %s8851_s13, %s11742_s13   ;;  %s8804_s12 = sphi %s8849_s12, %s11741_s12  }
   0x7   : > { %p41_p0 = scmp.ne.s32.totalorder %s8808_s13, %s8804_s12  ;;  %p11402_p1 = scmp.eq.s32.totalorder %s8870_s16, 0 }
   0x8   : > { %p118_p3 = scmp.eq.s32.totalorder %s8106_s17, 1  ;;  %p8107_p5 = scmp.ge.s32.totalorder %s8816_s15, 1 }
   0x9   : > { %p8879_p4 = por %p11402_p1, %p41_p0  ;;  %p125_p7 = scmp.lt.s32.totalorder %s8816_s15, 3 }
   0xa   : > { %p8884_p6 = por %p118_p3, %p41_p0  ;;  %s8818_s21 = smov [#allocation6]  }
   0xb   : > { %s11511_s18 = scalar_select %p8879_p4, 1, 0 }
   0xc   : > { %s11512_s19 = scalar_select %p8884_p6, 1, 0 }
   0xd   : > { %p8889_p8 = pnand %p8107_p5, %p125_p7  ;;  %s137_s22 = sshll.u32 %s8818_s21, 4  ;;  %s138_s22 = int_to_ptr.vmem [resolvable:$true] %s137_s22 }
   0xe   : > { %s8903_s24 = sadd.s32 1, %s8816_s15   ;;  %s28_s25 = sadd.s32 1, %s8812_s14 }
   0xf   : > { %s11513_s20 = scalar_select %p8889_p8, 1, 0 }
  0x10   : > { %p8584_p9 = pneg %p8889_p8  ;;  %s25_s26 = ssub.s32 %s8816_s15, %s8903_s24 }
  0x11   : > { %s8705_s27 = scalar_lea.vmem %s138_s22, 4096  ;;  %p8713_p5 = scmp.lt.s32.totalorder %s138_s22, %s138_s22 }
  0x12   : > { %p8898_p11 = pnand %p8584_p9, %p11402_p1  ;;  %p8706_p13 = scmp.ne.s32.totalorder %s138_s22, %s8705_s27 }
  0x13   : > { %p8714_p7 = scmp.lt.s32.totalorder %s8705_s27, %s8705_s27 }
  0x14   : > { %p8696_p12 = pneg %p8898_p11 }
  0x15   : > { %p8715_p10 = por %p8714_p7, %p8713_p5 }
  0x16   : > { %p8708_p0 = pnand %p8706_p13, %p8696_p12 }
  0x18   : > { %p8709_p3 = pneg %p8708_p0 }
  0x1a   : > { %p8716_p2 = pnand %p8715_p10, %p8709_p3 }
  0x1c   : > { %8719 = shalt.err (!%p8716_p2)
}
  0x1d   : > { %s8819_s28 = smov 64   ;;  %s8820_s29 = smov 4  }
  0x1e   : > { %8587 = dma.hbm_to_vmem [thread:$0]  (!%p8898_p11), %s11399_s1, 4096, %s138_s22, [#allocation7], %s8819_s28, %s8819_s28, %s8820_s29  }
  0x1f   : > { %p26_p9 = scmp.eq.s32.totalorder %s25_s26, 0  ;;  %p35_p12 = scmp.ne.s32.totalorder %s8812_s14, %s8808_s13 }
  0x20   : > { %p36_p10 = scmp.eq.s32.totalorder %s8816_s15, 0  ;;  %p8597_p2 = scmp.lt.s32.totalorder %s8816_s15, 2 }
  0x21   : > { %s8920_s5 = scalar_select %p26_p9, %s8812_s14, %s28_s25  }
  0x22   : > { %p37_p13 = por %p36_p10, %p35_p12  ;;  %p11515_p0 = scmp.eq.s32.totalorder %s8870_s16, 1 }
  0x23   : > { %s151_s7 = sand.u32 1, %s8812_s14   ;;  %s8257_s8 = sshll.u32 %s8816_s15, 11 }
  0x24   : > { %p8924_p3 = por %p11515_p0, %p35_p12  ;;  %s8110_s9 = sshll.u32 %s151_s7, 7 }
  0x25   : > { %s8933_s17 = scalar_lea.hbm %s11398_s0, %s8257_s8  ;;  %s155_s21 = scalar_lea.vmem [#allocation3], %s8110_s9 }
  0x26   : > { %s11516_s6 = scalar_select %p8924_p3, 1, 0 }
  0x27   : > { %s163_s22 = sshll.u32 %s155_s21, 4  ;;  %p8935_p11 = pnand %p8597_p2, %p37_p13  ;;  %s8939_s22 = int_to_ptr.vmem [resolvable:$true] %s163_s22 }
  0x28   : > { %s8941_s25 = scalar_lea.sflag [#allocation4], %s151_s7  ;;  %s8720_s26 = scalar_lea.hbm %s8933_s17, 2048 }
  0x29   : > { %p8721_p5 = scmp.ne.s32.totalorder %s8933_s17, %s8720_s26  ;;  %p8722_p7 = pneg %p8935_p11 }
  0x2a   : > { %s8725_s29 = scalar_lea.hbm %s11398_s0, 4096  ;;  %p8726_p10 = scmp.lt.s32.totalorder %s8933_s17, %s11398_s0 }
  0x2b   : > { %p8723_p9 = pnand %p8722_p7, %p8721_p5  ;;  %p8727_p2 = scmp.lt.s32.totalorder %s8725_s29, %s8720_s26 }
  0x2d   : > { %p8724_p12 = pneg %p8723_p9  ;;  %p8728_p13 = por %p8727_p2, %p8726_p10 }
  0x2f   : > { %p8729_p0 = pnand %p8728_p13, %p8724_p12 }
  0x31   : > { %8732 = shalt.err (!%p8729_p0)
}
  0x32   : > { %s8733_s7 = scalar_lea.vmem %s8939_s22, 2048  ;;  %s8821_s8 = smov [#allocation3]  }
  0x33   : > { %p8734_p1 = scmp.ne.s32.totalorder %s8939_s22, %s8733_s7  ;;  %s8738_s9 = sshll.u32 %s8821_s8, 4  ;;  %s8739_s9 = int_to_ptr.vmem [resolvable:$false] %s8738_s9 }
  0x34   : > { %s8740_s10 = scalar_lea.vmem %s8739_s9, 4096  ;;  %p8741_p9 = scmp.lt.s32.totalorder %s8939_s22, %s8739_s9 }
  0x35   : > { %p8736_p6 = pnand %p8734_p1, %p8722_p7  ;;  %p8742_p3 = scmp.lt.s32.totalorder %s8740_s10, %s8733_s7 }
  0x37   : > { %p8737_p5 = pneg %p8736_p6  ;;  %p8743_p4 = por %p8742_p3, %p8741_p9 }
  0x39   : > { %p8744_p8 = pnand %p8743_p4, %p8737_p5 }
  0x3b   : > { %8747 = shalt.err (!%p8744_p8)
}
  0x3c   : > { %s8822_s11 = smov 128   ;;  %s8823_s21 = smov 8  }
  0x3d   : > { %8591 = dma.hbm_to_vmem [thread:$0]  (!%p8935_p11), %s8933_s17, 2048, %s8939_s22, %s8941_s25, %s8822_s11, %s8822_s11, %s8823_s21  }
  0x3e   : > { %p11518_p1 = scmp.ne.s32.totalorder %s11513_s20, 0 }
  0x40   : > { %175 = sbr.rel (%p11518_p1) target bundleno = 912 (0x390), region = 28 }
  0x45   : > { %s8965_s26 = sand.u32 1, %s8808_s13   ;;  %p11519_p4 = scmp.ne.s32.totalorder %s11511_s18, 0 }
  0x46   : > { %s8115_s27 = sshll.u32 %s8965_s26, 7  ;;  %s178_s28 = scalar_lea.sflag [#allocation4], %s8965_s26 }
  0x47   : > { %s8969_s29 = scalar_lea.vmem [#allocation3], %s8115_s27 }
  0x48   : > { %8791 = dma.done.wait (%p11519_p4), %s178_s28, 2048  }
  0x49   : > { %8793 = vsyncadd (%p11519_p4), %s178_s28, 4294965248  ;;  %p11520_p6 = scmp.eq.s32.totalorder %s8870_s16, 0 }
  0x4b   : > { %8795 = dma.done.wait (%p11520_p6), [#allocation7], 4096   ;;  %p11521_p8 = pmov %p11520_p6 }
  0x4c   : > { %v11408_v0 = vmov 0.0   ;;  %vm8825_vm0 = vmmov 0   ;;  %v8641_v1 = vld [vmem:[#allocation6 + $0x78] sm:$0xff]   ;;  %v8643_v3 = vld [vmem:[#allocation6 + $0x70] sm:$0xff]   ;;  %v8826_v5 = vmov 1966171168   ;;  %v385_v7 = vlaneseq }
  0x4d   : > { %8797 = vsyncadd (%p11521_p8), [#allocation7], 4294963200  ;;  %8335 = vmatprep.subr.bf16.mxu0 %v11408_v0  ;;  %223 = vst [vmem:[#allocation2] sm:$0xff] %v11408_v0  ;;  %8395 = vmatprep.subr.bf16.mxu1 %v11408_v0  ;;  %v8642_v2 = vld [vmem:[#allocation6 + $0x38] sm:$0xff]   ;;  %v8644_v4 = vld [vmem:[#allocation6 + $0x30] sm:$0xff]   ;;  %v383_v6 = vunpack.c.l.s4 %v8826_v5  ;;  %s8118_s18 = sshll.u32 %s8870_s16, 1 }
  0x4e   : > { %224 = vst [vmem:[#allocation2 + $0x8] sm:$0x3] %v11408_v0  ;;  %225 = vst [vmem:[#allocation2 + $0xa0] sm:$0xff] %v11408_v0  ;;  %8351 = vmatprep.mubr.msk.bf16.mxu0 %vm8825_vm0, %v11408_v0  ;;  %8411 = vmatprep.mubr.msk.bf16.mxu1 %vm8825_vm0, %v11408_v0  ;;  %v8645_v8 = vld [vmem:[#allocation6 + $0x68] sm:$0xff]   ;;  %v9037_v11 = vshrl.u32 %v385_v7, 7  ;;  %v8647_v12 = vld [vmem:[#allocation6 + $0x60] sm:$0xff]  }
  0x4f   : > { %226 = vst [vmem:[#allocation2 + $0xa8] sm:$0x3] %v11408_v0  ;;  %228 = vst [vmem:[#allocation2 + $0x90] sm:$0xff] %v11408_v0  ;;  %8336 = vmatpush3.bf16.msra.mxu0 %v8641_v1  ;;  %8396 = vmatpush3.bf16.msra.mxu1 %v8642_v2  ;;  %v8646_v9 = vld [vmem:[#allocation6 + $0x28] sm:$0xff]   ;;  %v384_v10 = vunpack.c.0.s8 %v383_v6  ;;  %v8648_v13 = vld [vmem:[#allocation6 + $0x20] sm:$0xff]   ;;  %p216_p3 = scmp.lt.s32.totalorder %s8118_s18, 3 }
  0x50   : > { %229 = vst [vmem:[#allocation2 + $0x98] sm:$0x3] %v11408_v0  ;;  %230 = vst [vmem:[#allocation2 + $0x130] sm:$0xff] %v11408_v0  ;;  %8337 = vmatprep.subr.bf16.mxu0 %v11408_v0  ;;  %8397 = vmatprep.subr.bf16.mxu1 %v11408_v0  ;;  %v8649_v15 = vld [vmem:[#allocation6 + $0x58] sm:$0xff]   ;;  %v8651_v17 = vld [vmem:[#allocation6 + $0x50] sm:$0xff]   ;;  %vm7884_vm1 = vcmask 277504  }
  0x51   : > { %231 = vst [vmem:[#allocation2 + $0x138] sm:$0x3] %v11408_v0  ;;  %233 = vst [vmem:[#allocation2 + $0x10] sm:$0x1] %v11408_v0  ;;  %v9042_v14 = vsub.s32 %v384_v10, %v9037_v11  ;;  %v8650_v16 = vld [vmem:[#allocation6 + $0x18] sm:$0xff]   ;;  %v272_v18 = vld [vmem:[%s8969_s29] sm:$0xff] }
  0x52   : > { %234 = vst [vmem:[#allocation2 + $0x20] sm:$0x1] %v11408_v0  ;;  %235 = vst [vmem:[#allocation2 + $0x30] sm:$0x1] %v11408_v0  ;;  %v8652_v21 = vld [vmem:[#allocation6 + $0x10] sm:$0xff]   ;;  %v273_v25 = vld [vmem:[%s8969_s29 + $0x8] sm:$0xff] }
  0x53   : > { %236 = vst [vmem:[#allocation2 + $0x40] sm:$0x1] %v11408_v0  ;;  %237 = vst [vmem:[#allocation2 + $0x50] sm:$0x1] %v11408_v0  ;;  %8338 = vmatpush3.bf16.msra.mxu0 %v8643_v3  ;;  %8398 = vmatpush3.bf16.msra.mxu1 %v8644_v4  ;;  %v274_v26 = vld [vmem:[%s8969_s29 + $0x10] sm:$0xff]  ;;  %v275_v27 = vld [vmem:[%s8969_s29 + $0x18] sm:$0xff] }
  0x54   : > { %238 = vst [vmem:[#allocation2 + $0x60] sm:$0x1] %v11408_v0  ;;  %239 = vst [vmem:[#allocation2 + $0x70] sm:$0x1] %v11408_v0  ;;  %8339 = vmatprep.subr.bf16.mxu0 %v11408_v0  ;;  %8399 = vmatprep.subr.bf16.mxu1 %v11408_v0  ;;  %v276_v28 = vld [vmem:[%s8969_s29 + $0x20] sm:$0xff]  ;;  %v277_v29 = vld [vmem:[%s8969_s29 + $0x28] sm:$0xff] }
  0x55   : > { %240 = vst [vmem:[#allocation2 + $0x80] sm:$0x1] %v11408_v0  ;;  %243 = vst [vmem:[#allocation2 + $0xb0] sm:$0x1] %v11408_v0  ;;  %v278_v30 = vld [vmem:[%s8969_s29 + $0x30] sm:$0xff]  ;;  %v279_v34 = vld [vmem:[%s8969_s29 + $0x38] sm:$0xff] }
  0x56   : > { %244 = vst [vmem:[#allocation2 + $0xc0] sm:$0x1] %v11408_v0  ;;  %245 = vst [vmem:[#allocation2 + $0xd0] sm:$0x1] %v11408_v0  ;;  %v280_v35 = vld [vmem:[%s8969_s29 + $0x40] sm:$0xff]  ;;  %v8653_v37 = vld [vmem:[#allocation6 + $0x48] sm:$0xff]  }
  0x57   : > { %246 = vst [vmem:[#allocation2 + $0xe0] sm:$0x1] %v11408_v0  ;;  %247 = vst [vmem:[#allocation2 + $0xf0] sm:$0x1] %v11408_v0  ;;  %8340 = vmatpush3.bf16.msra.mxu0 %v8645_v8  ;;  %8400 = vmatpush3.bf16.msra.mxu1 %v8646_v9  ;;  %v8654_v43 = vld [vmem:[#allocation6 + $0x8] sm:$0xff]   ;;  %v282_v49 = vld [vmem:[%s8969_s29 + $0x50] sm:$0xff] }
  0x58   : > { %248 = vst [vmem:[#allocation2 + $0x100] sm:$0x1] %v11408_v0  ;;  %249 = vst [vmem:[#allocation2 + $0x110] sm:$0x1] %v11408_v0  ;;  %8341 = vmatprep.subr.bf16.mxu0 %v11408_v0  ;;  %8401 = vmatprep.subr.bf16.mxu1 %v11408_v0  ;;  %v281_v48 = vld [vmem:[%s8969_s29 + $0x48] sm:$0xff]  ;;  %v283_v62 = vld [vmem:[%s8969_s29 + $0x58] sm:$0xff] }
  0x59   : > { %250 = vst [vmem:[#allocation2 + $0x120] sm:$0x1] %v11408_v0  ;;  %253 = vst [vmem:[#allocation2 + $0x19] sm:$0x1] %v11408_v0  ;;  %v8655_v4 = vld [vmem:[#allocation6 + $0x40] sm:$0xff]   ;;  %s11746_s18 = smov (!%p216_p3, %s8118_s18), 3 }
  0x5a   : > { %254 = vst [vmem:[#allocation2 + $0x29] sm:$0x1] %v11408_v0  ;;  %255 = vst [vmem:[#allocation2 + $0x39] sm:$0x1] %v11408_v0  ;;  %v8656_v9 = vld [vmem:[#allocation6] sm:$0xff]   ;;  %s8575_s20 = smul.u32 144, %s11746_s18 }
  0x5b   : > { %256 = vst [vmem:[#allocation2 + $0x49] sm:$0x1] %v11408_v0  ;;  %257 = vst [vmem:[#allocation2 + $0x59] sm:$0x1] %v11408_v0  ;;  %8342 = vmatpush3.bf16.msra.mxu0 %v8647_v12  ;;  %8402 = vmatpush3.bf16.msra.mxu1 %v8648_v13  ;;  %vm7888_vm2 = vcmask 1041408   ;;  %s8117_s25 = sshll.u32 %s8965_s26, 4 }
  0x5c   : > { %258 = vst [vmem:[#allocation2 + $0x69] sm:$0x1] %v11408_v0  ;;  %259 = vst [vmem:[#allocation2 + $0x79] sm:$0x1] %v11408_v0  ;;  %8343 = vmatprep.subr.bf16.mxu0 %v11408_v0  ;;  %8403 = vmatprep.subr.bf16.mxu1 %v11408_v0  ;;  %s10809_s23 = scalar_lea.vmem %s11400_s2, %s8575_s20  ;;  %s8258_s30 = sshll.u32 %s8870_s16, 8 }
  0x5d   : > { %260 = vst [vmem:[#allocation2 + $0x89] sm:$0x1] %v11408_v0  ;;  %263 = vst [vmem:[#allocation2 + $0xb9] sm:$0x1] %v11408_v0  ;;  %s213_s4 = scalar_lea.vmem [#allocation8], %s8117_s25  ;;  %s7998_s10 = scalar_lea.hbm %s11401_s3, %s8258_s30 }
  0x5e   : > { %264 = vst [vmem:[#allocation2 + $0xc9] sm:$0x1] %v11408_v0  ;;  %265 = vst [vmem:[#allocation2 + $0xd9] sm:$0x1] %v11408_v0  ;;  %s8000_s7 = sshll.u32 %s213_s4, 4  ;;  %s7982_s11 = scalar_lea.sflag [#allocation5], %s8965_s26  ;;  %s8001_s7 = int_to_ptr.vmem [resolvable:$true] %s8000_s7 }
  0x5f   : > { %266 = vst [vmem:[#allocation2 + $0xe9] sm:$0x1] %v11408_v0  ;;  %267 = vst [vmem:[#allocation2 + $0xf9] sm:$0x1] %v11408_v0  ;;  %8344 = vmatpush3.bf16.msra.mxu0 %v8649_v15  ;;  %8404 = vmatpush3.bf16.msra.mxu1 %v8650_v16  ;;  %s8748_s21 = scalar_lea.vmem %s8001_s7, 256  ;;  %p11738_p7 = scmp.ne.s32.totalorder %s11516_s6, 0 }
  0x60   : > { %268 = vst [vmem:[#allocation2 + $0x109] sm:$0x1] %v11408_v0  ;;  %269 = vst [vmem:[#allocation2 + $0x119] sm:$0x1] %v11408_v0  ;;  %8345 = vmatprep.subr.bf16.mxu0 %v11408_v0  ;;  %8405 = vmatprep.subr.bf16.mxu1 %v11408_v0  ;;  %p8749_p11 = scmp.ne.s32.totalorder %s8001_s7, %s8748_s21  ;;  %s8828_s27 = smov [#allocation8]  }
  0x61   : > { %270 = vst [vmem:[#allocation2 + $0x129] sm:$0x1] %v11408_v0  ;;  %232 = vst [vmem:[#allocation2] sm:$0x1] %v11408_v0  ;;  %s8752_s16 = sshll.u32 %s8828_s27, 4  ;;  %s8753_s16 = int_to_ptr.vmem [resolvable:$false] %s8752_s16 }
  0x62   : > { %241 = vst [vmem:[#allocation2 + $0x90] sm:$0x1] %v11408_v0  ;;  %242 = vst [vmem:[#allocation2 + $0xa0] sm:$0x1] %v11408_v0  ;;  %p8750_p12 = pnand %p8749_p11, %p11738_p7  ;;  %s8754_s28 = scalar_lea.vmem %s8753_s16, 512 }
  0x63   : > { %251 = vst [vmem:[#allocation2 + $0x130] sm:$0x1] %v11408_v0  ;;  %252 = vst [vmem:[#allocation2 + $0x9] sm:$0x1] %v11408_v0  ;;  %8346 = vmatpush3.bf16.msra.mxu0 %v8651_v17  ;;  %8406 = vmatpush3.bf16.msra.mxu1 %v8652_v21  ;;  %p8755_p2 = scmp.lt.s32.totalorder %s8001_s7, %s8753_s16  ;;  %p8756_p13 = scmp.lt.s32.totalorder %s8754_s28, %s8748_s21 }
  0x64   : > { %261 = vst [vmem:[#allocation2 + $0x99] sm:$0x1] %v11408_v0  ;;  %262 = vst [vmem:[#allocation2 + $0xa9] sm:$0x1] %v11408_v0  ;;  %8347 = vmatprep.subr.bf16.mxu0 %v11408_v0  ;;  %8407 = vmatprep.subr.bf16.mxu1 %v11408_v0  ;;  %p8751_p10 = pneg %p8750_p12 }
  0x65   : > { %271 = vst [vmem:[#allocation2 + $0x139] sm:$0x1] %v11408_v0  ;;  %11522 = vst [vmem:[#allocation12_spill] sm:$0xff] %v9037_v11  ;;  %p8757_p0 = por %p8756_p13, %p8755_p2 }
  0x66   : > { %289 = vst [vmem:[#allocation2 + $0x11] sm:$0xff] %v272_v18  ;;  %290 = vst [vmem:[#allocation2 + $0x21] sm:$0xff] %v273_v25 }
  0x67   : > { %291 = vst [vmem:[#allocation2 + $0x31] sm:$0xff] %v274_v26  ;;  %292 = vst [vmem:[#allocation2 + $0x41] sm:$0xff] %v275_v27  ;;  %8348 = vmatpush3.bf16.msra.mxu0 %v8653_v37  ;;  %8408 = vmatpush3.bf16.msra.mxu1 %v8654_v43  ;;  %v284_v27 = vld [vmem:[%s8969_s29 + $0x60] sm:$0xff]  ;;  %p8758_p5 = pnand %p8757_p0, %p8751_p10 }
  0x68   : > { %v305_v19 = vld [vmem:[#allocation2] sm:$0xff]  ;;  %293 = vst [vmem:[#allocation2 + $0x51] sm:$0xff] %v276_v28  ;;  %294 = vst [vmem:[#allocation2 + $0x61] sm:$0xff] %v277_v29  ;;  %8349 = vmatprep.subr.bf16.mxu0 %v11408_v0  ;;  %8409 = vmatprep.subr.bf16.mxu1 %v11408_v0 }
  0x69   : > { %v381_v22 = vcombine.high %v305_v19, %v305_v19  ;;  %v388_v23 = vrot.slane %v305_v19, %v9042_v14  ;;  %295 = vst [vmem:[#allocation2 + $0x71] sm:$0xff] %v278_v30  ;;  %v325_v36 = vld [vmem:[#allocation2 + $0xa0] sm:$0xff]  ;;  %296 = vst [vmem:[#allocation2 + $0x81] sm:$0xff] %v279_v34 }
  0x6a   : > { %v8120_v20 = vld.sshfl [vmem:[#allocation2 + $0x8] sm:$0x11 pattern:$0x75316420]  ;;  %297 = vst [vmem:[#allocation2 + $0xb1] sm:$0xff] %v280_v35  ;;  %v948_v41 = vcombine.high %v325_v36, %v325_v36  ;;  %v9069_v42 = vrot.slane %v325_v36, %v9042_v14  ;;  %298 = vst [vmem:[#allocation2 + $0xc1] sm:$0xff] %v281_v48 }
  0x6b   : > { %v2558_v24 = vcombine.high %v8120_v20, %v8120_v20  ;;  %v395_v31 = vrot.slane %v381_v22, %v9042_v14  ;;  %v396_v32 = vcombine.high %v388_v23, %v388_v23  ;;  %v9057_v33 = vrot.slane %v388_v23, %v9042_v14  ;;  %v8129_v40 = vld.sshfl [vmem:[#allocation2 + $0xa8] sm:$0x11 pattern:$0x75316420]  ;;  %299 = vst [vmem:[#allocation2 + $0xd1] sm:$0xff] %v282_v49 }
  0x6c   : > { %v9063_v38 = vrot.slane %v8120_v20, %v9042_v14  ;;  %v9080_v50 = vrot.slane %v948_v41, %v9042_v14  ;;  %v9086_v52 = vrot.slane %v9069_v42, %v9042_v14  ;;  %v9089_v53 = vrot.slane %v8129_v40, %v9042_v14  ;;  %300 = vst [vmem:[#allocation2 + $0xe1] sm:$0xff] %v283_v62 }
  0x6d   : > { %v9066_v39 = vrot.slane %v2558_v24, %v9042_v14  ;;  %v397_v44 = vcombine.high %v395_v31, %v395_v31  ;;  %v9072_v45 = vrot.slane %v395_v31, %v9042_v14  ;;  %v418_v46 = vrot.slane %v396_v32, %v9042_v14  ;;  %v307_v57 = vld [vmem:[#allocation2 + $0x10] sm:$0xff]  ;;  %8350 = vmatpush3.bf16.msra.mxu0 %v8655_v4  ;;  %v8121_v4 = vld.sshfl [vmem:[#allocation2 + $0x18] sm:$0x11 pattern:$0x75316420] }
  0x6e   : > { %v426_v47 = vcombine.high %v9057_v33, %v9057_v33  ;;  %v444_v1 = vcombine.high %v307_v57, %v307_v57  ;;  %v451_v2 = vrot.slane %v307_v57, %v9042_v14  ;;  %8410 = vmatpush3.bf16.msra.mxu1 %v8656_v9  ;;  %301 = vst [vmem:[#allocation2 + $0xf1] sm:$0xff] %v284_v27 }
  0x6f   : > { %v425_v54 = vrot.slane %v397_v44, %v9042_v14  ;;  %v427_v55 = vcombine.high %v9072_v45, %v9072_v45  ;;  %v428_v56 = vcombine.high %v418_v46, %v418_v46  ;;  %v1515_v59 = vcombine.low %v9057_v33, %v418_v46  ;;  %8455 = vmatprep.subr.bf16.mxu0 %v11408_v0 }
  0x70   : > { %v2702_v58 = vcombine.low %v418_v46, %v426_v47  ;;  %v8138_v60 = vcombine.high %v9057_v33, %v418_v46  ;;  %v458_v10 = vrot.slane %v444_v1, %v9042_v14  ;;  %v459_v12 = vcombine.high %v451_v2, %v451_v2  ;;  %8515 = vmatprep.subr.bf16.mxu1 %v11408_v0 }
  0x71   : > { %v429_v63 = vcombine.high %v425_v54, %v425_v54  ;;  %v2703_v3 = vcombine.low %v428_v56, %v9072_v45  ;;  %v2704_v5 = vcombine.low %v425_v54, %v427_v55  ;;  %v1517_v7 = vcombine.low %v9072_v45, %v425_v54 }
  0x72   : > { %v2712_v6 = vrot.slane %v2702_v58, %v9042_v14  ;;  %v8139_v8 = vcombine.high %v9072_v45, %v425_v54  ;;  %v467_v13 = vrot.slane %v451_v2, %v9042_v14  ;;  %v1525_v18 = vrot.slane %v1515_v59, %v9042_v14  ;;  %v309_v54 = vld [vmem:[#allocation2 + $0x20] sm:$0xff] }
  0x73   : > { %v2705_v15 = vcombine.low %v429_v63, %v9063_v38  ;;  %v2719_v16 = vrot.slane %v2703_v3, %v9042_v14  ;;  %v2726_v17 = vrot.slane %v2704_v5, %v9042_v14  ;;  %v460_v19 = vcombine.high %v458_v10, %v458_v10 }
  0x74   : > { %v474_v20 = vrot.slane %v458_v10, %v9042_v14  ;;  %v481_v21 = vrot.slane %v459_v12, %v9042_v14  ;;  %v489_v22 = vcombine.high %v467_v13, %v467_v13  ;;  %v1532_v25 = vrot.slane %v8138_v60, %v9042_v14 }
  0x75   : > { %v2733_v23 = vrot.slane %v2705_v15, %v9042_v14  ;;  %v2734_v24 = vcombine.low %v2712_v6, %v2719_v16  ;;  %v1539_v26 = vrot.slane %v1517_v7, %v9042_v14  ;;  %v9121_v28 = vrot.slane %v460_v19, %v9042_v14 }
  0x76   : > { %v2751_v29 = vcombine.low %v9066_v39, %v481_v21  ;;  %v8156_v30 = vcombine.high %v467_v13, %v481_v21  ;;  %v4212_v31 = vcombine.low %v467_v13, %v481_v21  ;;  %v490_v34 = vcombine.high %v474_v20, %v474_v20 }
  0x77   : > { %v2735_v32 = vcombine.low %v2726_v17, %v2733_v23  ;;  %v2742_v33 = vrot.slane %v2734_v24, %v9042_v14  ;;  %v491_v35 = vcombine.high %v481_v21, %v481_v21  ;;  %v2753_v36 = vcombine.low %v474_v20, %v9121_v28 }
  0x78   : > { %v8157_v37 = vcombine.high %v474_v20, %v9121_v28  ;;  %v2761_v40 = vrot.slane %v2751_v29, %v9042_v14  ;;  %v2768_v41 = vrot.slane %v8156_v30, %v9042_v14  ;;  %v4219_v43 = vrot.slane %v4212_v31, %v9042_v14  ;;  %v8668_v30 = vld [vmem:[#allocation6 + $0xb8] sm:$0xff]  }
  0x79   : > { %v2749_v39 = vrot.slane %v2735_v32, %v9042_v14  ;;  %v1546_v44 = vrot.slane %v8139_v8, %v9042_v14  ;;  %v1547_v45 = vcombine.low %v1525_v18, %v1532_v25  ;;  %v2775_v46 = vrot.slane %v2753_v36, %v9042_v14  ;;  %v311_v8 = vld [vmem:[#allocation2 + $0x30] sm:$0xff]  ;;  %v8126_v18 = vld.sshfl [vmem:[#allocation2 + $0x68] sm:$0x11 pattern:$0x75316420] }
  0x7a   : > { %v2782_v47 = vrot.slane %v8157_v37, %v9042_v14  ;;  %v2783_v48 = vcombine.low %v2761_v40, %v2768_v41  ;;  %v1564_v49 = vcombine.low %v9063_v38, %v467_v13  ;;  %v4220_v56 = vcombine.low %v4219_v43, %v2768_v41  ;;  %v8122_v13 = vld.sshfl [vmem:[#allocation2 + $0x28] sm:$0x11 pattern:$0x75316420] }
  0x7b   : > { %v2750_v55 = vcombine.low %v2742_v33, %v2749_v39  ;;  %v1548_v57 = vcombine.low %v1539_v26, %v1546_v44  ;;  %v1555_v58 = vrot.slane %v1547_v45, %v9042_v14  ;;  %v1565_v62 = vcombine.low %v481_v21, %v489_v22 }
  0x7c   : > { %v2784_v59 = vcombine.low %v2775_v46, %v2782_v47  ;;  %v2791_v60 = vrot.slane %v2783_v48, %v9042_v14  ;;  %v1566_v63 = vcombine.low %v491_v35, %v474_v20  ;;  %v9140_v1 = vrot.slane %v4220_v56, %v9042_v14  ;;  %v285_v35 = vld [vmem:[%s8969_s29 + $0x68] sm:$0xff] }
  0x7d   : > { %v1562_v2 = vrot.slane %v1548_v57, %v9042_v14  ;;  %v1567_v3 = vcombine.low %v9121_v28, %v490_v34  ;;  %v1574_v38 = vrot.slane %v1564_v49, %v9042_v14  ;;  %v9149_v6 = vrot.slane %v1565_v62, %v9042_v14  ;;  %302 = vst [vmem:[#allocation2 + $0x101] sm:$0xff] %v285_v35 }
  0x7e   : > { %v9146_v5 = vrot.slane %v2784_v59, %v9042_v14  ;;  %v9152_v7 = vrot.slane %v1566_v63, %v9042_v14  ;;  %v9155_v9 = vrot.slane %v8121_v4, %v9042_v14  ;;  %v507_v15 = vcombine.high %v309_v54, %v309_v54 }
  0x7f   : > { %v1563_v10 = vcombine.low %v1555_v58, %v1562_v2  ;;  %v9158_v12 = vrot.slane %v1567_v3, %v9042_v14  ;;  %v514_v16 = vrot.slane %v309_v54, %v9042_v14  ;;  %v1596_v19 = vcombine.low %v1574_v38, %v9149_v6  ;;  %v8671_v58 = vld [vmem:[#allocation6 + $0xf8] sm:$0xff]  }
  0x80   : > { %v2799_v17 = vcombine.low %v2791_v60, %v9146_v5  ;;  %v521_v22 = vrot.slane %v507_v15, %v9042_v14  ;;  %v9175_v27 = vrot.slane %v8122_v13, %v9042_v14  ;;  %v570_v29 = vcombine.high %v311_v8, %v311_v8 }
  0x81   : > { %v1597_v21 = vcombine.low %v9152_v7, %v9158_v12  ;;  %v522_v23 = vcombine.high %v514_v16, %v514_v16  ;;  %v9171_v24 = vrot.slane %v514_v16, %v9042_v14  ;;  %v1604_v26 = vrot.slane %v1596_v19, %v9042_v14 }
  0x82   : > { %v3718_v25 = vpack.c.bf16 %v2799_v17, %v2750_v55  ;;  %v523_v32 = vcombine.high %v521_v22, %v521_v22  ;;  %v9179_v33 = vrot.slane %v521_v22, %v9042_v14  ;;  %v577_v37 = vrot.slane %v311_v8, %v9042_v14 }
  0x83   : > { %v1611_v31 = vrot.slane %v1597_v21, %v9042_v14  ;;  %v9182_v34 = vrot.slane %v522_v23, %v9042_v14  ;;  %v552_v36 = vcombine.high %v9171_v24, %v9171_v24  ;;  %v584_v40 = vrot.slane %v570_v29, %v9042_v14 }
  0x84   : > { %8352 = vmatmul.mubr.bf16.vlgmr.msra.gmra.mxu0 %v3718_v25  ;;  %v2566_v41 = vcombine.high %v8121_v4, %v8121_v4  ;;  %v9192_v43 = vrot.slane %v523_v32, %v9042_v14  ;;  %v553_v44 = vcombine.high %v9179_v33, %v9179_v33  ;;  %v585_v46 = vcombine.high %v577_v37, %v577_v37 }
  0x85   : > { %v1612_v39 = vcombine.low %v1604_v26, %v1611_v31  ;;  %8355 = vmatprep.mubr.msk.bf16.mxu0 %vm8825_vm0, %v11408_v0  ;;  %v554_v45 = vcombine.high %v9182_v34, %v9182_v34  ;;  %v586_v47 = vcombine.high %v584_v40, %v584_v40  ;;  %v9199_v48 = vrot.slane %v577_v37, %v9042_v14 }
  0x86   : > { %v9202_v49 = vrot.slane %v584_v40, %v9042_v14  ;;  %8456 = vmatpush3.bf16.msra.mxu0 %v8668_v30  ;;  %v555_v55 = vcombine.high %v9192_v43, %v9192_v43  ;;  %v9207_v56 = vrot.slane %v2566_v41, %v9042_v14  ;;  %v2574_v57 = vcombine.high %v8122_v13, %v8122_v13 }
  0x87   : > { %v2531_v54 = vpack.c.bf16 %v1612_v39, %v1563_v10  ;;  %8457 = vmatprep.subr.bf16.mxu0 %v11408_v0  ;;  %v9211_v59 = vrot.slane %v585_v46, %v9042_v14  ;;  %v9214_v60 = vrot.slane %v586_v47, %v9042_v14  ;;  %v2801_v62 = vcombine.low %v9182_v34, %v552_v36 }
  0x88   : > { %v2802_v63 = vcombine.low %v554_v45, %v9179_v33  ;;  %v9219_v2 = vrot.slane %v2574_v57, %v9042_v14  ;;  %v2800_v3 = vcombine.low %v9155_v9, %v9207_v56  ;;  %v2803_v38 = vcombine.low %v9192_v43, %v553_v44 }
  0x89   : > { %8412 = vmatmul.mubr.bf16.vlgmr.msra.gmra.mxu1 %v2531_v54  ;;  %v2849_v4 = vcombine.low %v555_v55, %v9175_v27  ;;  %v2817_v8 = vrot.slane %v2801_v62, %v9042_v14  ;;  %v8158_v13 = vcombine.high %v9199_v48, %v9211_v59  ;;  %v2852_v15 = vcombine.low %v9202_v49, %v9214_v60 }
  0x8a   : > { %8415 = vmatprep.mubr.msk.bf16.mxu1 %vm8825_vm0, %v11408_v0  ;;  %v2824_v10 = vrot.slane %v2802_v63, %v9042_v14  ;;  %v2810_v16 = vrot.slane %v2800_v3, %v9042_v14  ;;  %v2831_v17 = vrot.slane %v2803_v38, %v9042_v14  ;;  %v2850_v19 = vcombine.low %v9219_v2, %v9211_v59 }
  0x8b   : > { %v9238_v21 = vrot.slane %v2849_v4, %v9042_v14  ;;  %8516 = vmatpush3.bf16.msra.mxu1 %v8671_v58  ;;  %v2873_v22 = vrot.slane %v8158_v13, %v9042_v14  ;;  %v2880_v23 = vrot.slane %v2852_v15, %v9042_v14  ;;  %v4229_v25 = vcombine.low %v9155_v9, %v9171_v24 }
  0x8c   : > { %v492_v26 = vcombine.high %v9121_v28, %v9121_v28  ;;  %8517 = vmatprep.subr.bf16.mxu1 %v11408_v0  ;;  %v2832_v29 = vcombine.low %v2810_v16, %v2817_v8  ;;  %v2833_v30 = vcombine.low %v2824_v10, %v2831_v17  ;;  %v2866_v31 = vrot.slane %v2850_v19, %v9042_v14 }
  0x8d   : > { %v615_v32 = vcombine.high %v9199_v48, %v9199_v48  ;;  %v2882_v35 = vcombine.low %v2873_v22, %v2880_v23  ;;  %v4236_v36 = vrot.slane %v4229_v25, %v9042_v14  ;;  %v617_v37 = vcombine.high %v9211_v59, %v9211_v59 }
  0x8e   : > { %v1613_v40 = vcombine.low %v492_v26, %v9155_v9  ;;  %v2840_v41 = vrot.slane %v2832_v29, %v9042_v14  ;;  %v9256_v28 = vrot.slane %v2833_v30, %v9042_v14  ;;  %v2881_v39 = vcombine.low %v9238_v21, %v2866_v31  ;;  %v8123_v31 = vld.sshfl [vmem:[#allocation2 + $0x38] sm:$0x11 pattern:$0x75316420] }
  0x8f   : > { %v1614_v44 = vcombine.low %v9171_v24, %v9182_v34  ;;  %v9262_v45 = vrot.slane %v2882_v35, %v9042_v14  ;;  %v4237_v46 = vcombine.low %v4236_v36, %v2817_v8  ;;  %v8140_v47 = vcombine.high %v9171_v24, %v9182_v34 }
  0x90   : > { %v1616_v9 = vcombine.low %v9179_v33, %v9192_v43  ;;  %v2848_v54 = vcombine.low %v2840_v41, %v9256_v28  ;;  %v2889_v55 = vrot.slane %v2881_v39, %v9042_v14  ;;  %v9271_v57 = vrot.slane %v1613_v40, %v9042_v14 }
  0x91   : > { %11523 = vst [vmem:[#allocation13_spill] sm:$0xff] %v9262_v45  ;;  %v1630_v58 = vrot.slane %v1614_v44, %v9042_v14  ;;  %v9275_v62 = vrot.slane %v4237_v46, %v9042_v14  ;;  %v9278_v63 = vrot.slane %v8140_v47, %v9042_v14  ;;  %v8141_v3 = vcombine.high %v9179_v33, %v9192_v43  ;;  %v313_v33 = vld [vmem:[#allocation2 + $0x40] sm:$0xff]  ;;  %v286_v46 = vld [vmem:[%s8969_s29 + $0x70] sm:$0xff] }
  0x92   : > { %v9281_v24 = vrot.slane %v1616_v9, %v9042_v14  ;;  %v2897_v38 = vcombine.low %v2889_v55, %v9262_v45  ;;  %v1663_v8 = vcombine.low %v9175_v27, %v9199_v48  ;;  %v1664_v10 = vcombine.low %v9211_v59, %v615_v32  ;;  %v9311_v32 = vld [vmem:[#allocation2 + $0x50] sm:$0xff]  ;;  %303 = vst [vmem:[#allocation2 + $0x111] sm:$0xff] %v286_v46 }
  0x93   : > { %v1645_v4 = vcombine.low %v9271_v57, %v1630_v58  ;;  %v1665_v16 = vcombine.low %v617_v37, %v9202_v49  ;;  %v9296_v17 = vrot.slane %v8141_v3, %v9042_v14  ;;  %v4866_v30 = vcombine.low %v9207_v56, %v9182_v34  ;;  %v8124_v34 = vld.sshfl [vmem:[#allocation2 + $0x48] sm:$0x11 pattern:$0x75316420] }
  0x94   : > { %v1646_v15 = vcombine.low %v9278_v63, %v9281_v24  ;;  %v3719_v43 = vpack.c.bf16 %v2897_v38, %v2848_v54  ;;  %v1679_v22 = vrot.slane %v1663_v8, %v9042_v14  ;;  %v9301_v23 = vrot.slane %v1664_v10, %v9042_v14  ;;  %v8673_v8 = vld [vmem:[#allocation6 + $0xb0] sm:$0xff]  }
  0x95   : > { %v1653_v19 = vrot.slane %v1645_v4, %v9042_v14  ;;  %v9305_v26 = vrot.slane %v1665_v16, %v9042_v14  ;;  %v9317_v37 = vrot.slane %v8123_v31, %v9042_v14  ;;  %v633_v40 = vcombine.high %v313_v33, %v313_v33  ;;  %v8674_v10 = vld [vmem:[#allocation6 + $0xf0] sm:$0xff]   ;;  %8458 = vmatpush3.bf16.msra.mxu0 %v8673_v8 }
  0x96   : > { %11524 = vst [vmem:[#allocation14_spill] sm:$0xff] %v9301_v23  ;;  %v1660_v25 = vrot.slane %v1646_v15, %v9042_v14  ;;  %8356 = vmatmul.mubr.bf16.gmra.mxu0 %v3719_v43  ;;  %v1694_v35 = vcombine.low %v9296_v17, %v1679_v22  ;;  %v9322_v44 = vrot.slane %v4866_v30, %v9042_v14  ;;  %v287_v15 = vld [vmem:[%s8969_s29 + $0x78] sm:$0xff] }
  0x97   : > { %v1695_v39 = vcombine.low %v9301_v23, %v9305_v26  ;;  %8359 = vmatprep.mubr.msk.bf16.mxu0 %vm8825_vm0, %v11408_v0  ;;  %v640_v56 = vrot.slane %v313_v33, %v9042_v14  ;;  %v647_v9 = vrot.slane %v633_v40, %v9042_v14  ;;  %v9331_v54 = vrot.slane %v8124_v34, %v9042_v14 }
  0x98   : > { %v1661_v41 = vcombine.low %v1653_v19, %v1660_v25  ;;  %v1702_v47 = vrot.slane %v1694_v35, %v9042_v14  ;;  %v703_v55 = vrot.slane %v9311_v32, %v9042_v14  ;;  %304 = vst [vmem:[#allocation2 + $0x121] sm:$0xff] %v287_v15  ;;  %v2582_v35 = vcombine.high %v8123_v31, %v8123_v31 }
  0x99   : > { %11525 = vst [vmem:[#allocation15_spill] sm:$0xff] %v9331_v54  ;;  %v1709_v58 = vrot.slane %v1695_v39, %v9042_v14  ;;  %v648_v38 = vcombine.high %v640_v56, %v640_v56  ;;  %v9339_v4 = vrot.slane %v640_v56, %v9042_v14  ;;  %v649_v16 = vcombine.high %v647_v9, %v647_v9 }
  0x9a   : > { %v9343_v33 = vrot.slane %v647_v9, %v9042_v14  ;;  %v711_v43 = vcombine.high %v703_v55, %v703_v55  ;;  %v9346_v19 = vrot.slane %v703_v55, %v9042_v14  ;;  %v2590_v46 = vcombine.high %v8124_v34, %v8124_v34  ;;  %8518 = vmatpush3.bf16.msra.mxu1 %v8674_v10 }
  0x9b   : > { %v1710_v22 = vcombine.low %v1702_v47, %v1709_v58  ;;  %v9349_v25 = vrot.slane %v648_v38, %v9042_v14  ;;  %v678_v30 = vcombine.high %v9339_v4, %v9339_v4  ;;  %v677_v40 = vrot.slane %v649_v16, %v9042_v14  ;;  %8459 = vmatprep.subr.bf16.mxu0 %v11408_v0 }
  0x9c   : > { %11526 = vst [vmem:[#allocation16_spill] sm:$0xff] %v9346_v19  ;;  %v679_v39 = vcombine.high %v9343_v33, %v9343_v33  ;;  %v9357_v56 = vrot.slane %v711_v43, %v9042_v14  ;;  %v9362_v55 = vrot.slane %v2582_v35, %v9042_v14  ;;  %v8159_v31 = vcombine.high %v9202_v49, %v9214_v60 }
  0x9d   : > { %v2532_v9 = vpack.c.bf16 %v1710_v22, %v1661_v41  ;;  %v680_v47 = vcombine.high %v9349_v25, %v9349_v25  ;;  %v681_v58 = vcombine.high %v677_v40, %v677_v40  ;;  %v9368_v38 = vrot.slane %v2590_v46, %v9042_v14  ;;  %8519 = vmatprep.subr.bf16.mxu1 %v11408_v0 }
  0x9e   : > { %v2900_v8 = vcombine.low %v9349_v25, %v678_v30  ;;  %v2947_v34 = vcombine.low %v677_v40, %v679_v39  ;;  %v2899_v41 = vcombine.low %v9317_v37, %v9362_v55  ;;  %v9376_v15 = vrot.slane %v8159_v31, %v9042_v14 }
  0x9f   : > { %11527 = vst [vmem:[#allocation17_spill] sm:$0xff] %v9368_v38  ;;  %8416 = vmatmul.mubr.bf16.gmra.mxu1 %v2532_v9  ;;  %v2901_v10 = vcombine.low %v680_v47, %v9343_v33  ;;  %v8160_v16 = vcombine.high %v9346_v19, %v9357_v56  ;;  %v2948_v22 = vcombine.low %v681_v58, %v9331_v54 }
  0xa0   : > { %8419 = vmatprep.mubr.msk.bf16.mxu1 %vm8825_vm0, %v11408_v0  ;;  %v2922_v43 = vrot.slane %v2900_v8, %v9042_v14  ;;  %v2949_v30 = vcombine.low %v9368_v38, %v9357_v56  ;;  %v2957_v35 = vrot.slane %v2947_v34, %v9042_v14  ;;  %v2915_v39 = vrot.slane %v2899_v41, %v9042_v14 }
  0xa1   : > { %v2929_v46 = vrot.slane %v2901_v10, %v9042_v14  ;;  %v9390_v9 = vrot.slane %v8160_v16, %v9042_v14  ;;  %v616_v47 = vcombine.high %v9202_v49, %v9202_v49  ;;  %v2964_v31 = vrot.slane %v2948_v22, %v9042_v14 }
  0xa2   : > { %v2971_v8 = vrot.slane %v2949_v30, %v9042_v14  ;;  %v618_v58 = vcombine.high %v9214_v60, %v9214_v60  ;;  %v741_v34 = vcombine.high %v9346_v19, %v9346_v19  ;;  %v2930_v41 = vcombine.low %v9376_v15, %v2915_v39 }
  0xa3   : > { %11528 = vst [vmem:[#allocation18_spill] sm:$0xff] %v9390_v9  ;;  %v2931_v36 = vcombine.low %v2922_v43, %v2929_v46  ;;  %v1711_v10 = vcombine.low %v9214_v60, %v616_v47  ;;  %v1713_v16 = vcombine.low %v9339_v4, %v9349_v25  ;;  %v2979_v3 = vcombine.low %v2957_v35, %v2964_v31 }
  0xa4   : > { %v2980_v49 = vcombine.low %v2971_v8, %v9390_v9  ;;  %v1712_v22 = vcombine.low %v618_v58, %v9317_v37  ;;  %v8142_v30 = vcombine.high %v9339_v4, %v9349_v25  ;;  %v2938_v29 = vrot.slane %v2930_v41, %v9042_v14 }
  0xa5   : > { %v9410_v20 = vrot.slane %v2931_v36, %v9042_v14  ;;  %v9413_v43 = vrot.slane %v1711_v10, %v9042_v14  ;;  %v1735_v60 = vrot.slane %v1713_v16, %v9042_v14  ;;  %v9417_v39 = vrot.slane %v2979_v3, %v9042_v14 }
  0xa6   : > { %v2994_v35 = vrot.slane %v2980_v49, %v9042_v14  ;;  %v9421_v46 = vrot.slane %v1712_v22, %v9042_v14  ;;  %v9424_v47 = vrot.slane %v8142_v30, %v9042_v14  ;;  %v1760_v36 = vcombine.low %v9343_v33, %v677_v40  ;;  %v317_v49 = vld [vmem:[#allocation2 + $0x60] sm:$0xff] }
  0xa7   : > { %11529 = vst [vmem:[#allocation19_spill] sm:$0xff] %v9410_v20  ;;  %11530 = vst [vmem:[#allocation20_spill] sm:$0xff] %v9417_v39  ;;  %v2946_v31 = vcombine.low %v2938_v29, %v9410_v20  ;;  %v8143_v8 = vcombine.high %v9343_v33, %v677_v40  ;;  %v1762_v58 = vcombine.low %v9331_v54, %v9346_v19 }
  0xa8   : > { %11531 = vst [vmem:[#allocation21_spill] sm:$0xff] %v9421_v46  ;;  %11532 = vst [vmem:[#allocation22_spill] sm:$0xff] %v9424_v47  ;;  %v2995_v3 = vcombine.low %v9417_v39, %v2994_v35  ;;  %v1743_v41 = vcombine.low %v9413_v43, %v9421_v46  ;;  %v1744_v10 = vcombine.low %v1735_v60, %v9424_v47 }
  0xa9   : > { %v1763_v16 = vcombine.low %v9357_v56, %v741_v34  ;;  %v9437_v22 = vrot.slane %v1760_v36, %v9042_v14  ;;  %v9440_v29 = vrot.slane %v8143_v8, %v9042_v14  ;;  %v1784_v33 = vrot.slane %v1762_v58, %v9042_v14  ;;  %v8125_v34 = vld.sshfl [vmem:[#allocation2 + $0x58] sm:$0x11 pattern:$0x75316420]  ;;  %v9452_v8 = vld [vmem:[#allocation2 + $0x70] sm:$0xff] }
  0xaa   : > { %v696_v40 = vcombine.high %v9311_v32, %v9311_v32  ;;  %v3720_v30 = vpack.c.bf16 %v2995_v3, %v2946_v31  ;;  %v1751_v35 = vrot.slane %v1743_v41, %v9042_v14  ;;  %v1758_v13 = vrot.slane %v1744_v10, %v9042_v14 }
  0xab   : > { %11533 = vst [vmem:[#allocation23_spill] sm:$0xff] %v9437_v22  ;;  %11534 = vst [vmem:[#allocation24_spill] sm:$0xff] %v9440_v29  ;;  %v9448_v60 = vrot.slane %v1763_v16, %v9042_v14  ;;  %v1792_v36 = vcombine.low %v9437_v22, %v9440_v29  ;;  %v9456_v61 = vrot.slane %v8125_v34, %v9042_v14 }
  0xac   : > { %v710_v58 = vrot.slane %v696_v40, %v9042_v14  ;;  %v759_v32 = vcombine.high %v317_v49, %v317_v49  ;;  %8360 = vmatmul.mubr.bf16.gmra.mxu0 %v3720_v30  ;;  %v1759_v31 = vcombine.low %v1751_v35, %v1758_v13  ;;  %v766_v41 = vrot.slane %v317_v49, %v9042_v14  ;;  %v8677_v30 = vld [vmem:[#allocation6 + $0xa8] sm:$0xff]  }
  0xad   : > { %11535 = vst [vmem:[#allocation25_spill] sm:$0xff] %v9448_v60  ;;  %11536 = vst [vmem:[#allocation26_spill] sm:$0xff] %v9456_v61  ;;  %v1793_v3 = vcombine.low %v1784_v33, %v9448_v60  ;;  %v9461_v10 = vrot.slane %v8126_v18, %v9042_v14  ;;  %v1800_v16 = vrot.slane %v1792_v36, %v9042_v14  ;;  %8363 = vmatprep.mubr.msk.bf16.mxu0 %vm8825_vm0, %v11408_v0  ;;  %v8678_v13 = vld [vmem:[#allocation6 + $0xe8] sm:$0xff]  }
  0xae   : > { %v712_v51 = vcombine.high %v710_v58, %v710_v58  ;;  %v9467_v40 = vrot.slane %v710_v58, %v9042_v14  ;;  %v773_v11 = vrot.slane %v759_v32, %v9042_v14  ;;  %v774_v35 = vcombine.high %v766_v41, %v766_v41  ;;  %8460 = vmatpush3.bf16.msra.mxu0 %v8677_v30  ;;  %v8679_v32 = vld [vmem:[#allocation6 + $0xa0] sm:$0xff]  }
  0xaf   : > { %11537 = vst [vmem:[#allocation27_spill] sm:$0xff] %v9461_v10  ;;  %v1807_v33 = vrot.slane %v1793_v3, %v9042_v14  ;;  %v9472_v49 = vrot.slane %v766_v41, %v9042_v14  ;;  %v829_v36 = vrot.slane %v9452_v8, %v9042_v14  ;;  %v2598_v58 = vcombine.high %v8125_v34, %v8125_v34 }
  0xb0   : > { %v740_v39 = vrot.slane %v712_v51, %v9042_v14  ;;  %v775_v0 = vcombine.high %v773_v11, %v773_v11  ;;  %v9478_v20 = vrot.slane %v773_v11, %v9042_v14  ;;  %v9481_v29 = vrot.slane %v774_v35, %v9042_v14  ;;  %8520 = vmatpush3.bf16.msra.mxu1 %v8678_v13 }
  0xb1   : > { %11538 = vst [vmem:[#allocation28_spill] sm:$0xff] %v9472_v49  ;;  %v1808_v45 = vcombine.low %v1800_v16, %v1807_v33  ;;  %v804_v3 = vcombine.high %v9472_v49, %v9472_v49  ;;  %v837_v41 = vcombine.high %v829_v36, %v829_v36  ;;  %v9491_v11 = vrot.slane %v2598_v58, %v9042_v14 }
  0xb2   : > { %11539 = vst [vmem:[#allocation29_spill] sm:$0xff] %v9481_v29  ;;  %v9486_v60 = vrot.slane %v775_v0, %v9042_v14  ;;  %v805_v51 = vcombine.high %v9478_v20, %v9478_v20  ;;  %v2606_v34 = vcombine.high %v8126_v18, %v8126_v18  ;;  %v11541_v30 = vmov 0.0   ;;  %v8680_v0 = vld [vmem:[#allocation6 + $0xe0] sm:$0xff]  }
  0xb3   : > { %11540 = vst [vmem:[#allocation30_spill] sm:$0xff] %v9491_v11  ;;  %8461 = vmatprep.subr.bf16.mxu0 %v11541_v30  ;;  %v2533_v16 = vpack.c.bf16 %v1808_v45, %v1759_v31  ;;  %v806_v33 = vcombine.high %v9481_v29, %v9481_v29  ;;  %v9497_v35 = vrot.slane %v837_v41, %v9042_v14 }
  0xb4   : > { %v2996_v13 = vcombine.low %v9467_v40, %v740_v39  ;;  %8521 = vmatprep.subr.bf16.mxu1 %v11541_v30  ;;  %v807_v9 = vcombine.high %v9486_v60, %v9486_v60  ;;  %v9504_v58 = vrot.slane %v2606_v34, %v9042_v14  ;;  %v8161_v18 = vcombine.high %v9467_v40, %v740_v39 }
  0xb5   : > { %v2998_v45 = vcombine.low %v9456_v61, %v9491_v11  ;;  %8462 = vmatpush3.bf16.msra.mxu0 %v8679_v32  ;;  %8420 = vmatmul.mubr.bf16.gmra.mxu1 %v2533_v16  ;;  %v2999_v31 = vcombine.low %v9481_v29, %v804_v3  ;;  %v3045_v54 = vcombine.low %v806_v33, %v9478_v20 }
  0xb6   : > { %11542 = vst [vmem:[#allocation31_spill] sm:$0xff] %v9504_v58  ;;  %v3006_v41 = vrot.slane %v2996_v13, %v9042_v14  ;;  %v3046_v38 = vcombine.low %v9486_v60, %v805_v51  ;;  %8423 = vmatprep.mubr.msk.bf16.mxu1 %vm8825_vm0, %v11541_v30  ;;  %v3013_v34 = vrot.slane %v8161_v18, %v9042_v14 }
  0xb7   : > { %v3020_v46 = vrot.slane %v2998_v45, %v9042_v14  ;;  %v3047_v47 = vcombine.low %v807_v9, %v9461_v10  ;;  %v3048_v32 = vcombine.low %v9504_v58, %v9497_v35  ;;  %v9521_v3 = vrot.slane %v2999_v31, %v9042_v14  ;;  %8522 = vmatpush3.bf16.msra.mxu1 %v8680_v0 }
  0xb8   : > { %v3055_v16 = vrot.slane %v3045_v54, %v9042_v14  ;;  %v3062_v33 = vrot.slane %v3046_v38, %v9042_v14  ;;  %v742_v51 = vcombine.high %v9467_v40, %v9467_v40  ;;  %v3028_v13 = vcombine.low %v3006_v41, %v3013_v34  ;;  %8463 = vmatprep.subr.bf16.mxu0 %v11541_v30 }
  0xb9   : > { %11543 = vst [vmem:[#allocation32_spill] sm:$0xff] %v9521_v3  ;;  %v9528_v18 = vrot.slane %v3047_v47, %v9042_v14  ;;  %v3076_v9 = vrot.slane %v3048_v32, %v9042_v14  ;;  %v743_v45 = vcombine.high %v9357_v56, %v9357_v56  ;;  %v3029_v31 = vcombine.low %v3020_v46, %v9521_v3 }
  0xba   : > { %v3077_v54 = vcombine.low %v3055_v16, %v3062_v33  ;;  %v744_v58 = vcombine.high %v740_v39, %v740_v39  ;;  %v9536_v38 = vrot.slane %v829_v36, %v9042_v14  ;;  %8523 = vmatprep.subr.bf16.mxu1 %v11541_v30  ;;  %v9540_v0 = vrot.slane %v3028_v13, %v9042_v14 }
  0xbb   : > { %11544 = vst [vmem:[#allocation33_spill] sm:$0xff] %v9528_v18  ;;  %v3078_v47 = vcombine.low %v9528_v18, %v3076_v9  ;;  %v1809_v41 = vcombine.low %v743_v45, %v9467_v40  ;;  %v1810_v34 = vcombine.low %v740_v39, %v742_v51  ;;  %v3043_v32 = vrot.slane %v3029_v31, %v9042_v14  ;;  %v8127_v18 = vld.sshfl [vmem:[#allocation2 + $0x78] sm:$0x11 pattern:$0x75316420] }
  0xbc   : > { %11545 = vst [vmem:[#allocation34_spill] sm:$0xff] %v9536_v38  ;;  %11546 = vst [vmem:[#allocation35_spill] sm:$0xff] %v9540_v0  ;;  %v9546_v11 = vrot.slane %v3077_v54, %v9042_v14  ;;  %v1811_v46 = vcombine.low %v744_v58, %v9456_v61  ;;  %v1812_v36 = vcombine.low %v9472_v49, %v9481_v29  ;;  %v8687_v61 = vld [vmem:[#allocation6 + $0x88] sm:$0xff]  }
  0xbd   : > { %v3092_v16 = vrot.slane %v3078_v47, %v9042_v14  ;;  %v9553_v33 = vrot.slane %v1809_v41, %v9042_v14  ;;  %v9556_v13 = vrot.slane %v1810_v34, %v9042_v14  ;;  %v8144_v39 = vcombine.high %v9472_v49, %v9481_v29 }
  0xbe   : > { %11547 = vst [vmem:[#allocation36_spill] sm:$0xff] %v9546_v11  ;;  %v3044_v40 = vcombine.low %v9540_v0, %v3043_v32  ;;  %v9562_v51 = vrot.slane %v1811_v46, %v9042_v14  ;;  %v1840_v58 = vrot.slane %v1812_v36, %v9042_v14  ;;  %v1859_v9 = vcombine.low %v9478_v20, %v9486_v60  ;;  %v321_v46 = vld [vmem:[#allocation2 + $0x80] sm:$0xff]  ;;  %v9581_v36 = vld.sshfl [vmem:[#allocation2 + $0x88] sm:$0x11 pattern:$0x75316420] }
  0xbf   : > { %11548 = vst [vmem:[#allocation37_spill] sm:$0xff] %v9553_v33  ;;  %11549 = vst [vmem:[#allocation38_spill] sm:$0xff] %v9556_v13  ;;  %v3093_v45 = vcombine.low %v9546_v11, %v3092_v16  ;;  %v1841_v31 = vcombine.low %v9553_v33, %v9556_v13  ;;  %v8145_v54 = vcombine.high %v9478_v20, %v9486_v60  ;;  %v8685_v13 = vld [vmem:[#allocation6 + $0x90] sm:$0xff]  }
  0xc0   : > { %11550 = vst [vmem:[#allocation39_spill] sm:$0xff] %v9562_v51  ;;  %v1861_v47 = vcombine.low %v9461_v10, %v9536_v38  ;;  %v1842_v41 = vcombine.low %v9562_v51, %v1840_v58  ;;  %v9576_v34 = vrot.slane %v8144_v39, %v9042_v14  ;;  %v9579_v32 = vrot.slane %v1859_v9, %v9042_v14 }
  0xc1   : > { %v822_v16 = vcombine.high %v9452_v8, %v9452_v8  ;;  %v3721_v11 = vpack.c.bf16 %v3093_v45, %v3044_v40  ;;  %v1849_v20 = vrot.slane %v1841_v31, %v9042_v14  ;;  %v9587_v60 = vrot.slane %v8145_v54, %v9042_v14  ;;  %v8683_v54 = vld [vmem:[#allocation6 + $0x98] sm:$0xff]  }
  0xc2   : > { %11551 = vst [vmem:[#allocation40_spill] sm:$0xff] %v9576_v34  ;;  %11552 = vst [vmem:[#allocation41_spill] sm:$0xff] %v9579_v32  ;;  %v1889_v58 = vrot.slane %v1861_v47, %v9042_v14  ;;  %v1856_v39 = vrot.slane %v1842_v41, %v9042_v14  ;;  %v1890_v9 = vcombine.low %v9576_v34, %v9579_v32  ;;  %v8684_v47 = vld [vmem:[#allocation6 + $0xd8] sm:$0xff]   ;;  %8464 = vmatpush3.bf16.msra.mxu0 %v8683_v54 }
  0xc3   : > { %11553 = vst [vmem:[#allocation42_spill] sm:$0xff] %v9587_v60  ;;  %v836_v0 = vrot.slane %v822_v16, %v9042_v14  ;;  %v9595_v10 = vrot.slane %v8127_v18, %v9042_v14  ;;  %8364 = vmatmul.mubr.bf16.gmra.mxu0 %v3721_v11  ;;  %v885_v40 = vcombine.high %v321_v46, %v321_v46 }
  0xc4   : > { %v1891_v8 = vcombine.low %v9587_v60, %v1889_v58  ;;  %v892_v45 = vrot.slane %v321_v46, %v9042_v14  ;;  %v9601_v31 = vrot.slane %v9581_v36, %v9042_v14  ;;  %v1857_v41 = vcombine.low %v1849_v20, %v1856_v39  ;;  %8367 = vmatprep.mubr.msk.bf16.mxu0 %vm8825_vm0, %v11541_v30 }
  0xc5   : > { %v1898_v32 = vrot.slane %v1890_v9, %v9042_v14  ;;  %v838_v16 = vcombine.high %v836_v0, %v836_v0  ;;  %v852_v11 = vrot.slane %v836_v0, %v9042_v14  ;;  %v899_v60 = vrot.slane %v885_v40, %v9042_v14  ;;  %8524 = vmatpush3.bf16.msra.mxu1 %v8684_v47  ;;  %v8686_v0 = vld [vmem:[#allocation6 + $0xd0] sm:$0xff]  }
  0xc6   : > { %11554 = vst [vmem:[#allocation43_spill] sm:$0xff] %v9601_v31  ;;  %v1905_v58 = vrot.slane %v1891_v8, %v9042_v14  ;;  %v900_v46 = vcombine.high %v892_v45, %v892_v45  ;;  %v9610_v34 = vrot.slane %v892_v45, %v9042_v14  ;;  %v2614_v39 = vcombine.high %v8127_v18, %v8127_v18 }
  0xc7   : > { %v866_v20 = vrot.slane %v838_v16, %v9042_v14  ;;  %v8162_v9 = vcombine.high %v9536_v38, %v9497_v35  ;;  %v867_v51 = vcombine.high %v9536_v38, %v9536_v38  ;;  %v901_v33 = vcombine.high %v899_v60, %v899_v60  ;;  %8465 = vmatprep.subr.bf16.mxu0 %v11541_v30 }
  0xc8   : > { %v1906_v8 = vcombine.low %v1898_v32, %v1905_v58  ;;  %v9618_v40 = vrot.slane %v899_v60, %v9042_v14  ;;  %v9621_v45 = vrot.slane %v900_v46, %v9042_v14  ;;  %v930_v18 = vcombine.high %v9610_v34, %v9610_v34  ;;  %8525 = vmatprep.subr.bf16.mxu1 %v11541_v30 }
  0xc9   : > { %v9627_v54 = vrot.slane %v2614_v39, %v9042_v14  ;;  %v3095_v16 = vcombine.low %v852_v11, %v866_v20  ;;  %v8163_v38 = vcombine.high %v852_v11, %v866_v20  ;;  %v9631_v47 = vrot.slane %v901_v33, %v9042_v14  ;;  %8466 = vmatpush3.bf16.msra.mxu0 %v8685_v13 }
  0xca   : > { %v2534_v32 = vpack.c.bf16 %v1906_v8, %v1857_v41  ;;  %v931_v60 = vcombine.high %v9618_v40, %v9618_v40  ;;  %v932_v58 = vcombine.high %v9621_v45, %v9621_v45  ;;  %v3104_v39 = vrot.slane %v8162_v9, %v9042_v14  ;;  %8526 = vmatpush3.bf16.msra.mxu1 %v8686_v0 }
  0xcb   : > { %11555 = vst [vmem:[#allocation44_spill] sm:$0xff] %v9627_v54  ;;  %v3097_v46 = vcombine.low %v9595_v10, %v9627_v54  ;;  %v3111_v3 = vrot.slane %v3095_v16, %v9042_v14  ;;  %v9642_v29 = vrot.slane %v8163_v38, %v9042_v14  ;;  %v933_v33 = vcombine.high %v9631_v47, %v9631_v47 }
  0xcc   : > { %8424 = vmatmul.mubr.bf16.gmra.mxu1 %v2534_v32  ;;  %v3143_v41 = vcombine.low %v9621_v45, %v930_v18  ;;  %v3144_v8 = vcombine.low %v932_v58, %v9618_v40  ;;  %v3145_v13 = vcombine.low %v9631_v47, %v931_v60  ;;  %v868_v38 = vcombine.high %v852_v11, %v852_v11  ;;  %v8688_v32 = vld [vmem:[#allocation6 + $0xc8] sm:$0xff]  }
  0xcd   : > { %11556 = vst [vmem:[#allocation45_spill] sm:$0xff] %v9642_v29  ;;  %8427 = vmatprep.mubr.msk.bf16.mxu1 %vm8825_vm0, %v11541_v30  ;;  %v3125_v9 = vrot.slane %v3097_v46, %v9042_v14  ;;  %v3126_v16 = vcombine.low %v3104_v39, %v3111_v3  ;;  %v869_v0 = vcombine.high %v9497_v35, %v9497_v35 }
  0xce   : > { %v3146_v54 = vcombine.low %v933_v33, %v9601_v31  ;;  %v3153_v18 = vrot.slane %v3143_v41, %v9042_v14  ;;  %v3160_v58 = vrot.slane %v3144_v8, %v9042_v14  ;;  %v3167_v60 = vrot.slane %v3145_v13, %v9042_v14  ;;  %8467 = vmatprep.subr.bf16.mxu0 %v11541_v30  ;;  %v8689_v8 = vld [vmem:[#allocation6 + $0x80] sm:$0xff]  }
  0xcf   : > { %v3127_v49 = vcombine.low %v9642_v29, %v3125_v9  ;;  %v9661_v46 = vrot.slane %v3126_v16, %v9042_v14  ;;  %v870_v3 = vcombine.high %v866_v20, %v866_v20  ;;  %v1907_v39 = vcombine.low %v9497_v35, %v867_v51  ;;  %8527 = vmatprep.subr.bf16.mxu1 %v11541_v30  ;;  %v8690_v51 = vld [vmem:[#allocation6 + $0xc0] sm:$0xff]  }
  0xd0   : > { %v3174_v33 = vrot.slane %v3146_v54, %v9042_v14  ;;  %v3175_v22 = vcombine.low %v3153_v18, %v3160_v58  ;;  %v1908_v41 = vcombine.low %v869_v0, %v852_v11  ;;  %v1909_v23 = vcombine.low %v866_v20, %v868_v38  ;;  %8468 = vmatpush3.bf16.msra.mxu0 %v8687_v61 }
  0xd1   : > { %11557 = vst [vmem:[#allocation46_spill] sm:$0xff] %v9661_v46  ;;  %v3141_v13 = vrot.slane %v3127_v49, %v9042_v14  ;;  %v1910_v19 = vcombine.low %v870_v3, %v9595_v10  ;;  %v9669_v9 = vrot.slane %v1907_v39, %v9042_v14  ;;  %v1956_v16 = vcombine.low %v9610_v34, %v9621_v45 }
  0xd2   : > { %8528 = vmatpush3.bf16.msra.mxu1 %v8688_v32  ;;  %v3176_v29 = vcombine.low %v3167_v60, %v3174_v33  ;;  %v3183_v54 = vrot.slane %v3175_v22, %v9042_v14  ;;  %v9675_v11 = vrot.slane %v1908_v41, %v9042_v14  ;;  %v9678_v61 = vrot.slane %v1909_v23, %v9042_v14 }
  0xd3   : > { %11558 = vst [vmem:[#allocation47_spill] sm:$0xff] %v9669_v9  ;;  %8469 = vmatprep.subr.bf16.mxu0 %v11541_v30  ;;  %v3142_v49 = vcombine.low %v9661_v46, %v3141_v13  ;;  %v9683_v20 = vrot.slane %v1910_v19, %v9042_v14  ;;  %v8146_v38 = vcombine.high %v9610_v34, %v9621_v45  ;;  %v327_v19 = vld [vmem:[#allocation2 + $0xb0] sm:$0xff] }
  0xd4   : > { %11559 = vst [vmem:[#allocation48_spill] sm:$0xff] %v9675_v11  ;;  %v1958_v0 = vcombine.low %v9618_v40, %v9631_v47  ;;  %8529 = vmatprep.subr.bf16.mxu1 %v11541_v30  ;;  %v3190_v22 = vrot.slane %v3176_v29, %v9042_v14  ;;  %v1939_v23 = vcombine.low %v9669_v9, %v9675_v11 }
  0xd5   : > { %11560 = vst [vmem:[#allocation49_spill] sm:$0xff] %v9683_v20  ;;  %v8147_v32 = vcombine.high %v9618_v40, %v9631_v47  ;;  %v1966_v18 = vrot.slane %v1956_v16, %v9042_v14  ;;  %8470 = vmatpush3.bf16.msra.mxu0 %v8689_v8  ;;  %v1940_v58 = vcombine.low %v9678_v61, %v9683_v20 }
  0xd6   : > { %v9699_v60 = vrot.slane %v8146_v38, %v9042_v14  ;;  %v9702_v3 = vrot.slane %v1958_v0, %v9042_v14  ;;  %v9706_v29 = vrot.slane %v9080_v50, %v9042_v14  ;;  %8530 = vmatpush3.bf16.msra.mxu1 %v8690_v51  ;;  %v9708_v39 = vcombine.low %v3183_v54, %v3190_v22 }
  0xd7   : > { %v1947_v40 = vrot.slane %v1939_v23, %v9042_v14  ;;  %v9712_v47 = vrot.slane %v8147_v32, %v9042_v14  ;;  %v11565_v33 = vcombine.high %v9069_v42, %v9069_v42  ;;  %v1954_v8 = vrot.slane %v1940_v58, %v9042_v14  ;;  %v8693_v58 = vld.sshfl [vmem:[#allocation2 + $0xa8] sm:$0x11 pattern:$0x75316420] }
  0xd8   : > { %11561 = vst [vmem:[#allocation50_spill] sm:$0xff] %v9699_v60  ;;  %11562 = vst [vmem:[#allocation51_spill] sm:$0xff] %v9702_v3  ;;  %v1988_v13 = vcombine.low %v1966_v18, %v9699_v60  ;;  %v11566_v16 = vcombine.high %v9080_v50, %v9080_v50  ;;  %v1011_v54 = vcombine.high %v327_v19, %v327_v19 }
  0xd9   : > { %11563 = vst [vmem:[#allocation52_spill] sm:$0xff] %v9708_v39  ;;  %11564 = vst [vmem:[#allocation53_spill] sm:$0xff] %v9712_v47  ;;  %v985_v41 = vrot.slane %v11565_v33, %v9042_v14  ;;  %v3722_v38 = vpack.c.bf16 %v9708_v39, %v3142_v49  ;;  %v1989_v0 = vcombine.low %v9702_v3, %v9712_v47 }
  0xda   : > { %v9724_v51 = vrot.slane %v11566_v16, %v9042_v14  ;;  %v1018_v22 = vrot.slane %v327_v19, %v9042_v14  ;;  %v2622_v42 = vcombine.high %v9581_v36, %v9581_v36  ;;  %v1955_v23 = vcombine.low %v1947_v40, %v1954_v8 }
  0xdb   : > { %v1996_v32 = vrot.slane %v1988_v13, %v9042_v14  ;;  %v1025_v18 = vrot.slane %v1011_v54, %v9042_v14  ;;  %v2630_v50 = vcombine.high %v8693_v58, %v8693_v58  ;;  %8368 = vmatmul.mubr.bf16.gmra.mxu0 %v3722_v38  ;;  %v2003_v33 = vrot.slane %v1989_v0, %v9042_v14 }
  0xdc   : > { %v1026_v16 = vcombine.high %v1018_v22, %v1018_v22  ;;  %v9736_v49 = vrot.slane %v1018_v22, %v9042_v14  ;;  %v9739_v39 = vrot.slane %v2622_v42, %v9042_v14  ;;  %8371 = vmatprep.mubr.msk.bf16.mxu0 %vm8825_vm0, %v11541_v30  ;;  %v8164_v8 = vcombine.high %v9086_v52, %v985_v41 }
  0xdd   : > { %v1027_v36 = vcombine.high %v1025_v18, %v1025_v18  ;;  %v9744_v19 = vrot.slane %v1025_v18, %v9042_v14  ;;  %v2637_v40 = vrot.slane %v2630_v50, %v9042_v14  ;;  %v2004_v13 = vcombine.low %v1996_v32, %v2003_v33 }
  0xde   : > { %11567 = vst [vmem:[#allocation54_spill] sm:$0xff] %v9736_v49  ;;  %11568 = vst [vmem:[#allocation55_spill] sm:$0xff] %v9739_v39  ;;  %v9749_v54 = vrot.slane %v1026_v16, %v9042_v14  ;;  %v1056_v38 = vcombine.high %v9736_v49, %v9736_v49  ;;  %v3192_v0 = vcombine.low %v9739_v39, %v985_v41 }
  0xdf   : > { %v9755_v22 = vrot.slane %v1027_v36, %v9042_v14  ;;  %v1057_v42 = vcombine.high %v9744_v19, %v9744_v19  ;;  %v3194_v18 = vcombine.low %v9706_v29, %v9724_v51  ;;  %v8165_v32 = vcombine.high %v9706_v29, %v9724_v51 }
  0xe0   : > { %11569 = vst [vmem:[#allocation56_spill] sm:$0xff] %v9749_v54  ;;  %v2535_v58 = vpack.c.bf16 %v2004_v13, %v1955_v23  ;;  %v1058_v50 = vcombine.high %v9749_v54, %v9749_v54  ;;  %v3202_v33 = vrot.slane %v3192_v0, %v9042_v14  ;;  %v3209_v16 = vrot.slane %v8164_v8, %v9042_v14 }
  0xe1   : > { %v3216_v36 = vrot.slane %v3194_v18, %v9042_v14  ;;  %v3223_v47 = vrot.slane %v8165_v32, %v9042_v14  ;;  %v3241_v60 = vcombine.low %v9089_v53, %v2637_v40  ;;  %v3242_v3 = vcombine.low %v9749_v54, %v1056_v38 }
  0xe2   : > { %8428 = vmatmul.mubr.bf16.gmra.mxu1 %v2535_v58  ;;  %v3224_v46 = vcombine.low %v3202_v33, %v3209_v16  ;;  %v3243_v20 = vcombine.low %v1058_v50, %v9744_v19  ;;  %v3244_v23 = vcombine.low %v9755_v22, %v1057_v42  ;;  %v993_v13 = vcombine.high %v9086_v52, %v9086_v52 }
  0xe3   : > { %8431 = vmatprep.mubr.msk.bf16.mxu1 %vm8825_vm0, %v11541_v30  ;;  %v3225_v8 = vcombine.low %v3216_v36, %v3223_v47  ;;  %v3251_v0 = vrot.slane %v3241_v60, %v9042_v14  ;;  %v9779_v18 = vrot.slane %v3242_v3, %v9042_v14  ;;  %v994_v40 = vcombine.high %v9706_v29, %v9706_v29 }
  0xe4   : > { %v3232_v38 = vrot.slane %v3224_v46, %v9042_v14  ;;  %v3265_v32 = vrot.slane %v3243_v20, %v9042_v14  ;;  %v3272_v42 = vrot.slane %v3244_v23, %v9042_v14  ;;  %v995_v58 = vcombine.high %v985_v41, %v985_v41 }
  0xe5   : > { %11570 = vst [vmem:[#allocation57_spill] sm:$0xff] %v9779_v18  ;;  %v3239_v50 = vrot.slane %v3225_v8, %v9042_v14  ;;  %v3273_v33 = vcombine.low %v3251_v0, %v9779_v18  ;;  %v996_v60 = vcombine.high %v9724_v51, %v9724_v51  ;;  %v2005_v3 = vcombine.low %v9601_v31, %v9086_v52 }
  0xe6   : > { %v3274_v47 = vcombine.low %v3265_v32, %v3272_v42  ;;  %v2006_v16 = vcombine.low %v985_v41, %v993_v13  ;;  %v2007_v36 = vcombine.low %v995_v58, %v9706_v29  ;;  %v2008_v46 = vcombine.low %v9724_v51, %v994_v40  ;;  %v329_v40 = vld [vmem:[#allocation2 + $0xc0] sm:$0xff]  ;;  %v8130_v58 = vld.sshfl [vmem:[#allocation2 + $0xb8] sm:$0x11 pattern:$0x75316420] }
  0xe7   : > { %v3240_v20 = vcombine.low %v3232_v38, %v3239_v50  ;;  %v3281_v23 = vrot.slane %v3273_v33, %v9042_v14  ;;  %v2015_v39 = vrot.slane %v2005_v3, %v9042_v14  ;;  %v2054_v8 = vcombine.low %v996_v60, %v9089_v53 }
  0xe8   : > { %v9798_v0 = vrot.slane %v3274_v47, %v9042_v14  ;;  %v2022_v18 = vrot.slane %v2006_v16, %v9042_v14  ;;  %v2029_v52 = vrot.slane %v2007_v36, %v9042_v14  ;;  %v2036_v41 = vrot.slane %v2008_v46, %v9042_v14  ;;  %v331_v47 = vld [vmem:[#allocation2 + $0xd0] sm:$0xff]  ;;  %v8131_v46 = vld.sshfl [vmem:[#allocation2 + $0xc8] sm:$0x11 pattern:$0x75316420] }
  0xe9   : > { %v2055_v29 = vcombine.low %v9736_v49, %v9749_v54  ;;  %v8148_v51 = vcombine.high %v9736_v49, %v9749_v54  ;;  %v2057_v13 = vcombine.low %v9744_v19, %v9755_v22  ;;  %v2064_v53 = vrot.slane %v2054_v8, %v9042_v14 }
  0xea   : > { %11571 = vst [vmem:[#allocation58_spill] sm:$0xff] %v9798_v0  ;;  %v3289_v38 = vcombine.low %v3281_v23, %v9798_v0  ;;  %v2037_v32 = vcombine.low %v2015_v39, %v2022_v18  ;;  %v2038_v42 = vcombine.low %v2029_v52, %v2036_v41  ;;  %v1059_v50 = vcombine.high %v9755_v22, %v9755_v22 }
  0xeb   : > { %v2071_v33 = vrot.slane %v2055_v29, %v9042_v14  ;;  %v9815_v60 = vrot.slane %v8148_v51, %v9042_v14  ;;  %v9818_v3 = vrot.slane %v2057_v13, %v9042_v14  ;;  %v9821_v16 = vrot.slane %v8130_v58, %v9042_v14 }
  0xec   : > { %v3723_v36 = vpack.c.bf16 %v3289_v38, %v3240_v20  ;;  %v2045_v39 = vrot.slane %v2037_v32, %v9042_v14  ;;  %v2052_v18 = vrot.slane %v2038_v42, %v9042_v14  ;;  %v1074_v23 = vcombine.high %v329_v40, %v329_v40 }
  0xed   : > { %11572 = vst [vmem:[#allocation59_spill] sm:$0xff] %v9815_v60  ;;  %11573 = vst [vmem:[#allocation60_spill] sm:$0xff] %v9818_v3  ;;  %v2086_v8 = vcombine.low %v2064_v53, %v2071_v33  ;;  %v2087_v52 = vcombine.low %v9815_v60, %v9818_v3  ;;  %v1081_v41 = vrot.slane %v329_v40, %v9042_v14 }
  0xee   : > { %11574 = vst [vmem:[#allocation61_spill] sm:$0xff] %v9821_v16  ;;  %v9829_v29 = vrot.slane %v8131_v46, %v9042_v14  ;;  %8372 = vmatmul.mubr.bf16.gmra.mxu0 %v3723_v36  ;;  %v2053_v51 = vcombine.low %v2045_v39, %v2052_v18  ;;  %v1088_v13 = vrot.slane %v1074_v23, %v9042_v14 }
  0xef   : > { %v1137_v20 = vcombine.high %v331_v47, %v331_v47  ;;  %v1144_v38 = vrot.slane %v331_v47, %v9042_v14  ;;  %v2094_v32 = vrot.slane %v2086_v8, %v9042_v14  ;;  %v2101_v42 = vrot.slane %v2087_v52, %v9042_v14  ;;  %8375 = vmatprep.mubr.msk.bf16.mxu0 %vm8825_vm0, %v11541_v30 }
  0xf0   : > { %11575 = vst [vmem:[#allocation62_spill] sm:$0xff] %v9829_v29  ;;  %v1089_v53 = vcombine.high %v1081_v41, %v1081_v41  ;;  %v9838_v40 = vrot.slane %v1081_v41, %v9042_v14  ;;  %v1090_v33 = vcombine.high %v1088_v13, %v1088_v13  ;;  %v1104_v36 = vrot.slane %v1088_v13, %v9042_v14 }
  0xf1   : > { %v9842_v39 = vrot.slane %v1137_v20, %v9042_v14  ;;  %v1152_v18 = vcombine.high %v1144_v38, %v1144_v38  ;;  %v2102_v23 = vcombine.low %v2094_v32, %v2101_v42  ;;  %v9848_v8 = vrot.slane %v1144_v38, %v9042_v14 }
  0xf2   : > { %11576 = vst [vmem:[#allocation63_spill] sm:$0xff] %v9838_v40  ;;  %v9845_v47 = vrot.slane %v1089_v53, %v9042_v14  ;;  %v2638_v52 = vcombine.high %v8130_v58, %v8130_v58  ;;  %v1118_v0 = vrot.slane %v1090_v33, %v9042_v14  ;;  %v2646_v20 = vcombine.high %v8131_v46, %v8131_v46 }
  0xf3   : > { %11577 = vst [vmem:[#allocation64_spill] sm:$0xff] %v9848_v8  ;;  %v9853_v41 = vrot.slane %v9842_v39, %v9042_v14  ;;  %v9856_v13 = vrot.slane %v1152_v18, %v9042_v14  ;;  %v2536_v60 = vpack.c.bf16 %v2102_v23, %v2053_v51  ;;  %v1182_v32 = vcombine.high %v9848_v8, %v9848_v8 }
  0xf4   : > { %v9861_v42 = vrot.slane %v2638_v52, %v9042_v14  ;;  %v3290_v38 = vcombine.low %v1059_v50, %v9821_v16  ;;  %v9867_v53 = vrot.slane %v2646_v20, %v9042_v14  ;;  %v8166_v33 = vcombine.high %v9838_v40, %v9845_v47 }
  0xf5   : > { %11578 = vst [vmem:[#allocation65_spill] sm:$0xff] %v9856_v13  ;;  %v1184_v58 = vcombine.high %v9856_v13, %v9856_v13  ;;  %v3293_v18 = vcombine.low %v1104_v36, %v1118_v0  ;;  %8432 = vmatmul.mubr.bf16.gmra.mxu1 %v2536_v60  ;;  %v8167_v23 = vcombine.high %v1104_v36, %v1118_v0 }
  0xf6   : > { %11579 = vst [vmem:[#allocation66_spill] sm:$0xff] %v9861_v42  ;;  %11580 = vst [vmem:[#allocation67_spill] sm:$0xff] %v9867_v53  ;;  %v3291_v46 = vcombine.low %v9861_v42, %v9845_v47  ;;  %v9874_v51 = vrot.slane %v3290_v38, %v9042_v14  ;;  %v3341_v50 = vcombine.low %v9856_v13, %v1182_v32  ;;  %8435 = vmatprep.mubr.msk.bf16.mxu1 %vm8825_vm0, %v11541_v30 }
  0xf7   : > { %v3314_v52 = vrot.slane %v8166_v33, %v9042_v14  ;;  %v3321_v20 = vrot.slane %v3293_v18, %v9042_v14  ;;  %v3340_v54 = vcombine.low %v9829_v29, %v9867_v53  ;;  %v3342_v60 = vcombine.low %v1184_v58, %v9853_v41 }
  0xf8   : > { %11581 = vst [vmem:[#allocation68_spill] sm:$0xff] %v9874_v51  ;;  %v3307_v3 = vrot.slane %v3291_v46, %v9042_v14  ;;  %v9886_v38 = vrot.slane %v8167_v23, %v9042_v14  ;;  %v3363_v42 = vrot.slane %v3341_v50, %v9042_v14  ;;  %v1119_v32 = vcombine.high %v9838_v40, %v9838_v40 }
  0xf9   : > { %v3323_v49 = vcombine.low %v3314_v52, %v3321_v20  ;;  %v3356_v33 = vrot.slane %v3340_v54, %v9042_v14  ;;  %v3370_v18 = vrot.slane %v3342_v60, %v9042_v14  ;;  %v1120_v31 = vcombine.high %v1104_v36, %v1104_v36 }
  0xfa   : > { %11582 = vst [vmem:[#allocation69_spill] sm:$0xff] %v9886_v38  ;;  %v3322_v53 = vcombine.low %v9874_v51, %v3307_v3  ;;  %v1121_v58 = vcombine.high %v9845_v47, %v9845_v47  ;;  %v1122_v46 = vcombine.high %v1118_v0, %v1118_v0  ;;  %v8149_v23 = vcombine.high %v9744_v19, %v9755_v22 }
  0xfb   : > { %v9899_v50 = vrot.slane %v3323_v49, %v9042_v14  ;;  %v3371_v9 = vcombine.low %v9886_v38, %v3356_v33  ;;  %v3372_v52 = vcombine.low %v3363_v42, %v3370_v18  ;;  %v2104_v54 = vcombine.low %v9821_v16, %v9838_v40 }
  0xfc   : > { %v3330_v20 = vrot.slane %v3322_v53, %v9042_v14  ;;  %v2105_v3 = vcombine.low %v9845_v47, %v1119_v32  ;;  %v2106_v60 = vcombine.low %v1121_v58, %v1104_v36  ;;  %v9907_v51 = vrot.slane %v8149_v23, %v9042_v14 }
  0xfd   : > { %11583 = vst [vmem:[#allocation70_spill] sm:$0xff] %v9899_v50  ;;  %v3379_v11 = vrot.slane %v3371_v9, %v9042_v14  ;;  %v9911_v19 = vrot.slane %v3372_v52, %v9042_v14  ;;  %v2120_v49 = vrot.slane %v2104_v54, %v9042_v14  ;;  %v2152_v22 = vcombine.low %v1118_v0, %v1120_v31 }
  0xfe   : > { %11584 = vst [vmem:[#allocation71_spill] sm:$0xff] %v9907_v51  ;;  %v3338_v42 = vcombine.low %v3330_v20, %v9899_v50  ;;  %v9916_v33 = vrot.slane %v2105_v3, %v9042_v14  ;;  %v9919_v53 = vrot.slane %v2106_v60, %v9042_v14  ;;  %v2153_v36 = vcombine.low %v1122_v46, %v9829_v29  ;;  %v333_v46 = vld [vmem:[#allocation2 + $0xe0] sm:$0xff] }
  0xff   : > { %11585 = vst [vmem:[#allocation72_spill] sm:$0xff] %v9911_v19  ;;  %v3387_v32 = vcombine.low %v3379_v11, %v9911_v19  ;;  %v2135_v9 = vcombine.low %v9907_v51, %v2120_v49  ;;  %v2154_v18 = vcombine.low %v9848_v8, %v9856_v13  ;;  %v8150_v31 = vcombine.high %v9848_v8, %v9856_v13 }
 0x100   : > { %11586 = vst [vmem:[#allocation73_spill] sm:$0xff] %v9916_v33  ;;  %11587 = vst [vmem:[#allocation74_spill] sm:$0xff] %v9919_v53  ;;  %v2136_v0 = vcombine.low %v9916_v33, %v9919_v53  ;;  %v9931_v58 = vrot.slane %v2152_v22, %v9042_v14  ;;  %v9934_v23 = vrot.slane %v2153_v36, %v9042_v14  ;;  %v8132_v22 = vld.sshfl [vmem:[#allocation2 + $0xd8] sm:$0x11 pattern:$0x75316420] }
 0x101   : > { %v1153_v11 = vcombine.high %v9842_v39, %v9842_v39  ;;  %v3724_v52 = vpack.c.bf16 %v3387_v32, %v3338_v42  ;;  %v2143_v54 = vrot.slane %v2135_v9, %v9042_v14  ;;  %v2176_v20 = vrot.slane %v2154_v18, %v9042_v14  ;;  %v8133_v32 = vld.sshfl [vmem:[#allocation2 + $0xe8] sm:$0x11 pattern:$0x75316420]  ;;  %v9952_v9 = vld [vmem:[#allocation2 + $0xf0] sm:$0xff] }
 0x102   : > { %11588 = vst [vmem:[#allocation75_spill] sm:$0xff] %v9931_v58  ;;  %11589 = vst [vmem:[#allocation76_spill] sm:$0xff] %v9934_v23  ;;  %v9941_v3 = vrot.slane %v8150_v31, %v9042_v14  ;;  %v2150_v60 = vrot.slane %v2136_v0, %v9042_v14  ;;  %v2184_v49 = vcombine.low %v9931_v58, %v9934_v23 }
 0x103   : > { %v9947_v36 = vrot.slane %v1153_v11, %v9042_v14  ;;  %v1183_v39 = vcombine.high %v9853_v41, %v9853_v41  ;;  %8376 = vmatmul.mubr.bf16.gmra.mxu0 %v3724_v52  ;;  %v9955_v18 = vrot.slane %v8132_v22, %v9042_v14  ;;  %v1200_v31 = vcombine.high %v333_v46, %v333_v46 }
 0x104   : > { %11590 = vst [vmem:[#allocation77_spill] sm:$0xff] %v9941_v3  ;;  %v2185_v42 = vcombine.low %v2176_v20, %v9941_v3  ;;  %v1207_v0 = vrot.slane %v333_v46, %v9042_v14  ;;  %v2151_v19 = vcombine.low %v2143_v54, %v2150_v60  ;;  %v2192_v50 = vrot.slane %v2184_v49, %v9042_v14 }
 0x105   : > { %11591 = vst [vmem:[#allocation78_spill] sm:$0xff] %v9955_v18  ;;  %8379 = vmatprep.mubr.msk.bf16.mxu0 %vm8825_vm0, %v11541_v30  ;;  %v1185_v11 = vcombine.high %v9947_v36, %v9947_v36  ;;  %v9964_v52 = vrot.slane %v8133_v32, %v9042_v14  ;;  %v1214_v23 = vrot.slane %v1200_v31, %v9042_v14 }
 0x106   : > { %v2199_v20 = vrot.slane %v2185_v42, %v9042_v14  ;;  %v1215_v3 = vcombine.high %v1207_v0, %v1207_v0  ;;  %v9969_v38 = vrot.slane %v1207_v0, %v9042_v14  ;;  %v1270_v46 = vrot.slane %v9952_v9, %v9042_v14 }
 0x107   : > { %11592 = vst [vmem:[#allocation79_spill] sm:$0xff] %v9964_v52  ;;  %v2654_v54 = vcombine.high %v8132_v22, %v8132_v22  ;;  %v2662_v60 = vcombine.high %v8133_v32, %v8133_v32  ;;  %v3388_v49 = vcombine.low %v9947_v36, %v1183_v39  ;;  %v1216_v58 = vcombine.high %v1214_v23, %v1214_v23 }
 0x108   : > { %11593 = vst [vmem:[#allocation80_spill] sm:$0xff] %v9969_v38  ;;  %v2200_v53 = vcombine.low %v2192_v50, %v2199_v20  ;;  %v1230_v33 = vrot.slane %v1214_v23, %v9042_v14  ;;  %v9976_v13 = vrot.slane %v1215_v3, %v9042_v14  ;;  %v1278_v42 = vcombine.high %v1270_v46, %v1270_v46 }
 0x109   : > { %v9979_v31 = vrot.slane %v1270_v46, %v9042_v14  ;;  %v9982_v0 = vrot.slane %v2654_v54, %v9042_v14  ;;  %v9985_v29 = vrot.slane %v2662_v60, %v9042_v14  ;;  %v1244_v39 = vrot.slane %v1216_v58, %v9042_v14 }
 0x10a   : > { %11594 = vst [vmem:[#allocation81_spill] sm:$0xff] %v9976_v13  ;;  %v2537_v22 = vpack.c.bf16 %v2200_v53, %v2151_v19  ;;  %v3389_v50 = vcombine.low %v1185_v11, %v9955_v18  ;;  %v8168_v23 = vcombine.high %v9969_v38, %v9976_v13  ;;  %v9992_v3 = vrot.slane %v1278_v42, %v9042_v14 }
 0x10b   : > { %11595 = vst [vmem:[#allocation82_spill] sm:$0xff] %v9982_v0  ;;  %11596 = vst [vmem:[#allocation83_spill] sm:$0xff] %v9985_v29  ;;  %v1308_v32 = vcombine.high %v9979_v31, %v9979_v31  ;;  %v3390_v20 = vcombine.low %v9982_v0, %v9976_v13  ;;  %v3398_v46 = vrot.slane %v3388_v49, %v9042_v14 }
 0x10c   : > { %11597 = vst [vmem:[#allocation84_spill] sm:$0xff] %v9992_v3  ;;  %8436 = vmatmul.mubr.bf16.gmra.mxu1 %v2537_v22  ;;  %v3405_v19 = vrot.slane %v3389_v50, %v9042_v14  ;;  %v10001_v53 = vrot.slane %v8168_v23, %v9042_v14  ;;  %v3437_v58 = vcombine.low %v1230_v33, %v1244_v39 }
 0x10d   : > { %v8169_v11 = vcombine.high %v1230_v33, %v1244_v39  ;;  %8439 = vmatprep.mubr.msk.bf16.mxu1 %vm8825_vm0, %v11541_v30  ;;  %v3412_v54 = vrot.slane %v3390_v20, %v9042_v14  ;;  %v3439_v60 = vcombine.low %v9964_v52, %v9985_v29  ;;  %v3440_v42 = vcombine.low %v9992_v3, %v1308_v32 }
 0x10e   : > { %11598 = vst [vmem:[#allocation85_spill] sm:$0xff] %v10001_v53  ;;  %v1245_v49 = vcombine.high %v9969_v38, %v9969_v38  ;;  %v3420_v22 = vcombine.low %v3398_v46, %v3405_v19  ;;  %v3447_v50 = vrot.slane %v3437_v58, %v9042_v14  ;;  %v1246_v0 = vcombine.high %v1230_v33, %v1230_v33 }
 0x10f   : > { %v3454_v23 = vrot.slane %v8169_v11, %v9042_v14  ;;  %v3421_v8 = vcombine.low %v3412_v54, %v10001_v53  ;;  %v3461_v51 = vrot.slane %v3439_v60, %v9042_v14  ;;  %v10016_v20 = vrot.slane %v3440_v42, %v9042_v14 }
 0x110   : > { %v1247_v29 = vcombine.high %v9976_v13, %v9976_v13  ;;  %v10021_v32 = vrot.slane %v3420_v22, %v9042_v14  ;;  %v1248_v46 = vcombine.high %v1244_v39, %v1244_v39  ;;  %v2201_v19 = vcombine.low %v9853_v41, %v9947_v36 }
 0x111   : > { %11599 = vst [vmem:[#allocation86_spill] sm:$0xff] %v10016_v20  ;;  %v3469_v16 = vcombine.low %v3447_v50, %v3454_v23  ;;  %v3435_v58 = vrot.slane %v3421_v8, %v9042_v14  ;;  %v3470_v11 = vcombine.low %v3461_v51, %v10016_v20  ;;  %v8151_v54 = vcombine.high %v9853_v41, %v9947_v36 }
 0x112   : > { %11600 = vst [vmem:[#allocation87_spill] sm:$0xff] %v10021_v32  ;;  %v2203_v60 = vcombine.low %v9955_v18, %v9969_v38  ;;  %v2204_v22 = vcombine.low %v9976_v13, %v1245_v49  ;;  %v10036_v50 = vrot.slane %v2201_v19, %v9042_v14  ;;  %v2250_v23 = vcombine.low %v1247_v29, %v1230_v33 }
 0x113   : > { %v10032_v42 = vrot.slane %v3469_v16, %v9042_v14  ;;  %v3436_v53 = vcombine.low %v10021_v32, %v3435_v58  ;;  %v3484_v8 = vrot.slane %v3470_v11, %v9042_v14  ;;  %v10041_v51 = vrot.slane %v8151_v54, %v9042_v14  ;;  %v337_v54 = vld [vmem:[#allocation2 + $0x100] sm:$0xff] }
 0x114   : > { %11602 = vst [vmem:[#allocation89_spill] sm:$0xff] %v10036_v50  ;;  %v2225_v41 = vrot.slane %v2203_v60, %v9042_v14  ;;  %v10045_v36 = vrot.slane %v2204_v22, %v9042_v14  ;;  %v2251_v16 = vcombine.low %v1244_v39, %v1246_v0  ;;  %v2252_v20 = vcombine.low %v1248_v46, %v9964_v52 }
 0x115   : > { %11601 = vst [vmem:[#allocation88_spill] sm:$0xff] %v10032_v42  ;;  %11603 = vst [vmem:[#allocation90_spill] sm:$0xff] %v10041_v51  ;;  %v2253_v49 = vcombine.low %v9979_v31, %v9992_v3  ;;  %v3485_v29 = vcombine.low %v10032_v42, %v3484_v8  ;;  %v2233_v33 = vcombine.low %v10036_v50, %v10041_v51  ;;  %v8134_v8 = vld.sshfl [vmem:[#allocation2 + $0xf8] sm:$0x11 pattern:$0x75316420] }
 0x116   : > { %11604 = vst [vmem:[#allocation91_spill] sm:$0xff] %v10045_v36  ;;  %v10054_v19 = vrot.slane %v2250_v23, %v9042_v14  ;;  %v1263_v58 = vcombine.high %v9952_v9, %v9952_v9  ;;  %v2234_v11 = vcombine.low %v2225_v41, %v10045_v36  ;;  %v10060_v0 = vrot.slane %v2251_v16, %v9042_v14 }
 0x117   : > { %v10063_v39 = vrot.slane %v2252_v20, %v9042_v14  ;;  %v2281_v46 = vrot.slane %v2253_v49, %v9042_v14  ;;  %v3725_v60 = vpack.c.bf16 %v3485_v29, %v3436_v53  ;;  %v2241_v22 = vrot.slane %v2233_v33, %v9042_v14  ;;  %v8135_v53 = vld.sshfl [vmem:[#allocation2 + $0x108] sm:$0x11 pattern:$0x75316420] }
 0x118   : > { %11605 = vst [vmem:[#allocation92_spill] sm:$0xff] %v10054_v19  ;;  %11606 = vst [vmem:[#allocation93_spill] sm:$0xff] %v10060_v0  ;;  %v1277_v23 = vrot.slane %v1263_v58, %v9042_v14  ;;  %v1310_v9 = vcombine.high %v9992_v3, %v9992_v3  ;;  %v2248_v41 = vrot.slane %v2234_v11, %v9042_v14 }
 0x119   : > { %11607 = vst [vmem:[#allocation94_spill] sm:$0xff] %v10063_v39  ;;  %v2282_v16 = vcombine.low %v10054_v19, %v10060_v0  ;;  %v2283_v20 = vcombine.low %v10063_v39, %v2281_v46  ;;  %v10075_v42 = vrot.slane %v8134_v8, %v9042_v14  ;;  %8380 = vmatmul.mubr.bf16.gmra.mxu0 %v3725_v60 }
 0x11a   : > { %v1279_v49 = vcombine.high %v1277_v23, %v1277_v23  ;;  %v1293_v29 = vrot.slane %v1277_v23, %v9042_v14  ;;  %v1326_v33 = vcombine.high %v337_v54, %v337_v54  ;;  %v1333_v58 = vrot.slane %v337_v54, %v9042_v14  ;;  %8383 = vmatprep.mubr.msk.bf16.mxu0 %vm8825_vm0, %v11541_v30 }
 0x11b   : > { %11608 = vst [vmem:[#allocation95_spill] sm:$0xff] %v10075_v42  ;;  %v2249_v32 = vcombine.low %v2241_v22, %v2248_v41  ;;  %v2290_v51 = vrot.slane %v2282_v16, %v9042_v14  ;;  %v2297_v11 = vrot.slane %v2283_v20, %v9042_v14  ;;  %v10084_v46 = vrot.slane %v8135_v53, %v9042_v14 }
 0x11c   : > { %v1307_v60 = vrot.slane %v1279_v49, %v9042_v14  ;;  %v1309_v0 = vcombine.high %v1293_v29, %v1293_v29  ;;  %v1340_v39 = vrot.slane %v1326_v33, %v9042_v14  ;;  %v1341_v23 = vcombine.high %v1333_v58, %v1333_v58 }
 0x11d   : > { %11609 = vst [vmem:[#allocation96_spill] sm:$0xff] %v10084_v46  ;;  %v2298_v52 = vcombine.low %v2290_v51, %v2297_v11  ;;  %v10089_v54 = vrot.slane %v1333_v58, %v9042_v14  ;;  %v2670_v22 = vcombine.high %v8134_v8, %v8134_v8  ;;  %v2678_v41 = vcombine.high %v8135_v53, %v8135_v53 }
 0x11e   : > { %v1311_v16 = vcombine.high %v1307_v60, %v1307_v60  ;;  %v1342_v20 = vcombine.high %v1340_v39, %v1340_v39  ;;  %v1356_v36 = vrot.slane %v1340_v39, %v9042_v14  ;;  %v10093_v19 = vrot.slane %v1341_v23, %v9042_v14 }
 0x11f   : > { %11610 = vst [vmem:[#allocation97_spill] sm:$0xff] %v10089_v54  ;;  %v2538_v50 = vpack.c.bf16 %v2298_v52, %v2249_v32  ;;  %v10096_v49 = vrot.slane %v2670_v22, %v9042_v14  ;;  %v10099_v33 = vrot.slane %v2678_v41, %v9042_v14  ;;  %v3486_v51 = vcombine.low %v1310_v9, %v1293_v29 }
 0x120   : > { %v1370_v58 = vrot.slane %v1342_v20, %v9042_v14  ;;  %v3487_v11 = vcombine.low %v1307_v60, %v1309_v0  ;;  %v3488_v8 = vcombine.low %v1311_v16, %v10075_v42  ;;  %v8170_v53 = vcombine.high %v10089_v54, %v10093_v19 }
 0x121   : > { %11611 = vst [vmem:[#allocation98_spill] sm:$0xff] %v10096_v49  ;;  %11612 = vst [vmem:[#allocation99_spill] sm:$0xff] %v10099_v33  ;;  %8440 = vmatmul.mubr.bf16.gmra.mxu1 %v2538_v50  ;;  %v3489_v39 = vcombine.low %v10096_v49, %v10093_v19  ;;  %v3496_v52 = vrot.slane %v3486_v51, %v9042_v14  ;;  %v3538_v32 = vcombine.low %v10084_v46, %v10099_v33 }
 0x122   : > { %v1371_v9 = vcombine.high %v10089_v54, %v10089_v54  ;;  %8443 = vmatprep.mubr.msk.bf16.mxu1 %vm8825_vm0, %v11541_v30  ;;  %v3503_v0 = vrot.slane %v3487_v11, %v9042_v14  ;;  %v10116_v23 = vrot.slane %v3488_v8, %v9042_v14  ;;  %v3536_v50 = vcombine.low %v1356_v36, %v1370_v58 }
 0x123   : > { %v8171_v22 = vcombine.high %v1356_v36, %v1370_v58  ;;  %v3517_v41 = vrot.slane %v3489_v39, %v9042_v14  ;;  %v3545_v16 = vrot.slane %v8170_v53, %v9042_v14  ;;  %v3566_v20 = vrot.slane %v3538_v32, %v9042_v14 }
 0x124   : > { %11613 = vst [vmem:[#allocation100_spill] sm:$0xff] %v10116_v23  ;;  %v1372_v51 = vcombine.high %v1356_v36, %v1356_v36  ;;  %v3518_v33 = vcombine.low %v3496_v52, %v3503_v0  ;;  %v3552_v49 = vrot.slane %v3536_v50, %v9042_v14  ;;  %v1373_v11 = vcombine.high %v10093_v19, %v10093_v19 }
 0x125   : > { %v10123_v18 = vrot.slane %v8171_v22, %v9042_v14  ;;  %v3519_v8 = vcombine.low %v10116_v23, %v3517_v41  ;;  %v1374_v38 = vcombine.high %v1370_v58, %v1370_v58  ;;  %v8152_v39 = vcombine.high %v9979_v31, %v9992_v3 }
 0x126   : > { %v2300_v13 = vcombine.low %v1293_v29, %v1307_v60  ;;  %v10131_v53 = vrot.slane %v3518_v33, %v9042_v14  ;;  %v3567_v32 = vcombine.low %v3545_v16, %v3552_v49  ;;  %v8153_v0 = vcombine.high %v1293_v29, %v1307_v60  ;;  %v339_v60 = vld [vmem:[#allocation2 + $0x110] sm:$0xff] }
 0x127   : > { %11614 = vst [vmem:[#allocation101_spill] sm:$0xff] %v10123_v18  ;;  %v3568_v52 = vcombine.low %v10123_v18, %v3566_v20  ;;  %v3533_v50 = vrot.slane %v3519_v8, %v9042_v14  ;;  %v2302_v22 = vcombine.low %v10075_v42, %v10089_v54  ;;  %v10138_v40 = vrot.slane %v8152_v39, %v9042_v14 }
 0x128   : > { %11615 = vst [vmem:[#allocation102_spill] sm:$0xff] %v10131_v53  ;;  %v10141_v41 = vrot.slane %v2300_v13, %v9042_v14  ;;  %v10144_v23 = vrot.slane %v3567_v32, %v9042_v14  ;;  %v10148_v49 = vrot.slane %v8153_v0, %v9042_v14  ;;  %v2348_v29 = vcombine.low %v10093_v19, %v1371_v9 }
 0x129   : > { %11616 = vst [vmem:[#allocation103_spill] sm:$0xff] %v10138_v40  ;;  %v3582_v33 = vrot.slane %v3568_v52, %v9042_v14  ;;  %v3534_v16 = vcombine.low %v10131_v53, %v3533_v50  ;;  %v2330_v20 = vrot.slane %v2302_v22, %v9042_v14  ;;  %v2349_v13 = vcombine.low %v1373_v11, %v1356_v36  ;;  %v341_v22 = vld [vmem:[#allocation2 + $0x120] sm:$0xff] }
 0x12a   : > { %11617 = vst [vmem:[#allocation104_spill] sm:$0xff] %v10141_v41  ;;  %11618 = vst [vmem:[#allocation105_spill] sm:$0xff] %v10144_v23  ;;  %v2331_v8 = vcombine.low %v10138_v40, %v10141_v41  ;;  %v2350_v32 = vcombine.low %v1370_v58, %v1372_v51  ;;  %v2351_v18 = vcombine.low %v1374_v38, %v10084_v46  ;;  %v8136_v38 = vld.sshfl [vmem:[#allocation2 + $0x118] sm:$0x11 pattern:$0x75316420] }
 0x12b   : > { %11619 = vst [vmem:[#allocation106_spill] sm:$0xff] %v10148_v49  ;;  %v3583_v39 = vcombine.low %v10144_v23, %v3582_v33  ;;  %v10158_v52 = vrot.slane %v2348_v29, %v9042_v14  ;;  %v2332_v0 = vcombine.low %v10148_v49, %v2330_v20  ;;  %v10163_v50 = vrot.slane %v2349_v13, %v9042_v14 }
 0x12c   : > { %v2339_v9 = vrot.slane %v2331_v8, %v9042_v14  ;;  %v1389_v53 = vcombine.high %v339_v60, %v339_v60  ;;  %v10166_v36 = vrot.slane %v2350_v32, %v9042_v14  ;;  %v10169_v58 = vrot.slane %v2351_v18, %v9042_v14 }
 0x12d   : > { %11620 = vst [vmem:[#allocation107_spill] sm:$0xff] %v10158_v52  ;;  %11621 = vst [vmem:[#allocation108_spill] sm:$0xff] %v10163_v50  ;;  %v3726_v42 = vpack.c.bf16 %v3583_v39, %v3534_v16  ;;  %v1396_v51 = vrot.slane %v339_v60, %v9042_v14  ;;  %v2346_v11 = vrot.slane %v2332_v0, %v9042_v14 }
 0x12e   : > { %11622 = vst [vmem:[#allocation109_spill] sm:$0xff] %v10166_v36  ;;  %11623 = vst [vmem:[#allocation110_spill] sm:$0xff] %v10169_v58  ;;  %v2380_v33 = vcombine.low %v10158_v52, %v10163_v50  ;;  %v1403_v29 = vrot.slane %v1389_v53, %v9042_v14  ;;  %v10177_v20 = vrot.slane %v8136_v38, %v9042_v14 }
 0x12f   : > { %8384 = vmatmul.mubr.bf16.gmra.mxu0 %v3726_v42  ;;  %v2381_v16 = vcombine.low %v10166_v36, %v10169_v58  ;;  %v1404_v8 = vcombine.high %v1396_v51, %v1396_v51  ;;  %v10182_v18 = vrot.slane %v1396_v51, %v9042_v14  ;;  %v1452_v13 = vcombine.high %v341_v22, %v341_v22 }
 0x130   : > { %v2347_v60 = vcombine.low %v2339_v9, %v2346_v11  ;;  %v2388_v39 = vrot.slane %v2380_v33, %v9042_v14  ;;  %8387 = vmatprep.mubr.msk.bf16.mxu0 %vm8825_vm0, %v11541_v30  ;;  %v1405_v32 = vcombine.high %v1403_v29, %v1403_v29  ;;  %v1419_v53 = vrot.slane %v1403_v29, %v9042_v14 }
 0x131   : > { %v2395_v0 = vrot.slane %v2381_v16, %v9042_v14  ;;  %v10190_v42 = vrot.slane %v1404_v8, %v9042_v14  ;;  %v1434_v23 = vcombine.high %v10182_v18, %v10182_v18  ;;  %v1459_v51 = vrot.slane %v341_v22, %v9042_v14 }
 0x132   : > { %v1433_v9 = vrot.slane %v1405_v32, %v9042_v14  ;;  %v1435_v11 = vcombine.high %v1419_v53, %v1419_v53  ;;  %v1466_v33 = vrot.slane %v1452_v13, %v9042_v14  ;;  %v2686_v58 = vcombine.high %v8136_v38, %v8136_v38 }
 0x133   : > { %v2396_v50 = vcombine.low %v2388_v39, %v2395_v0  ;;  %v1436_v29 = vcombine.high %v10190_v42, %v10190_v42  ;;  %v1467_v36 = vcombine.high %v1459_v51, %v1459_v51  ;;  %v10200_v16 = vrot.slane %v1459_v51, %v9042_v14 }
 0x134   : > { %v1437_v8 = vcombine.high %v1433_v9, %v1433_v9  ;;  %v1468_v52 = vcombine.high %v1466_v33, %v1466_v33  ;;  %v1482_v41 = vrot.slane %v1466_v33, %v9042_v14  ;;  %v10204_v22 = vrot.slane %v2686_v58, %v9042_v14 }
 0x135   : > { %v2539_v32 = vpack.c.bf16 %v2396_v50, %v2347_v60  ;;  %v10207_v49 = vrot.slane %v1467_v36, %v9042_v14  ;;  %v3584_v38 = vcombine.low %v10190_v42, %v1434_v23  ;;  %v3585_v13 = vcombine.low %v1436_v29, %v1419_v53 }
 0x136   : > { %11624 = vst [vmem:[#allocation111_spill] sm:$0xff] %v10204_v22  ;;  %v10211_v39 = vrot.slane %v1468_v52, %v9042_v14  ;;  %v3586_v0 = vcombine.low %v1433_v9, %v1435_v11  ;;  %v3587_v51 = vcombine.low %v1437_v8, %v10177_v20  ;;  %v1497_v40 = vcombine.high %v10200_v16, %v10200_v16 }
 0x137   : > { %8444 = vmatmul.mubr.bf16.gmra.mxu1 %v2539_v32  ;;  %v3594_v58 = vrot.slane %v3584_v38, %v9042_v14  ;;  %v3601_v50 = vrot.slane %v3585_v13, %v9042_v14  ;;  %v3633_v36 = vcombine.low %v10204_v22, %v10207_v49  ;;  %v8172_v23 = vcombine.high %v10200_v16, %v10207_v49 }
 0x138   : > { %8447 = vmatprep.mubr.msk.bf16.mxu1 %vm8825_vm0, %v11541_v30  ;;  %v3608_v52 = vrot.slane %v3586_v0, %v9042_v14  ;;  %v3615_v60 = vrot.slane %v3587_v51, %v9042_v14  ;;  %v3635_v11 = vcombine.low %v1482_v41, %v10211_v39  ;;  %v8173_v33 = vcombine.high %v1482_v41, %v10211_v39 }
 0x139   : > { %v3616_v29 = vcombine.low %v3594_v58, %v3601_v50  ;;  %v3643_v8 = vrot.slane %v3633_v36, %v9042_v14  ;;  %v10230_v32 = vrot.slane %v8172_v23, %v9042_v14  ;;  %v1498_v38 = vcombine.high %v1482_v41, %v1482_v41 }
 0x13a   : > { %v3617_v13 = vcombine.low %v3608_v52, %v3615_v60  ;;  %v3657_v22 = vrot.slane %v3635_v11, %v9042_v14  ;;  %v3664_v46 = vrot.slane %v8173_v33, %v9042_v14  ;;  %v1499_v0 = vcombine.high %v10207_v49, %v10207_v49 }
 0x13b   : > { %11625 = vst [vmem:[#allocation112_spill] sm:$0xff] %v10230_v32  ;;  %v3624_v51 = vrot.slane %v3616_v29, %v9042_v14  ;;  %v3665_v3 = vcombine.low %v3643_v8, %v10230_v32  ;;  %v2397_v58 = vcombine.low %v10182_v18, %v10190_v42  ;;  %v8154_v50 = vcombine.high %v10182_v18, %v10190_v42 }
 0x13c   : > { %v3631_v36 = vrot.slane %v3617_v13, %v9042_v14  ;;  %v3666_v23 = vcombine.low %v3657_v22, %v3664_v46  ;;  %v2399_v52 = vcombine.low %v1419_v53, %v1433_v9  ;;  %v8155_v60 = vcombine.high %v1419_v53, %v1433_v9 }
 0x13d   : > { %v3673_v11 = vrot.slane %v3665_v3, %v9042_v14  ;;  %v2407_v33 = vrot.slane %v2397_v58, %v9042_v14  ;;  %v10246_v54 = vrot.slane %v8154_v50, %v9042_v14  ;;  %v2446_v29 = vcombine.low %v10177_v20, %v10200_v16  ;;  %v8137_v58 = vld.sshfl [vmem:[#allocation2 + $0x128] sm:$0x11 pattern:$0x75316420] }
 0x13e   : > { %v10250_v8 = vcombine.low %v3624_v51, %v3631_v36  ;;  %v10253_v32 = vrot.slane %v3666_v23, %v9042_v14  ;;  %v10256_v13 = vrot.slane %v2399_v52, %v9042_v14  ;;  %v10259_v46 = vrot.slane %v8155_v60, %v9042_v14 }
 0x13f   : > { %v2429_v3 = vcombine.low %v2407_v33, %v10246_v54  ;;  %v2447_v53 = vcombine.low %v10207_v49, %v1497_v40  ;;  %v2448_v9 = vcombine.low %v1499_v0, %v1482_v41  ;;  %v2449_v22 = vcombine.low %v10211_v39, %v1498_v38 }
 0x140   : > { %11626 = vst [vmem:[#allocation113_spill] sm:$0xff] %v10250_v8  ;;  %11627 = vst [vmem:[#allocation114_spill] sm:$0xff] %v10253_v32  ;;  %v3681_v51 = vcombine.low %v3673_v11, %v10253_v32  ;;  %v2430_v50 = vcombine.low %v10256_v13, %v10259_v46  ;;  %v2456_v36 = vrot.slane %v2446_v29, %v9042_v14 }
 0x141   : > { %v10269_v23 = vrot.slane %v8137_v58, %v9042_v14  ;;  %v2437_v52 = vrot.slane %v2429_v3, %v9042_v14  ;;  %v10273_v60 = vrot.slane %v2447_v53, %v9042_v14  ;;  %v10276_v40 = vrot.slane %v2448_v9, %v9042_v14 }
 0x142   : > { %v10279_v41 = vrot.slane %v2449_v22, %v9042_v14  ;;  %v3727_v38 = vpack.c.bf16 %v3681_v51, %v10250_v8  ;;  %v2444_v0 = vrot.slane %v2430_v50, %v9042_v14  ;;  %v2694_v11 = vcombine.high %v8137_v58, %v8137_v58 }
 0x143   : > { %v2478_v33 = vcombine.low %v2456_v36, %v10273_v60  ;;  %v1500_v3 = vcombine.high %v10211_v39, %v10211_v39  ;;  %v11628_v53 = vcombine.low %v9140_v1, %v9146_v5  ;;  %v11629_v9 = vcombine.low %v9275_v62, %v9256_v28 }
 0x144   : > { %v2479_v29 = vcombine.low %v10276_v40, %v10279_v41  ;;  %8388 = vmatmul.mubr.bf16.gmra.mxu0 %v3727_v38  ;;  %v2445_v51 = vcombine.low %v2437_v52, %v2444_v0  ;;  %v10297_v58 = vrot.slane %v2694_v11, %v9042_v14  ;;  %v11630_v50 = vcombine.low %v9149_v6, %v9152_v7 }
 0x145   : > { %v10294_v22 = vpack.c.bf16 %v11629_v9, %v11628_v53  ;;  %v2486_v39 = vrot.slane %v2478_v33, %v9042_v14  ;;  %8391 = vmatprep.mubr.msk.bf16.mxu0 %vm8825_vm0, %v11541_v30  ;;  %v2495_v1 = vcombine.low %v1500_v3, %v10269_v23  ;;  %v11631_v5 = vcombine.low %v9158_v12, %v9271_v57  ;;  %v11672_v3 = vld [vmem:[#allocation54_spill] sm:$0xff] }
 0x146   : > { %v4857_v36 = vrot.slane %v11630_v50, %v9042_v14  ;;  %v2493_v32 = vrot.slane %v2479_v29, %v9042_v14  ;;  %v3682_v62 = vcombine.low %v10269_v23, %v10297_v58  ;;  %v11632_v6 = vcombine.low %v9322_v44, %v9278_v63 }
 0x147   : > { %v4864_v28 = vrot.slane %v11631_v5, %v9042_v14  ;;  %v11633_v52 = vcombine.low %v9281_v24, %v9296_v17  ;;  %v10323_v11 = vrot.slane %v2495_v1, %v9042_v14  ;;  %v4246_v12 = vcombine.low %v9199_v48, %v9211_v59  ;;  %v11636_v5 = vld [vmem:[#allocation23_spill] sm:$0xff] }
 0x148   : > { %v4882_v7 = vrot.slane %v11632_v6, %v9042_v14  ;;  %v2494_v0 = vcombine.low %v2486_v39, %v2493_v32  ;;  %v3689_v57 = vrot.slane %v3682_v62, %v9042_v14  ;;  %v4263_v63 = vcombine.low %v9317_v37, %v9339_v4  ;;  %v11634_v39 = vld [vmem:[#allocation16_spill] sm:$0xff]  ;;  %v11639_v6 = vld [vmem:[#allocation26_spill] sm:$0xff] }
 0x149   : > { %v4889_v38 = vrot.slane %v11633_v52, %v9042_v14  ;;  %v4865_v33 = vcombine.low %v4857_v36, %v4864_v28  ;;  %v4253_v24 = vrot.slane %v4246_v12, %v9042_v14  ;;  %v4891_v48 = vcombine.low %v9175_v27, %v9219_v2  ;;  %v10349_v36 = vpop.f32.mrf.mxu0  ;;  %v11637_v28 = vld [vmem:[#allocation22_spill] sm:$0xff]  ;;  %v11638_v62 = vld [vmem:[#allocation28_spill] sm:$0xff] }
 0x14a   : > { %v2540_v44 = vpack.c.bf16 %v2494_v0, %v2445_v51  ;;  %v3696_v17 = vrot.slane %v3689_v57, %v9042_v14  ;;  %v4270_v53 = vrot.slane %v4263_v63, %v9042_v14  ;;  %v2509_v59 = vrot.slane %v10323_v11, %v9042_v14  ;;  %v11641_v0 = vld [vmem:[#allocation17_spill] sm:$0xff] }
 0x14b   : > { %v4890_v29 = vcombine.low %v4882_v7, %v4889_v38  ;;  %v4916_v37 = vcombine.low %v9362_v55, %v9349_v25  ;;  %v4254_v9 = vcombine.low %v9238_v21, %v4253_v24  ;;  %v4898_v51 = vrot.slane %v4891_v48, %v9042_v14  ;;  %v11635_v55 = vld [vmem:[#allocation14_spill] sm:$0xff]  ;;  %v8353_v52 = vpop.f32.mrf.mxu0  ;;  %v11644_v48 = vld [vmem:[#allocation29_spill] sm:$0xff] }
 0x14c   : > { %8448 = vmatmul.mubr.bf16.gmra.mxu1 %v2540_v44  ;;  %v3728_v4 = vpack.c.bf16 %v3696_v17, %v3696_v17  ;;  %v4900_v50 = vcombine.low %v9305_v26, %v9413_v43  ;;  %v4271_v27 = vcombine.low %v9376_v15, %v4270_v53  ;;  %v4280_v25 = vcombine.low %v11634_v39, %v9357_v56  ;;  %v11640_v15 = vld [vmem:[#allocation21_spill] sm:$0xff]  ;;  %v11642_v56 = vld [vmem:[#allocation15_spill] sm:$0xff]  ;;  %v11643_v24 = vld [vmem:[#allocation18_spill] sm:$0xff] }
 0x14d   : > { %v10334_v32 = vpack.c.bf16 %v4890_v29, %v4865_v33  ;;  %8451 = vmatprep.mubr.msk.bf16.mxu1 %vm8825_vm0, %v11541_v30  ;;  %v4923_v2 = vrot.slane %v4916_v37, %v9042_v14  ;;  %v4899_v1 = vcombine.low %v4898_v51, %v11635_v55  ;;  %v4925_v21 = vcombine.low %v11637_v28, %v11636_v5  ;;  %v10369_v63 = vpop.f32.mrf.mxu0  ;;  %v11647_v39 = vld [vmem:[#allocation37_spill] sm:$0xff] }
 0x14e   : > { %8392 = vmatmul.mubr.bf16.gmra.mxu0 %v3728_v4  ;;  %v4297_v7 = vcombine.low %v11639_v6, %v11638_v62  ;;  %v2541_v26 = vpack.c.bf16 %v2509_v59, %v2509_v59  ;;  %v4287_v38 = vrot.slane %v4280_v25, %v9042_v14  ;;  %v4941_v33 = vcombine.low %v11642_v56, %v11641_v0  ;;  %v11645_v59 = vld [vmem:[#allocation30_spill] sm:$0xff]  ;;  %v10376_v4 = vpop.f32.mrf.mxu1  ;;  %v11648_v25 = vld [vmem:[#allocation25_spill] sm:$0xff]  ;;  %v11649_v62 = vld [vmem:[#allocation24_spill] sm:$0xff] }
 0x14f   : > { %8471 = vmatprep.mubr.msk.bf16.mxu0 %vm8825_vm0, %v11541_v30  ;;  %v4924_v43 = vcombine.low %v11640_v15, %v4923_v2  ;;  %v4261_v12 = vrot.slane %v4254_v9, %v9042_v14  ;;  %v4914_v57 = vrot.slane %v4900_v50, %v9042_v14  ;;  %v4278_v44 = vrot.slane %v4271_v27, %v9042_v14  ;;  %v11646_v50 = vld [vmem:[#allocation32_spill] sm:$0xff]  ;;  %v8354_v5 = vpop.f32.mrf.mxu0  ;;  %v11651_v15 = vld [vmem:[#allocation38_spill] sm:$0xff]  ;;  %v11653_v56 = vld [vmem:[#allocation13_spill] sm:$0xff] }
 0x150   : > { %v4304_v29 = vrot.slane %v4297_v7, %v9042_v14  ;;  %v4288_v17 = vcombine.low %v4287_v38, %v11643_v24  ;;  %v4948_v53 = vrot.slane %v4941_v33, %v9042_v14  ;;  %v4966_v37 = vcombine.low %v11645_v59, %v11644_v48  ;;  %v8413_v52 = vpop.f32.mrf.mxu1  ;;  %v11652_v0 = vld [vmem:[#allocation34_spill] sm:$0xff]  ;;  %v11655_v48 = vld [vmem:[#allocation19_spill] sm:$0xff] }
 0x151   : > { %v4907_v51 = vrot.slane %v4899_v1, %v9042_v14  ;;  %v4939_v9 = vrot.slane %v4925_v21, %v9042_v14  ;;  %v4950_v55 = vcombine.low %v11648_v25, %v11647_v39  ;;  %v4932_v27 = vrot.slane %v4924_v43, %v9042_v14  ;;  %v11650_v21 = vld [vmem:[#allocation39_spill] sm:$0xff]  ;;  %v323_v25 = vld [vmem:[#allocation2 + $0x90] sm:$0xff] }
 0x152   : > { %v4305_v2 = vcombine.low %v4304_v29, %v11646_v50  ;;  %v4295_v28 = vrot.slane %v4288_v17, %v9042_v14  ;;  %v4949_v6 = vcombine.low %v11649_v62, %v4948_v53  ;;  %v4973_v7 = vrot.slane %v4966_v37, %v9042_v14  ;;  %v11654_v29 = vld [vmem:[#allocation40_spill] sm:$0xff]  ;;  %v10398_v17 = vpop.f32.mrf.mxu1  ;;  %v10400_v53 = vld [vmem:[#allocation2 + $0x130] sm:$0xff]  ;;  %v11657_v39 = vld [vmem:[#allocation27_spill] sm:$0xff] }
 0x153   : > { %v4974_v38 = vcombine.low %v11651_v15, %v11650_v21  ;;  %v4331_v43 = vcombine.low %v9595_v10, %v9610_v34  ;;  %v4262_v33 = vcombine.low %v4261_v12, %v11653_v56  ;;  %v4279_v59 = vcombine.low %v4278_v44, %v11655_v48  ;;  %v11658_v62 = vld [vmem:[#allocation20_spill] sm:$0xff]  ;;  %v11659_v52 = vld [vmem:[#allocation35_spill] sm:$0xff] }
 0x154   : > { %8452 = vmatmul.mubr.bf16.gmra.mxu1 %v2541_v26  ;;  %v4312_v1 = vrot.slane %v4305_v2, %v9042_v14  ;;  %v4314_v26 = vcombine.low %v11652_v0, %v9497_v35  ;;  %v4975_v24 = vcombine.low %v4973_v7, %v11654_v29  ;;  %v4964_v37 = vrot.slane %v4950_v55, %v9042_v14  ;;  %v11656_v2 = vld [vmem:[#allocation31_spill] sm:$0xff]  ;;  %v8414_v44 = vpop.f32.mrf.mxu1  ;;  %v11663_v29 = vld [vmem:[#allocation45_spill] sm:$0xff]  ;;  %v11664_v48 = vld [vmem:[#allocation44_spill] sm:$0xff] }
 0x155   : > { %8531 = vmatprep.mubr.msk.bf16.mxu1 %vm8825_vm0, %v11541_v30  ;;  %v4338_v35 = vrot.slane %v4331_v43, %v9042_v14  ;;  %v4957_v10 = vrot.slane %v4949_v6, %v9042_v14  ;;  %v4982_v34 = vrot.slane %v4974_v38, %v9042_v14  ;;  %v4915_v5 = vcombine.low %v4907_v51, %v4914_v57  ;;  %v11660_v6 = vld [vmem:[#allocation33_spill] sm:$0xff]  ;;  %v11661_v38 = vld [vmem:[#allocation42_spill] sm:$0xff]  ;;  %v11666_v44 = vld [vmem:[#allocation47_spill] sm:$0xff] }
 0x156   : > { %8472 = vmatmul.mubr.bf16.vlgmr.msra.gmra.mxu0 %v10294_v22  ;;  %v4321_v50 = vrot.slane %v4314_v26, %v9042_v14  ;;  %v4989_v12 = vrot.slane %v4975_v24, %v9042_v14  ;;  %v4991_v22 = vcombine.low %v11657_v39, %v11656_v2  ;;  %v4940_v55 = vcombine.low %v4932_v27, %v4939_v9  ;;  %v11662_v26 = vld [vmem:[#allocation41_spill] sm:$0xff] }
 0x157   : > { %8475 = vmatprep.mubr.msk.bf16.mxu0 %vm8825_vm0, %v11541_v30  ;;  %v4296_v7 = vcombine.low %v11658_v62, %v4295_v28  ;;  %v4313_v21 = vcombine.low %v11659_v52, %v4312_v1  ;;  %v10418_v15 = vrot.slane %v10400_v53, %v9042_v14  ;;  %v4999_v43 = vcombine.low %v11662_v26, %v11661_v38  ;;  %v11667_v62 = vld [vmem:[#allocation55_spill] sm:$0xff] }
 0x158   : > { %v4322_v0 = vcombine.low %v11660_v6, %v4321_v50  ;;  %v4617_v56 = vpack.c.bf16 %v4279_v59, %v4262_v33  ;;  %v4339_v24 = vcombine.low %v11663_v29, %v4338_v35  ;;  %v5016_v57 = vcombine.low %v11664_v48, %v9621_v45  ;;  %v11665_v33 = vld [vmem:[#allocation48_spill] sm:$0xff] }
 0x159   : > { %v4086_v51 = vcombine.high %v323_v25, %v323_v25  ;;  %v4965_v9 = vcombine.low %v4957_v10, %v4964_v37  ;;  %v4990_v27 = vcombine.low %v4982_v34, %v4989_v12  ;;  %v4998_v28 = vrot.slane %v4991_v22, %v9042_v14  ;;  %v10441_v34 = vld.sshfl [vmem:[#allocation2 + $0x98] sm:$0x11 pattern:$0x75316420] }
 0x15a   : > { %v4093_v1 = vrot.slane %v323_v25, %v9042_v14  ;;  %v5418_v50 = vpack.c.bf16 %v4940_v55, %v4915_v5  ;;  %v4618_v2 = vpack.c.bf16 %v4313_v21, %v4296_v7  ;;  %v5024_v59 = vcombine.low %v11665_v33, %v9678_v61  ;;  %v11668_v7 = vld [vmem:[#allocation43_spill] sm:$0xff]  ;;  %v10452_v21 = vpop.f32.mrf.mxu0 }
 0x15b   : > { %v4100_v35 = vrot.slane %v4086_v51, %v9042_v14  ;;  %v10435_v45 = vrot.slane %v4322_v0, %v9042_v14  ;;  %v4346_v12 = vrot.slane %v4339_v24, %v9042_v14  ;;  %v5023_v39 = vrot.slane %v5016_v57, %v9042_v14  ;;  %v11669_v57 = vld [vmem:[#allocation36_spill] sm:$0xff] }
 0x15c   : > { %8532 = vmatmul.mubr.bf16.vlgmr.msra.gmra.mxu1 %v10334_v32  ;;  %v10438_v32 = vrot.slane %v4999_v43, %v9042_v14  ;;  %v4101_v37 = vcombine.high %v4093_v1, %v4093_v1  ;;  %v4109_v10 = vrot.slane %v4093_v1, %v9042_v14  ;;  %v5419_v25 = vpack.c.bf16 %v4990_v27, %v4965_v9  ;;  %v8357_v48 = vpop.f32.mrf.mxu0  ;;  %v11670_v1 = vld [vmem:[#allocation49_spill] sm:$0xff] }
 0x15d   : > { %8535 = vmatprep.mubr.msk.bf16.mxu1 %vm8825_vm0, %v11541_v30  ;;  %v4102_v22 = vcombine.high %v4100_v35, %v4100_v35  ;;  %v4116_v61 = vrot.slane %v4100_v35, %v9042_v14  ;;  %v5000_v5 = vcombine.low %v4998_v28, %v11666_v44  ;;  %v5041_v52 = vcombine.low %v11668_v7, %v11667_v62 }
 0x15e   : > { %8476 = vmatmul.mubr.bf16.gmra.mxu0 %v4617_v56  ;;  %v4123_v55 = vrot.slane %v4101_v37, %v9042_v14  ;;  %v10455_v6 = vrot.slane %v5024_v59, %v9042_v14  ;;  %v4131_v38 = vcombine.high %v4109_v10, %v4109_v10  ;;  %v4148_v26 = vrot.slane %v10441_v34, %v9042_v14 }
 0x15f   : > { %8479 = vmatprep.mubr.msk.bf16.mxu0 %vm8825_vm0, %v11541_v30  ;;  %v4130_v0 = vrot.slane %v4102_v22, %v9042_v14  ;;  %v4132_v29 = vcombine.high %v4116_v61, %v4116_v61  ;;  %v4330_v51 = vcombine.low %v11669_v57, %v10435_v45  ;;  %v5025_v33 = vcombine.low %v11670_v1, %v5023_v39  ;;  %v10466_v22 = vpop.f32.mrf.mxu0 }
 0x160   : > { %v4348_v43 = vcombine.low %v4109_v10, %v4123_v55  ;;  %v8192_v56 = vcombine.high %v4109_v10, %v4123_v55  ;;  %v4133_v24 = vcombine.high %v4123_v55, %v4123_v55  ;;  %v5048_v37 = vrot.slane %v5041_v52, %v9042_v14 }
 0x161   : > { %v4350_v9 = vcombine.low %v4116_v61, %v4130_v0  ;;  %v8193_v27 = vcombine.high %v4116_v61, %v4130_v0  ;;  %v4134_v28 = vcombine.high %v4130_v0, %v4130_v0  ;;  %v5066_v44 = vcombine.low %v4123_v55, %v4131_v38  ;;  %v8358_v57 = vpop.f32.mrf.mxu0  ;;  %v11673_v38 = vld [vmem:[#allocation51_spill] sm:$0xff] }
 0x162   : > { %v4358_v59 = vrot.slane %v4348_v43, %v9042_v14  ;;  %v4365_v35 = vrot.slane %v8192_v56, %v9042_v14  ;;  %v5067_v62 = vcombine.low %v4133_v24, %v4116_v61  ;;  %v5068_v48 = vcombine.low %v4130_v0, %v4132_v29  ;;  %v11675_v24 = vld [vmem:[#allocation53_spill] sm:$0xff] }
 0x163   : > { %v4372_v10 = vrot.slane %v4350_v9, %v9042_v14  ;;  %v4379_v45 = vrot.slane %v8193_v27, %v9042_v14  ;;  %v5069_v43 = vcombine.low %v4134_v28, %v4148_v26  ;;  %v5076_v52 = vrot.slane %v5066_v44, %v9042_v14  ;;  %v10488_v28 = vpop.f32.mrf.mxu1 }
 0x164   : > { %8536 = vmatmul.mubr.bf16.gmra.mxu1 %v5418_v50  ;;  %v11671_v50 = vld [vmem:[#allocation46_spill] sm:$0xff]  ;;  %v4380_v39 = vcombine.low %v4358_v59, %v4365_v35  ;;  %v5083_v1 = vrot.slane %v5067_v62, %v9042_v14  ;;  %v4397_v8 = vcombine.low %v4148_v26, %v11672_v3  ;;  %v5014_v55 = vrot.slane %v5000_v5, %v9042_v14  ;;  %v11676_v3 = vld [vmem:[#allocation63_spill] sm:$0xff] }
 0x165   : > { %8539 = vmatprep.mubr.msk.bf16.mxu1 %vm8825_vm0, %v11541_v30  ;;  %v4347_v7 = vcombine.low %v11671_v50, %v4346_v12  ;;  %v4381_v56 = vcombine.low %v4372_v10, %v4379_v45  ;;  %v5039_v61 = vrot.slane %v5025_v33, %v9042_v14  ;;  %v5090_v12 = vrot.slane %v5068_v48, %v9042_v14  ;;  %v11677_v35 = vld [vmem:[#allocation66_spill] sm:$0xff]  ;;  %v11678_v10 = vld [vmem:[#allocation61_spill] sm:$0xff]  ;;  %v8417_v50 = vpop.f32.mrf.mxu1 }
 0x166   : > { %8480 = vmatmul.mubr.bf16.gmra.mxu0 %v4618_v2  ;;  %v5097_v0 = vrot.slane %v5069_v43, %v9042_v14  ;;  %v11674_v2 = vld [vmem:[#allocation50_spill] sm:$0xff]  ;;  %v5050_v9 = vcombine.low %v11675_v24, %v5048_v37  ;;  %v4404_v27 = vrot.slane %v4397_v8, %v9042_v14  ;;  %v4414_v26 = vcombine.low %v11676_v3, %v9845_v47  ;;  %v11685_v24 = vld [vmem:[#allocation68_spill] sm:$0xff] }
 0x167   : > { %8483 = vmatprep.mubr.msk.bf16.mxu0 %vm8825_vm0, %v11541_v30  ;;  %v5049_v29 = vcombine.low %v11674_v2, %v11673_v38  ;;  %v4388_v5 = vrot.slane %v4380_v39, %v9042_v14  ;;  %v4395_v33 = vrot.slane %v4381_v56, %v9042_v14  ;;  %v4833_v59 = vcombine.high %v10441_v34, %v10441_v34  ;;  %v11679_v39 = vld [vmem:[#allocation57_spill] sm:$0xff]  ;;  %v11680_v56 = vld [vmem:[#allocation71_spill] sm:$0xff]  ;;  %v11687_v3 = vld [vmem:[#allocation80_spill] sm:$0xff] }
 0x168   : > { %v5140_v45 = vcombine.low %v11678_v10, %v11677_v35  ;;  %v4619_v44 = vpack.c.bf16 %v4347_v7, %v4330_v51  ;;  %v5098_v62 = vcombine.low %v5076_v52, %v5083_v1  ;;  %v5099_v37 = vcombine.low %v5090_v12, %v5097_v0  ;;  %v11682_v1 = vld [vmem:[#allocation56_spill] sm:$0xff]  ;;  %v11684_v0 = vld [vmem:[#allocation62_spill] sm:$0xff] }
 0x169   : > { %v4421_v8 = vrot.slane %v4414_v26, %v9042_v14  ;;  %v5015_v47 = vcombine.low %v10438_v32, %v5014_v55  ;;  %v5040_v48 = vcombine.low %v10455_v6, %v5039_v61  ;;  %v4405_v43 = vcombine.low %v4404_v27, %v11679_v39  ;;  %v10509_v32 = vpop.f32.mrf.mxu1  ;;  %v11683_v12 = vld [vmem:[#allocation64_spill] sm:$0xff]  ;;  %v11686_v27 = vld [vmem:[#allocation81_spill] sm:$0xff] }
 0x16a   : > { %v4840_v57 = vrot.slane %v4833_v59, %v9042_v14  ;;  %v4164_v34 = vcombine.high %v10418_v15, %v10418_v15  ;;  %v5057_v51 = vrot.slane %v5049_v29, %v9042_v14  ;;  %v5064_v7 = vrot.slane %v5050_v9, %v9042_v14  ;;  %v11690_v39 = vld [vmem:[#allocation52_spill] sm:$0xff] }
 0x16b   : > { %v4396_v6 = vcombine.low %v4388_v5, %v4395_v33  ;;  %v5147_v61 = vrot.slane %v5140_v45, %v9042_v14  ;;  %v4431_v38 = vcombine.low %v11684_v0, %v11683_v12  ;;  %v5106_v2 = vrot.slane %v5098_v62, %v9042_v14  ;;  %v8418_v59 = vpop.f32.mrf.mxu1 }
 0x16c   : > { %8540 = vmatmul.mubr.bf16.gmra.mxu1 %v5419_v25  ;;  %v11681_v25 = vld [vmem:[#allocation60_spill] sm:$0xff]  ;;  %v5115_v55 = vcombine.low %v4840_v57, %v11682_v1  ;;  %v5113_v29 = vrot.slane %v5099_v37, %v9042_v14  ;;  %v4422_v9 = vcombine.low %v11685_v24, %v4421_v8  ;;  %v4448_v26 = vcombine.low %v11687_v3, %v11686_v27  ;;  %v11688_v37 = vld [vmem:[#allocation65_spill] sm:$0xff]  ;;  %v11689_v8 = vld [vmem:[#allocation67_spill] sm:$0xff] }
 0x16d   : > { %8543 = vmatprep.mubr.msk.bf16.mxu1 %vm8825_vm0, %v11541_v30  ;;  %v5124_v52 = vcombine.low %v11681_v25, %v11680_v56  ;;  %v5420_v35 = vpack.c.bf16 %v5040_v48, %v5015_v47  ;;  %v4412_v5 = vrot.slane %v4405_v43, %v9042_v14  ;;  %v4438_v10 = vrot.slane %v4431_v38, %v9042_v14  ;;  %v11691_v48 = vld [vmem:[#allocation73_spill] sm:$0xff]  ;;  %v11692_v56 = vld [vmem:[#allocation75_spill] sm:$0xff]  ;;  %v11693_v25 = vld [vmem:[#allocation74_spill] sm:$0xff] }
 0x16e   : > { %8484 = vmatmul.mubr.bf16.gmra.mxu0 %v4619_v44  ;;  %v5122_v33 = vrot.slane %v5115_v55, %v9042_v14  ;;  %v5065_v45 = vcombine.low %v5057_v51, %v5064_v7  ;;  %v4455_v62 = vrot.slane %v4448_v26, %v9042_v14  ;;  %v5165_v50 = vcombine.low %v11689_v8, %v11688_v37  ;;  %v11694_v1 = vld [vmem:[#allocation82_spill] sm:$0xff]  ;;  %v11696_v7 = vld [vmem:[#allocation59_spill] sm:$0xff]  ;;  %v11698_v3 = vld [vmem:[#allocation69_spill] sm:$0xff] }
 0x16f   : > { %8487 = vmatprep.mubr.msk.bf16.mxu0 %vm8825_vm0, %v11541_v30  ;;  %v10526_v44 = vrot.slane %v5124_v52, %v9042_v14  ;;  %v4620_v47 = vpack.c.bf16 %v4396_v6, %v11690_v39  ;;  %v5148_v57 = vcombine.low %v5147_v61, %v11691_v48  ;;  %v5149_v43 = vcombine.low %v11693_v25, %v11692_v56  ;;  %v11695_v55 = vld [vmem:[#allocation78_spill] sm:$0xff]  ;;  %v11699_v26 = vld [vmem:[#allocation85_spill] sm:$0xff]  ;;  %v11703_v8 = vld [vmem:[#allocation91_spill] sm:$0xff] }
 0x170   : > { %v5190_v12 = vcombine.low %v11695_v55, %v11694_v1  ;;  %v5114_v0 = vcombine.low %v5106_v2, %v5113_v29  ;;  %v4429_v51 = vrot.slane %v4422_v9, %v9042_v14  ;;  %v5123_v52 = vcombine.low %v5122_v33, %v11696_v7  ;;  %v11697_v24 = vld [vmem:[#allocation58_spill] sm:$0xff]  ;;  %v11700_v37 = vld [vmem:[#allocation89_spill] sm:$0xff]  ;;  %v11702_v9 = vld [vmem:[#allocation92_spill] sm:$0xff]  ;;  %v10558_v55 = vpop.f32.mrf.mxu0 }
 0x171   : > { %v5172_v38 = vrot.slane %v5165_v50, %v9042_v14  ;;  %v4413_v27 = vcombine.low %v4412_v5, %v11697_v24  ;;  %v4439_v6 = vcombine.low %v11698_v3, %v4438_v10  ;;  %v4456_v61 = vcombine.low %v4455_v62, %v11699_v26  ;;  %v11701_v2 = vld [vmem:[#allocation77_spill] sm:$0xff]  ;;  %v11704_v50 = vld [vmem:[#allocation79_spill] sm:$0xff]  ;;  %v11706_v48 = vld [vmem:[#allocation76_spill] sm:$0xff] }
 0x172   : > { %v5197_v59 = vrot.slane %v5190_v12, %v9042_v14  ;;  %v5174_v29 = vcombine.low %v11701_v2, %v11700_v37  ;;  %v5199_v33 = vcombine.low %v11703_v8, %v11702_v9  ;;  %v11705_v5 = vld [vmem:[#allocation97_spill] sm:$0xff]  ;;  %v5156_v10 = vrot.slane %v5148_v57, %v9042_v14  ;;  %v11707_v25 = vld [vmem:[#allocation90_spill] sm:$0xff]  ;;  %v11710_v26 = vld [vmem:[#allocation83_spill] sm:$0xff] }
 0x173   : > { %v4482_v39 = vcombine.low %v11705_v5, %v10093_v19  ;;  %v5163_v62 = vrot.slane %v5149_v43, %v9042_v14  ;;  %v5173_v56 = vcombine.low %v11706_v48, %v5172_v38  ;;  %v11708_v12 = vld [vmem:[#allocation70_spill] sm:$0xff]  ;;  %v5131_v24 = vrot.slane %v5123_v52, %v9042_v14  ;;  %v11709_v38 = vld [vmem:[#allocation84_spill] sm:$0xff] }
 0x174   : > { %8544 = vmatmul.mubr.bf16.gmra.mxu1 %v5420_v35  ;;  %v4465_v35 = vcombine.low %v11704_v50, %v9979_v31  ;;  %v5198_v1 = vcombine.low %v11707_v25, %v5197_v59  ;;  %v4430_v7 = vcombine.low %v4429_v51, %v11708_v12  ;;  %v5421_v19 = vpack.c.bf16 %v5114_v0, %v5065_v45  ;;  %v11711_v37 = vld [vmem:[#allocation86_spill] sm:$0xff]  ;;  %v11712_v9 = vld [vmem:[#allocation100_spill] sm:$0xff] }
 0x175   : > { %8547 = vmatprep.mubr.msk.bf16.mxu1 %vm8825_vm0, %v11541_v30  ;;  %v4489_v3 = vrot.slane %v4482_v39, %v9042_v14  ;;  %v4446_v57 = vrot.slane %v4439_v6, %v9042_v14  ;;  %v4463_v43 = vrot.slane %v4456_v61, %v9042_v14  ;;  %v5215_v59 = vcombine.low %v11710_v26, %v11709_v38  ;;  %v11713_v50 = vld [vmem:[#allocation98_spill] sm:$0xff]  ;;  %v11714_v61 = vld [vmem:[#allocation95_spill] sm:$0xff]  ;;  %v11716_v12 = vld [vmem:[#allocation72_spill] sm:$0xff] }
 0x176   : > { %8488 = vmatmul.mubr.bf16.gmra.mxu0 %v4620_v47  ;;  %v4472_v31 = vrot.slane %v4465_v35, %v9042_v14  ;;  %v8361_v47 = vpop.f32.mrf.mxu0  ;;  %v5188_v51 = vrot.slane %v5174_v29, %v9042_v14  ;;  %v5213_v52 = vrot.slane %v5199_v33, %v9042_v14  ;;  %v5181_v45 = vrot.slane %v5173_v56, %v9042_v14  ;;  %v11715_v33 = vld [vmem:[#allocation96_spill] sm:$0xff]  ;;  %v11717_v56 = vld [vmem:[#allocation87_spill] sm:$0xff]  ;;  %v11719_v38 = vld [vmem:[#allocation93_spill] sm:$0xff] }
 0x177   : > { %8491 = vmatprep.mubr.msk.bf16.mxu0 %vm8825_vm0, %v11541_v30  ;;  %v4490_v8 = vcombine.low %v11712_v9, %v4489_v3  ;;  %v5206_v0 = vrot.slane %v5198_v1, %v9042_v14  ;;  %v5222_v6 = vrot.slane %v5215_v59, %v9042_v14  ;;  %v5240_v35 = vcombine.low %v11714_v61, %v11713_v50  ;;  %v11718_v1 = vld [vmem:[#allocation94_spill] sm:$0xff]  ;;  %v11723_v9 = vld [vmem:[#allocation104_spill] sm:$0xff] }
 0x178   : > { %v4473_v2 = vcombine.low %v4472_v31, %v11711_v37  ;;  %v10579_v5 = vpop.f32.mrf.mxu0  ;;  %v4621_v39 = vpack.c.bf16 %v4430_v7, %v4413_v27  ;;  %v5139_v29 = vcombine.low %v5131_v24, %v10526_v44  ;;  %v5164_v48 = vcombine.low %v5156_v10, %v5163_v62  ;;  %v11720_v10 = vld [vmem:[#allocation99_spill] sm:$0xff]  ;;  %v11722_v37 = vld [vmem:[#allocation106_spill] sm:$0xff] }
 0x179   : > { %v4499_v25 = vcombine.low %v11715_v33, %v10182_v18  ;;  %v4447_v31 = vcombine.low %v4446_v57, %v11716_v12  ;;  %v4464_v3 = vcombine.low %v11717_v56, %v4463_v43  ;;  %v5223_v26 = vcombine.low %v11719_v38, %v11718_v1  ;;  %v10602_v43 = vpop.f32.mrf.mxu1  ;;  %v11729_v1 = vld [vmem:[#allocation101_spill] sm:$0xff] }
 0x17a   : > { %v5247_v59 = vrot.slane %v5240_v35, %v9042_v14  ;;  %v8362_v47 = vpop.f32.mrf.mxu0  ;;  %v10593_v44 = vrot.slane %v4164_v34, %v9042_v14  ;;  %v4480_v18 = vrot.slane %v4473_v2, %v9042_v14  ;;  %v4497_v27 = vrot.slane %v4490_v8, %v9042_v14  ;;  %v11726_v35 = vld [vmem:[#allocation102_spill] sm:$0xff] }
 0x17b   : > { %v5265_v62 = vcombine.low %v11720_v10, %v10190_v42  ;;  %v5189_v7 = vcombine.low %v5181_v45, %v5188_v51  ;;  %v5214_v24 = vcombine.low %v5206_v0, %v5213_v52  ;;  %v5248_v50 = vcombine.low %v11723_v9, %v11722_v37  ;;  %v11724_v52 = vld [vmem:[#allocation107_spill] sm:$0xff]  ;;  %v11725_v0 = vld [vmem:[#allocation88_spill] sm:$0xff] }
 0x17c   : > { %8548 = vmatmul.mubr.bf16.gmra.mxu1 %v5421_v19  ;;  %v11721_v19 = vld [vmem:[#allocation103_spill] sm:$0xff]  ;;  %v5332_v34 = vcombine.low %v10297_v58, %v10593_v44  ;;  %v4506_v2 = vrot.slane %v4499_v25, %v9042_v14  ;;  %v5298_v8 = vcombine.low %v10246_v54, %v10256_v13  ;;  %v5422_v61 = vpack.c.bf16 %v5164_v48, %v5139_v29  ;;  %v8421_v58 = vpop.f32.mrf.mxu1  ;;  %v11727_v48 = vld [vmem:[#allocation109_spill] sm:$0xff]  ;;  %v11728_v25 = vld [vmem:[#allocation108_spill] sm:$0xff] }
 0x17d   : > { %8551 = vmatprep.mubr.msk.bf16.mxu1 %vm8825_vm0, %v11541_v30  ;;  %v5224_v57 = vcombine.low %v5222_v6, %v11721_v19  ;;  %v4622_v42 = vpack.c.bf16 %v4464_v3, %v4447_v31  ;;  %v10614_v51 = vrot.slane %v5223_v26, %v9042_v14  ;;  %v5249_v45 = vcombine.low %v5247_v59, %v11724_v52  ;;  %v11730_v47 = vld [vmem:[#allocation111_spill] sm:$0xff] }
 0x17e   : > { %8492 = vmatmul.mubr.bf16.gmra.mxu0 %v4621_v39  ;;  %v4481_v6 = vcombine.low %v11725_v0, %v4480_v18  ;;  %v4498_v39 = vcombine.low %v11726_v35, %v4497_v27  ;;  %v5272_v33 = vrot.slane %v5265_v62, %v9042_v14  ;;  %v4149_v54 = vcombine.high %v10400_v53, %v10400_v53  ;;  %v10629_v56 = vpop.f32.mrf.mxu1 }
 0x17f   : > { %8495 = vmatprep.mubr.msk.bf16.mxu0 %vm8825_vm0, %v11541_v30  ;;  %v5423_v13 = vpack.c.bf16 %v5214_v24, %v5189_v7  ;;  %v10623_v29 = vrot.slane %v5224_v57, %v9042_v14  ;;  %v5273_v12 = vcombine.low %v11728_v25, %v11727_v48  ;;  %v4172_v31 = vrot.slane %v10418_v15, %v9042_v14  ;;  %v11731_v7 = vld [vmem:[#allocation110_spill] sm:$0xff] }
 0x180   : > { %v5256_v3 = vrot.slane %v5248_v50, %v9042_v14  ;;  %v4507_v38 = vcombine.low %v11729_v1, %v4506_v2  ;;  %v4163_v26 = vrot.slane %v4149_v54, %v9042_v14  ;;  %v4196_v53 = vcombine.high %v10593_v44, %v10593_v44  ;;  %v8422_v10 = vpop.f32.mrf.mxu1 }
 0x181   : > { %v5263_v59 = vrot.slane %v5249_v45, %v9042_v14  ;;  %v5290_v18 = vcombine.low %v10177_v20, %v11730_v47  ;;  %v4194_v27 = vcombine.high %v4172_v31, %v4172_v31  ;;  %v4516_v15 = vcombine.low %v10200_v16, %v10207_v49 }
 0x182   : > { %v4623_v62 = vpack.c.bf16 %v4498_v39, %v4481_v6  ;;  %v5274_v24 = vcombine.low %v11731_v7, %v5272_v33  ;;  %v4165_v19 = vcombine.high %v4163_v26, %v4163_v26  ;;  %v4179_v57 = vrot.slane %v4163_v26, %v9042_v14 }
 0x183   : > { %v5239_v37 = vcombine.low %v10614_v51, %v10623_v29  ;;  %v10648_v9 = vrot.slane %v5273_v12, %v9042_v14  ;;  %v4533_v20 = vcombine.low %v10269_v23, %v4172_v31  ;;  %v4534_v49 = vcombine.low %v10593_v44, %v4194_v27  ;;  %v3852_v12 = vpop.f32.mrf.mxu0 }
 0x184   : > { %8552 = vmatmul.mubr.bf16.gmra.mxu1 %v5422_v61  ;;  %v4514_v16 = vrot.slane %v4507_v38, %v9042_v14  ;;  %v10654_v50 = vrot.slane %v4165_v19, %v9042_v14  ;;  %v4195_v2 = vcombine.high %v4179_v57, %v4179_v57  ;;  %v4535_v61 = vcombine.low %v4196_v53, %v4179_v57  ;;  %v11735_v19 = vld [vmem:[#allocation113_spill] sm:$0xff] }
 0x185   : > { %8555 = vmatprep.mubr.msk.bf16.mxu1 %vm8825_vm0, %v11541_v30  ;;  %v5264_v52 = vcombine.low %v5256_v3, %v5263_v59  ;;  %v5297_v51 = vrot.slane %v5290_v18, %v9042_v14  ;;  %v10660_v45 = vrot.slane %v5298_v8, %v9042_v14  ;;  %v4523_v23 = vrot.slane %v4516_v15, %v9042_v14  ;;  %v8365_v59 = vpop.f32.mrf.mxu0 }
 0x186   : > { %8496 = vmatmul.mubr.bf16.gmra.mxu0 %v4622_v42  ;;  %v10664_v42 = vrot.slane %v5274_v24, %v9042_v14  ;;  %v4536_v58 = vcombine.low %v10654_v50, %v4195_v2  ;;  %v5315_v0 = vcombine.low %v10273_v60, %v10276_v40  ;;  %v8202_v6 = vcombine.high %v4172_v31, %v10593_v44  ;;  %v11732_v60 = vld [vmem:[#allocation105_spill] sm:$0xff]  ;;  %v11733_v31 = vld [vmem:[#allocation112_spill] sm:$0xff] }
 0x187   : > { %8499 = vmatprep.mubr.msk.bf16.mxu0 %vm8825_vm0, %v11541_v30  ;;  %v4543_v35 = vrot.slane %v4533_v20, %v9042_v14  ;;  %v4550_v39 = vrot.slane %v4534_v49, %v9042_v14  ;;  %v4557_v33 = vrot.slane %v4535_v61, %v9042_v14  ;;  %v5334_v8 = vcombine.low %v4179_v57, %v10654_v50  ;;  %v3855_v7 = vpop.f32.mrf.mxu0 }
 0x188   : > { %v4564_v54 = vrot.slane %v4536_v58, %v9042_v14  ;;  %v8203_v29 = vcombine.high %v4179_v57, %v10654_v50  ;;  %v5342_v48 = vrot.slane %v5332_v34, %v9042_v14  ;;  %v5349_v25 = vrot.slane %v8202_v6, %v9042_v14 }
 0x189   : > { %v4515_v40 = vcombine.low %v11732_v60, %v4514_v16  ;;  %v5299_v44 = vcombine.low %v10259_v46, %v5297_v51  ;;  %v4524_v3 = vcombine.low %v4523_v23, %v11733_v31  ;;  %v5356_v1 = vrot.slane %v5334_v8, %v9042_v14  ;;  %v8366_v24 = vpop.f32.mrf.mxu0  ;;  %v11736_v51 = vld [vmem:[#allocation114_spill] sm:$0xff] }
 0x18a   : > { %v5323_v38 = vrot.slane %v5315_v0, %v9042_v14  ;;  %v11734_v34 = vcombine.low %v10279_v41, %v10323_v11  ;;  %v5364_v53 = vcombine.low %v5342_v48, %v5349_v25  ;;  %v4565_v47 = vcombine.low %v4543_v35, %v4550_v39 }
 0x18b   : > { %v10692_v46 = vadd.f32 %v10376_v4, %v10349_v36  ;;  %v10696_v18 = vadd.f32 %v10398_v17, %v10369_v63  ;;  %v10700_v27 = vadd.f32 %v10488_v28, %v10452_v21  ;;  %v5424_v41 = vpack.c.bf16 %v5264_v52, %v5239_v37  ;;  %v8191_v4 = vld.sshfl [vmem:[#allocation2 + $0x138] sm:$0x11 pattern:$0x75316420] }
 0x18c   : > { %8556 = vmatmul.mubr.bf16.gmra.mxu1 %v5423_v13  ;;  %v5330_v26 = vrot.slane %v11734_v34, %v9042_v14  ;;  %v5363_v13 = vrot.slane %v8203_v29, %v9042_v14  ;;  %v4566_v11 = vcombine.low %v4557_v33, %v4564_v54  ;;  %v5372_v10 = vrot.slane %v5364_v53, %v9042_v14 }
 0x18d   : > { %8559 = vmatprep.mubr.msk.bf16.mxu1 %vm8825_vm0, %v11541_v30  ;;  %v5313_v36 = vrot.slane %v5299_v44, %v9042_v14  ;;  %v10708_v63 = vadd.f32 %v10509_v32, %v10466_v22  ;;  %v10712_v17 = vadd.f32 %v10602_v43, %v10558_v55  ;;  %v10716_v21 = vadd.f32 %v10629_v56, %v10579_v5  ;;  %v4020_v5 = vpop.f32.mrf.mxu1 }
 0x18e   : > { %8500 = vmatmul.mubr.bf16.gmra.mxu0 %v4623_v62  ;;  %v5365_v15 = vcombine.low %v5356_v1, %v5363_v13  ;;  %v5331_v28 = vcombine.low %v5323_v38, %v5330_v26  ;;  %v4624_v57 = vpack.c.bf16 %v11735_v19, %v4515_v40  ;;  %v4531_v37 = vrot.slane %v4524_v3, %v9042_v14 }
 0x18f   : > { %8503 = vmatprep.mubr.msk.bf16.mxu0 %vm8825_vm0, %v11541_v30  ;;  %v4573_v20 = vrot.slane %v4565_v47, %v9042_v14  ;;  %v4580_v22 = vrot.slane %v4566_v11, %v9042_v14  ;;  %v4197_v55 = vcombine.high %v10654_v50, %v10654_v50  ;;  %v4211_v43 = vrot.slane %v8191_v4, %v9042_v14  ;;  %v8425_v52 = vpop.f32.mrf.mxu1 }
 0x190   : > { %v5379_v62 = vrot.slane %v5365_v15, %v9042_v14  ;;  %v5289_v56 = vcombine.low %v10648_v9, %v10664_v42  ;;  %v5314_v49 = vcombine.low %v10660_v45, %v5313_v36  ;;  %v4841_v16 = vcombine.high %v8191_v4, %v8191_v4 }
 0x191   : > { %v10729_v2 = vadd.f32 %v4020_v5, %v3852_v12  ;;  %v4532_v50 = vcombine.low %v4531_v37, %v11736_v51  ;;  %v4581_v23 = vcombine.low %v4573_v20, %v4580_v22  ;;  %v4582_v58 = vcombine.low %v4197_v55, %v4211_v43  ;;  %v4023_v0 = vpop.f32.mrf.mxu1 }
 0x192   : > { %v5380_v32 = vcombine.low %v5372_v10, %v5379_v62  ;;  %v5425_v6 = vpack.c.bf16 %v5314_v49, %v5289_v56  ;;  %v4848_v9 = vrot.slane %v4841_v16, %v9042_v14  ;;  %v10737_v45 = vadd.f32 %v4023_v0, %v3855_v7 }
 0x193   : > { %v8426_v42 = vpop.f32.mrf.mxu1  ;;  %v4625_v35 = vpack.c.bf16 %v4581_v23, %v4532_v50  ;;  %v4589_v39 = vrot.slane %v4582_v58, %v9042_v14 }
 0x194   : > { %8560 = vmatmul.mubr.bf16.gmra.mxu1 %v5424_v41  ;;  %v5426_v61 = vpack.c.bf16 %v5380_v32, %v5331_v28  ;;  %v5381_v33 = vcombine.low %v4211_v43, %v4848_v9 }
 0x195   : > { %8563 = vmatprep.mubr.msk.bf16.mxu1 %vm8825_vm0, %v11541_v30  ;;  %v4596_v8 = vrot.slane %v4589_v39, %v9042_v14 }
 0x196   : > { %8504 = vmatmul.mubr.bf16.gmra.mxu0 %v4624_v57  ;;  %v5388_v54 = vrot.slane %v5381_v33, %v9042_v14 }
 0x197   : > { %8507 = vmatprep.mubr.msk.bf16.mxu0 %vm8825_vm0, %v11541_v30  ;;  %v4626_v48 = vpack.c.bf16 %v4596_v8, %v4596_v8 }
 0x198   : > { %v5395_v12 = vrot.slane %v5388_v54, %v9042_v14 }
 0x19a   : > { %v5427_v31 = vpack.c.bf16 %v5395_v12, %v5395_v12 }
 0x19b   : > { %v3860_v29 = vpop.f32.mrf.mxu0 }
 0x19c   : > { %8564 = vmatmul.mubr.bf16.gmra.mxu1 %v5425_v6 }
 0x19d   : > { %8567 = vmatprep.mubr.msk.bf16.mxu1 %vm8825_vm0, %v11541_v30  ;;  %v8369_v25 = vpop.f32.mrf.mxu0 }
 0x19e   : > { %8508 = vmatmul.mubr.bf16.gmra.mxu0 %v4625_v35 }
 0x19f   : > { %8511 = vmatprep.mubr.msk.bf16.mxu0 %vm8825_vm0, %v11541_v30  ;;  %v3863_v60 = vpop.f32.mrf.mxu0 }
 0x1a1   : > { %v8370_v44 = vpop.f32.mrf.mxu0 }
 0x1a2   : > { %v4028_v40 = vpop.f32.mrf.mxu1 }
 0x1a3   : > { %v10749_v3 = vadd.f32 %v4028_v40, %v3860_v29 }
 0x1a4   : > { %8568 = vmatmul.mubr.bf16.gmra.mxu1 %v5426_v61  ;;  %v8429_v1 = vpop.f32.mrf.mxu1 }
 0x1a5   : > { %8571 = vmatprep.mubr.msk.bf16.mxu1 %vm8825_vm0, %v11541_v30 }
 0x1a6   : > { %8512 = vmatmul.mubr.bf16.gmra.mxu0 %v4626_v48  ;;  %v4031_v38 = vpop.f32.mrf.mxu1 }
 0x1a7   : > { %v10751_v34 = vadd.f32 %v4031_v38, %v3863_v60 }
 0x1a8   : > { %v8430_v26 = vpop.f32.mrf.mxu1 }
 0x1ac   : > { %8572 = vmatmul.mubr.bf16.gmra.mxu1 %v5427_v31 }
 0x1ae   : > { %v3868_v13 = vpop.f32.mrf.mxu0 }
 0x1b0   : > { %v8373_v53 = vpop.f32.mrf.mxu0 }
 0x1b2   : > { %v3871_v59 = vpop.f32.mrf.mxu0 }
 0x1b4   : > { %v8374_v47 = vpop.f32.mrf.mxu0 }
 0x1b5   : > { %v4036_v41 = vpop.f32.mrf.mxu1 }
 0x1b6   : > { %v10753_v11 = vadd.f32 %v4036_v41, %v3868_v13 }
 0x1b7   : > { %v8433_v30 = vpop.f32.mrf.mxu1 }
 0x1b9   : > { %v4039_v15 = vpop.f32.mrf.mxu1 }
 0x1ba   : > { %v10755_v10 = vadd.f32 %v4039_v15, %v3871_v59 }
 0x1bb   : > { %v8434_v7 = vpop.f32.mrf.mxu1 }
 0x1c3   : > { %v3876_v36 = vpop.f32.mrf.mxu0 }
 0x1c5   : > { %v8377_v4 = vpop.f32.mrf.mxu0 }
 0x1c7   : > { %v3879_v28 = vpop.f32.mrf.mxu0 }
 0x1c9   : > { %v8378_v62 = vpop.f32.mrf.mxu0 }
 0x1cc   : > { %v4044_v24 = vpop.f32.mrf.mxu1 }
 0x1cd   : > { %v10757_v19 = vadd.f32 %v4044_v24, %v3876_v36 }
 0x1ce   : > { %v8437_v57 = vpop.f32.mrf.mxu1 }
 0x1d0   : > { %v4047_v37 = vpop.f32.mrf.mxu1 }
 0x1d1   : > { %v10759_v20 = vadd.f32 %v4047_v37, %v3879_v28 }
 0x1d2   : > { %v8438_v22 = vpop.f32.mrf.mxu1 }
 0x1d9   : > { %v3884_v32 = vpop.f32.mrf.mxu0 }
 0x1db   : > { %v8381_v55 = vpop.f32.mrf.mxu0 }
 0x1dd   : > { %v3887_v43 = vpop.f32.mrf.mxu0 }
 0x1df   : > { %v8382_v5 = vpop.f32.mrf.mxu0 }
 0x1e1   : > { %v4052_v56 = vpop.f32.mrf.mxu1 }
 0x1e2   : > { %v10761_v49 = vadd.f32 %v4052_v56, %v3884_v32 }
 0x1e3   : > { %v8441_v16 = vpop.f32.mrf.mxu1 }
 0x1e5   : > { %v4055_v61 = vpop.f32.mrf.mxu1 }
 0x1e6   : > { %v10763_v52 = vadd.f32 %v4055_v61, %v3887_v43 }
 0x1e7   : > { %v8442_v51 = vpop.f32.mrf.mxu1 }
 0x1ef   : > { %v3892_v50 = vpop.f32.mrf.mxu0 }
 0x1f1   : > { %v8385_v23 = vpop.f32.mrf.mxu0 }
 0x1f3   : > { %v3895_v58 = vpop.f32.mrf.mxu0 }
 0x1f5   : > { %v8386_v0 = vpop.f32.mrf.mxu0 }
 0x1f7   : > { %v4060_v6 = vpop.f32.mrf.mxu1 }
 0x1f8   : > { %v10765_v9 = vadd.f32 %v4060_v6, %v3892_v50 }
 0x1f9   : > { %v8445_v42 = vpop.f32.mrf.mxu1 }
 0x1fb   : > { %v4063_v35 = vpop.f32.mrf.mxu1 }
 0x1fc   : > { %v10767_v39 = vadd.f32 %v4063_v35, %v3895_v58 }
 0x1fd   : > { %v8446_v33 = vpop.f32.mrf.mxu1 }
 0x204   : > { %v3900_v8 = vpop.f32.mrf.mxu0 }
 0x206   : > { %v8389_v54 = vpop.f32.mrf.mxu0 }
 0x208   : > { %v3903_v29 = vpop.f32.mrf.mxu0 }
 0x20a   : > { %v8390_v48 = vpop.f32.mrf.mxu0 }
 0x20c   : > { %v4068_v25 = vpop.f32.mrf.mxu1 }
 0x20d   : > { %v10769_v12 = vadd.f32 %v4068_v25, %v3900_v8 }
 0x20e   : > { %v8449_v60 = vpop.f32.mrf.mxu1  ;;  %v3908_v40 = vpop.f32.mrf.mxu0 }
 0x210   : > { %v4071_v44 = vpop.f32.mrf.mxu1  ;;  %v8393_v1 = vpop.f32.mrf.mxu0 }
 0x211   : > { %v10771_v31 = vadd.f32 %v4071_v44, %v3903_v29 }
 0x212   : > { %v8450_v38 = vpop.f32.mrf.mxu1  ;;  %v3911_v26 = vpop.f32.mrf.mxu0 }
 0x214   : > { %v4076_v13 = vpop.f32.mrf.mxu1  ;;  %v8394_v59 = vpop.f32.mrf.mxu0 }
 0x215   : > { %v10773_v53 = vadd.f32 %v4076_v13, %v3908_v40 }
 0x216   : > { %v8453_v47 = vpop.f32.mrf.mxu1  ;;  %v4726_v41 = vpop.f32.mrf.mxu0 }
 0x217   : > { %v4812_v15 = vadd.f32 %v4726_v41, %v10692_v46 }
 0x218   : > { %v4079_v30 = vpop.f32.mrf.mxu1  ;;  %v8473_v7 = vpop.f32.mrf.mxu0 }
 0x21a   : > { %v8454_v36 = vpop.f32.mrf.mxu1  ;;  %v4729_v4 = vpop.f32.mrf.mxu0 }
 0x21b   : > { %v4813_v24 = vadd.f32 %v4729_v4, %v10696_v18 }
 0x21c   : > { %v5527_v28 = vpop.f32.mrf.mxu1  ;;  %v8474_v57 = vpop.f32.mrf.mxu0 }
 0x21d   : > { %v10777_v62 = vadd.f32 %v5527_v28, %v4812_v15 }
 0x21e   : > { %v8533_v37 = vpop.f32.mrf.mxu1  ;;  %v4734_v55 = vpop.f32.mrf.mxu0 }
 0x21f   : > { %v5655_v22 = vcombine.high %v10777_v62, %v10777_v62  ;;  %v5662_v32 = vrot.slane %v10777_v62, %v9042_v14  ;;  %v4814_v61 = vadd.f32 %v4734_v55, %v10700_v27 }
 0x220   : > { %v5530_v46 = vpop.f32.mrf.mxu1  ;;  %v8477_v16 = vpop.f32.mrf.mxu0 }
 0x221   : > { %v5669_v43 = vrot.slane %v5655_v22, %v9042_v14  ;;  %v5670_v5 = vcombine.high %v5662_v32, %v5662_v32  ;;  %v10787_v56 = vadd.f32 %v5530_v46, %v4813_v24  ;;  %v5678_v50 = vrot.slane %v5662_v32, %v9042_v14 }
 0x222   : > { %v8534_v18 = vpop.f32.mrf.mxu1  ;;  %v4737_v0 = vpop.f32.mrf.mxu0 }
 0x223   : > { %v5671_v51 = vcombine.high %v5669_v43, %v5669_v43  ;;  %v5692_v23 = vrot.slane %v5670_v5, %v9042_v14  ;;  %v5704_v58 = vcombine.high %v10787_v56, %v10787_v56  ;;  %v5685_v6 = vrot.slane %v5669_v43, %v9042_v14 }
 0x224   : > { %v5711_v42 = vrot.slane %v10787_v56, %v9042_v14  ;;  %v5535_v35 = vpop.f32.mrf.mxu1  ;;  %v8478_v29 = vpop.f32.mrf.mxu0  ;;  %v4815_v44 = vadd.f32 %v4737_v0, %v10708_v63 }
 0x225   : > { %v5699_v33 = vrot.slane %v5671_v51, %v9042_v14  ;;  %v6657_v8 = vcombine.low %v5678_v50, %v5692_v23  ;;  %v8212_v27 = vcombine.high %v5678_v50, %v5692_v23  ;;  %v5718_v54 = vrot.slane %v5704_v58, %v9042_v14 }
 0x226   : > { %v5719_v48 = vcombine.high %v5711_v42, %v5711_v42  ;;  %v5727_v25 = vrot.slane %v5711_v42, %v9042_v14  ;;  %v10801_v60 = vadd.f32 %v5535_v35, %v4814_v61  ;;  %v8537_v40 = vpop.f32.mrf.mxu1  ;;  %v4742_v59 = vpop.f32.mrf.mxu0 }
 0x227   : > { %v6659_v1 = vcombine.low %v5685_v6, %v5699_v33  ;;  %v8213_v38 = vcombine.high %v5685_v6, %v5699_v33  ;;  %v6667_v26 = vrot.slane %v6657_v8, %v9042_v14  ;;  %v6674_v13 = vrot.slane %v8212_v27, %v9042_v14 }
 0x228   : > { %v5720_v47 = vcombine.high %v5718_v54, %v5718_v54  ;;  %v5734_v41 = vrot.slane %v5718_v54, %v9042_v14  ;;  %v5741_v30 = vrot.slane %v5719_v48, %v9042_v14  ;;  %v5749_v15 = vcombine.high %v5727_v25, %v5727_v25  ;;  %v5538_v63 = vpop.f32.mrf.mxu1  ;;  %v8481_v24 = vpop.f32.mrf.mxu0 }
 0x229   : > { %v6681_v7 = vrot.slane %v6659_v1, %v9042_v14  ;;  %v6688_v36 = vrot.slane %v8213_v38, %v9042_v14  ;;  %v6689_v4 = vcombine.low %v6667_v26, %v6674_v13  ;;  %v6712_v28 = vrot.slane %v5727_v25, %v9042_v14 }
 0x22a   : > { %v5748_v57 = vrot.slane %v5720_v47, %v9042_v14  ;;  %v5750_v37 = vcombine.high %v5734_v41, %v5734_v41  ;;  %v5751_v22 = vcombine.high %v5741_v30, %v5741_v30  ;;  %v6720_v32 = vcombine.low %v5741_v30, %v5749_v15  ;;  %v8538_v55 = vpop.f32.mrf.mxu1  ;;  %v10823_v18 = vpop.f32.mrf.mxu0 }
 0x22b   : > { %v6690_v46 = vcombine.low %v6681_v7, %v6688_v36  ;;  %v6697_v43 = vrot.slane %v6689_v4, %v9042_v14  ;;  %8230 = vst.sshfl [vmem:[%s10809_s23 + $0x8] sm:$0x1 pattern:$0x73625140] %v6712_v28  ;;  %v5753_v5 = vcombine.high %v10801_v60, %v10801_v60  ;;  %v5760_v16 = vrot.slane %v10801_v60, %v9042_v14 }
 0x22c   : > { %v6721_v61 = vcombine.low %v5751_v22, %v5734_v41  ;;  %v6722_v51 = vcombine.low %v5748_v57, %v5750_v37  ;;  %v6730_v50 = vrot.slane %v6720_v32, %v9042_v14  ;;  %v5752_v23 = vcombine.high %v5748_v57, %v5748_v57  ;;  %v5543_v58 = vpop.f32.mrf.mxu1  ;;  %v8482_v33 = vpop.f32.mrf.mxu0 }
 0x22d   : > { %v6704_v0 = vrot.slane %v6690_v46, %v9042_v14  ;;  %v5767_v6 = vrot.slane %v5753_v5, %v9042_v14  ;;  %v5768_v42 = vcombine.high %v5760_v16, %v5760_v16  ;;  %v5776_v35 = vrot.slane %v5760_v16, %v9042_v14 }
 0x22e   : > { %v6737_v8 = vrot.slane %v6721_v61, %v9042_v14  ;;  %v6744_v27 = vrot.slane %v6722_v51, %v9042_v14  ;;  %v10831_v54 = vadd.f32 %v5538_v63, %v4815_v44  ;;  %v4816_v29 = vadd.f32 %v4742_v59, %v10712_v17  ;;  %v8541_v48 = vpop.f32.mrf.mxu1  ;;  %v10836_v26 = vpop.f32.mrf.mxu0 }
 0x22f   : > { %v6705_v25 = vcombine.low %v6697_v43, %v6704_v0  ;;  %v5769_v40 = vcombine.high %v5767_v6, %v5767_v6  ;;  %v5783_v1 = vrot.slane %v5767_v6, %v9042_v14  ;;  %v5790_v38 = vrot.slane %v5768_v42, %v9042_v14 }
 0x230   : > { %v6752_v13 = vcombine.low %v6730_v50, %v6737_v8  ;;  %v6723_v47 = vcombine.low %v5752_v23, %v5776_v35  ;;  %v5802_v41 = vcombine.high %v10831_v54, %v10831_v54  ;;  %v5809_v44 = vrot.slane %v10831_v54, %v9042_v14  ;;  %v10842_v30 = vpop.f32.mrf.mxu1  ;;  %v8485_v7 = vpop.f32.mrf.mxu0 }
 0x231   : > { %7827 = vst [vmem:[%s10809_s23] sm:$0xff] %v6705_v25  ;;  %v5797_v17 = vrot.slane %v5769_v40, %v9042_v14  ;;  %v6775_v59 = vrot.slane %v5790_v38, %v9042_v14  ;;  %v8214_v15 = vcombine.high %v5776_v35, %v5790_v38  ;;  %v10847_v63 = vadd.f32 %v5543_v58, %v4816_v29 }
 0x232   : > { %v6760_v36 = vrot.slane %v6752_v13, %v9042_v14  ;;  %v6751_v4 = vrot.slane %v6723_v47, %v9042_v14  ;;  %v5816_v28 = vrot.slane %v5802_v41, %v9042_v14  ;;  %v5817_v24 = vcombine.high %v5809_v44, %v5809_v44  ;;  %v8542_v57 = vpop.f32.mrf.mxu1  ;;  %v10855_v46 = vpop.f32.mrf.mxu0 }
 0x233   : > { %v6784_v37 = vcombine.low %v5783_v1, %v5797_v17  ;;  %v8215_v22 = vcombine.high %v5783_v1, %v5797_v17  ;;  %v6793_v32 = vrot.slane %v8214_v15, %v9042_v14  ;;  %8231 = vst.sshfl [vmem:[%s10809_s23 + $0x18] sm:$0x1 pattern:$0x73625140] %v6775_v59  ;;  %v5825_v55 = vrot.slane %v5809_v44, %v9042_v14 }
 0x234   : > { %v6753_v43 = vcombine.low %v6744_v27, %v6751_v4  ;;  %v5818_v5 = vcombine.high %v5816_v28, %v5816_v28  ;;  %v5832_v16 = vrot.slane %v5816_v28, %v9042_v14  ;;  %v5839_v61 = vrot.slane %v5817_v24, %v9042_v14  ;;  %v5551_v51 = vpop.f32.mrf.mxu1  ;;  %v8486_v6 = vpop.f32.mrf.mxu0 }
 0x235   : > { %v6800_v50 = vrot.slane %v6784_v37, %v9042_v14  ;;  %v6807_v23 = vrot.slane %v8215_v22, %v9042_v14  ;;  %v5847_v58 = vcombine.high %v5825_v55, %v5825_v55  ;;  %v5851_v0 = vcombine.high %v10847_v63, %v10847_v63 }
 0x236   : > { %v6767_v42 = vrot.slane %v6753_v43, %v9042_v14  ;;  %v5846_v35 = vrot.slane %v5818_v5, %v9042_v14  ;;  %v5848_v33 = vcombine.high %v5832_v16, %v5832_v16  ;;  %v5849_v8 = vcombine.high %v5839_v61, %v5839_v61  ;;  %v8545_v27 = vpop.f32.mrf.mxu1  ;;  %v4758_v1 = vpop.f32.mrf.mxu0 }
 0x237   : > { %v6815_v29 = vcombine.low %v6793_v32, %v6800_v50  ;;  %v6786_v48 = vcombine.low %v5825_v55, %v5839_v61  ;;  %v6838_v25 = vrot.slane %v5847_v58, %v9042_v14  ;;  %v5858_v40 = vrot.slane %v10847_v63, %v9042_v14 }
 0x238   : > { %v6768_v38 = vcombine.low %v6760_v36, %v6767_v42  ;;  %v6846_v13 = vcombine.low %v5849_v8, %v5832_v16  ;;  %v6847_v47 = vcombine.low %v5846_v35, %v5848_v33  ;;  %v5850_v41 = vcombine.high %v5846_v35, %v5846_v35  ;;  %v10868_v44 = vpop.f32.mrf.mxu1  ;;  %v8489_v4 = vpop.f32.mrf.mxu0 }
 0x239   : > { %v6823_v17 = vrot.slane %v6815_v29, %v9042_v14  ;;  %v6814_v59 = vrot.slane %v6786_v48, %v9042_v14  ;;  %8232 = vst.sshfl [vmem:[%s10809_s23 + $0x28] sm:$0x1 pattern:$0x73625140] %v6838_v25  ;;  %v5865_v15 = vrot.slane %v5851_v0, %v9042_v14  ;;  %v5866_v7 = vcombine.high %v5858_v40, %v5858_v40 }
 0x23a   : > { %7829 = vst [vmem:[%s10809_s23 + $0x10] sm:$0xff] %v6768_v38  ;;  %v6856_v28 = vrot.slane %v6846_v13, %v9042_v14  ;;  %v6863_v24 = vrot.slane %v6847_v47, %v9042_v14  ;;  %v5874_v36 = vrot.slane %v5858_v40, %v9042_v14  ;;  %v4817_v57 = vadd.f32 %v10823_v18, %v10716_v21  ;;  %v8546_v37 = vpop.f32.mrf.mxu1  ;;  %v10882_v5 = vpop.f32.mrf.mxu0 }
 0x23b   : > { %v6816_v22 = vcombine.low %v6807_v23, %v6814_v59  ;;  %v5867_v32 = vcombine.high %v5865_v15, %v5865_v15  ;;  %v5881_v55 = vrot.slane %v5865_v15, %v9042_v14  ;;  %v5888_v43 = vrot.slane %v5866_v7, %v9042_v14 }
 0x23c   : > { %v6878_v16 = vcombine.low %v6856_v28, %v6863_v24  ;;  %v5896_v61 = vcombine.high %v5874_v36, %v5874_v36  ;;  %v6848_v50 = vcombine.low %v5850_v41, %v5874_v36  ;;  %v10885_v58 = vadd.f32 %v10842_v30, %v4817_v57  ;;  %v10887_v0 = vpop.f32.mrf.mxu1  ;;  %v8490_v42 = vpop.f32.mrf.mxu0 }
 0x23d   : > { %v6830_v6 = vrot.slane %v6816_v22, %v9042_v14  ;;  %v5895_v21 = vrot.slane %v5867_v32, %v9042_v14  ;;  %v5898_v18 = vcombine.high %v5888_v43, %v5888_v43  ;;  %v4818_v23 = vadd.f32 %v10836_v26, %v10729_v2 }
 0x23e   : > { %v6886_v35 = vrot.slane %v6878_v16, %v9042_v14  ;;  %v6849_v33 = vcombine.low %v5888_v43, %v5896_v61  ;;  %v6870_v8 = vrot.slane %v6848_v50, %v9042_v14  ;;  %v5900_v30 = vcombine.high %v10885_v58, %v10885_v58  ;;  %v8549_v27 = vpop.f32.mrf.mxu1  ;;  %v10898_v38 = vpop.f32.mrf.mxu0 }
 0x23f   : > { %v6831_v29 = vcombine.low %v6823_v17, %v6830_v6  ;;  %v6901_v48 = vrot.slane %v5898_v18, %v9042_v14  ;;  %v6909_v25 = vcombine.low %v5881_v55, %v5895_v21  ;;  %v8216_v40 = vcombine.high %v5881_v55, %v5895_v21 }
 0x240   : > { %v6877_v2 = vrot.slane %v6849_v33, %v9042_v14  ;;  %v5907_v26 = vrot.slane %v10885_v58, %v9042_v14  ;;  %v5914_v13 = vrot.slane %v5900_v30, %v9042_v14  ;;  %v10904_v47 = vadd.f32 %v5551_v51, %v4818_v23  ;;  %v10906_v41 = vpop.f32.mrf.mxu1  ;;  %v8493_v4 = vpop.f32.mrf.mxu0 }
 0x241   : > { %7831 = vst [vmem:[%s10809_s23 + $0x20] sm:$0xff] %v6831_v29  ;;  %v6919_v17 = vrot.slane %v6909_v25, %v9042_v14  ;;  %v6926_v59 = vrot.slane %v8216_v40, %v9042_v14  ;;  %8233 = vst.sshfl [vmem:[%s10809_s23 + $0x38] sm:$0x1 pattern:$0x73625140] %v6901_v48  ;;  %v4819_v15 = vadd.f32 %v10855_v46, %v10737_v45 }
 0x242   : > { %v10915_v7 = vadd.f32 %v4758_v1, %v10749_v3  ;;  %v6879_v28 = vcombine.low %v6870_v8, %v6877_v2  ;;  %v5915_v24 = vcombine.high %v5907_v26, %v5907_v26  ;;  %v5916_v36 = vcombine.high %v5914_v13, %v5914_v13  ;;  %v8550_v57 = vpop.f32.mrf.mxu1  ;;  %v10923_v45 = vpop.f32.mrf.mxu0 }
 0x243   : > { %v5923_v51 = vrot.slane %v5907_v26, %v9042_v14  ;;  %v6941_v37 = vcombine.low %v6919_v17, %v6926_v59  ;;  %v5930_v22 = vrot.slane %v5914_v13, %v9042_v14  ;;  %v5949_v32 = vcombine.high %v10904_v47, %v10904_v47 }
 0x244   : > { %v5956_v55 = vrot.slane %v10904_v47, %v9042_v14  ;;  %v6893_v3 = vrot.slane %v6879_v28, %v9042_v14  ;;  %v5937_v46 = vrot.slane %v5915_v24, %v9042_v14  ;;  %v5944_v1 = vrot.slane %v5916_v36, %v9042_v14  ;;  %v10931_v16 = vpop.f32.mrf.mxu1  ;;  %v8494_v18 = vpop.f32.mrf.mxu0 }
 0x245   : > { %v10929_v43 = vadd.f32 %v10868_v44, %v4819_v15  ;;  %v6949_v61 = vrot.slane %v6941_v37, %v9042_v14  ;;  %v5946_v50 = vcombine.high %v5930_v22, %v5930_v22  ;;  %v6964_v6 = vrot.slane %v5930_v22, %v9042_v14 }
 0x246   : > { %v5963_v21 = vrot.slane %v5949_v32, %v9042_v14  ;;  %v6894_v23 = vcombine.low %v6886_v35, %v6893_v3  ;;  %v6911_v42 = vcombine.low %v5923_v51, %v5937_v46  ;;  %v8217_v33 = vcombine.high %v5923_v51, %v5937_v46  ;;  %v8553_v30 = vpop.f32.mrf.mxu1  ;;  %v10938_v25 = vpop.f32.mrf.mxu0 }
 0x247   : > { %v5948_v8 = vcombine.high %v5944_v1, %v5944_v1  ;;  %v6972_v27 = vcombine.low %v5944_v1, %v5946_v50  ;;  %8234 = vst.sshfl [vmem:[%s10809_s23 + $0x48] sm:$0x1 pattern:$0x73625140] %v6964_v6  ;;  %v5964_v44 = vcombine.high %v5956_v55, %v5956_v55  ;;  %v5972_v48 = vrot.slane %v5956_v55, %v9042_v14 }
 0x248   : > { %v5965_v29 = vcombine.high %v5963_v21, %v5963_v21  ;;  %7833 = vst [vmem:[%s10809_s23 + $0x30] sm:$0xff] %v6894_v23  ;;  %v6933_v40 = vrot.slane %v6911_v42, %v9042_v14  ;;  %v6940_v2 = vrot.slane %v8217_v33, %v9042_v14  ;;  %v5979_v26 = vrot.slane %v5963_v21, %v9042_v14  ;;  %v10946_v13 = vpop.f32.mrf.mxu1  ;;  %v8497_v28 = vpop.f32.mrf.mxu0 }
 0x249   : > { %v5998_v35 = vcombine.high %v10929_v43, %v10929_v43  ;;  %v5986_v17 = vrot.slane %v5964_v44, %v9042_v14  ;;  %v5994_v15 = vcombine.high %v5972_v48, %v5972_v48  ;;  %v6973_v4 = vcombine.low %v5948_v8, %v5972_v48 }
 0x24a   : > { %v5993_v59 = vrot.slane %v5965_v29, %v9042_v14  ;;  %v6942_v24 = vcombine.low %v6933_v40, %v6940_v2  ;;  %v6982_v36 = vrot.slane %v6972_v27, %v9042_v14  ;;  %v6005_v51 = vrot.slane %v10929_v43, %v9042_v14  ;;  %v8554_v37 = vpop.f32.mrf.mxu1  ;;  %v10956_v46 = vpop.f32.mrf.mxu0 }
 0x24b   : > { %v6012_v57 = vrot.slane %v5998_v35, %v9042_v14  ;;  %v5996_v22 = vcombine.high %v5986_v17, %v5986_v17  ;;  %v6974_v32 = vcombine.low %v5986_v17, %v5994_v15  ;;  %v6989_v55 = vrot.slane %v6973_v4, %v9042_v14 }
 0x24c   : > { %v7027_v3 = vrot.slane %v5993_v59, %v9042_v14  ;;  %v6956_v1 = vrot.slane %v6942_v24, %v9042_v14  ;;  %v8218_v50 = vcombine.high %v5979_v26, %v5993_v59  ;;  %v6013_v6 = vcombine.high %v6005_v51, %v6005_v51  ;;  %v10959_v18 = vpop.f32.mrf.mxu1  ;;  %v8498_v30 = vpop.f32.mrf.mxu0 }
 0x24d   : > { %v6014_v21 = vcombine.high %v6012_v57, %v6012_v57  ;;  %v6975_v23 = vcombine.low %v5996_v22, %v5979_v26  ;;  %v6996_v42 = vrot.slane %v6974_v32, %v9042_v14  ;;  %v7004_v33 = vcombine.low %v6982_v36, %v6989_v55 }
 0x24e   : > { %8235 = vst.sshfl [vmem:[%s10809_s23 + $0x58] sm:$0x1 pattern:$0x73625140] %v7027_v3  ;;  %v6021_v8 = vrot.slane %v6005_v51, %v9042_v14  ;;  %v6957_v27 = vcombine.low %v6949_v61, %v6956_v1  ;;  %v7045_v44 = vrot.slane %v8218_v50, %v9042_v14  ;;  %v6028_v29 = vrot.slane %v6012_v57, %v9042_v14  ;;  %v8557_v40 = vpop.f32.mrf.mxu1  ;;  %v10974_v59 = vpop.f32.mrf.mxu0 }
 0x24f   : > { %v6035_v48 = vrot.slane %v6013_v6, %v9042_v14  ;;  %v7003_v2 = vrot.slane %v6975_v23, %v9042_v14  ;;  %v7012_v26 = vrot.slane %v7004_v33, %v9042_v14  ;;  %v6042_v35 = vrot.slane %v6014_v21, %v9042_v14 }
 0x250   : > { %v10972_v17 = vadd.f32 %v10887_v0, %v10915_v7  ;;  %7835 = vst [vmem:[%s10809_s23 + $0x40] sm:$0xff] %v6957_v27  ;;  %v6044_v61 = vcombine.high %v6028_v29, %v6028_v29  ;;  %v4821_v28 = vadd.f32 %v10882_v5, %v10751_v34  ;;  %v10979_v24 = vpop.f32.mrf.mxu1  ;;  %v8501_v0 = vpop.f32.mrf.mxu0  ;;  %v4822_v33 = vadd.f32 %v10898_v38, %v10753_v11 }
 0x251   : > { %v7036_v15 = vcombine.low %v6021_v8, %v6035_v48  ;;  %v8219_v4 = vcombine.high %v6021_v8, %v6035_v48  ;;  %v7005_v36 = vcombine.low %v6996_v42, %v7003_v2  ;;  %v7038_v51 = vcombine.low %v6028_v29, %v6042_v35 }
 0x252   : > { %v6046_v57 = vcombine.high %v6042_v35, %v6042_v35  ;;  %v6047_v37 = vcombine.high %v10972_v17, %v10972_v17  ;;  %v7090_v32 = vrot.slane %v6044_v61, %v9042_v14  ;;  %v6054_v55 = vrot.slane %v10972_v17, %v9042_v14  ;;  %v8558_v34 = vpop.f32.mrf.mxu1  ;;  %v10994_v6 = vpop.f32.mrf.mxu0 }
 0x253   : > { %v7052_v7 = vrot.slane %v7036_v15, %v9042_v14  ;;  %v7059_v22 = vrot.slane %v8219_v4, %v9042_v14  ;;  %v7019_v5 = vrot.slane %v7005_v36, %v9042_v14  ;;  %v7066_v3 = vrot.slane %v7038_v51, %v9042_v14 }
 0x254   : > { %v6061_v1 = vrot.slane %v6047_v37, %v9042_v14  ;;  %v10992_v50 = vadd.f32 %v10906_v41, %v4821_v28  ;;  %8236 = vst.sshfl [vmem:[%s10809_s23 + $0x68] sm:$0x1 pattern:$0x73625140] %v7090_v32  ;;  %v6062_v23 = vcombine.high %v6054_v55, %v6054_v55  ;;  %v6070_v42 = vrot.slane %v6054_v55, %v9042_v14  ;;  %v11000_v8 = vpop.f32.mrf.mxu1  ;;  %v8502_v41 = vpop.f32.mrf.mxu0 }
 0x255   : > { %v7067_v21 = vcombine.low %v7045_v44, %v7052_v7  ;;  %v7020_v30 = vcombine.low %v7012_v26, %v7019_v5  ;;  %v7068_v27 = vcombine.low %v7059_v22, %v7066_v3 }
 0x256   : > { %v6063_v29 = vcombine.high %v6061_v1, %v6061_v1  ;;  %v6077_v48 = vrot.slane %v6061_v1, %v9042_v14  ;;  %v6084_v44 = vrot.slane %v6062_v23, %v9042_v14  ;;  %v6092_v2 = vcombine.high %v6070_v42, %v6070_v42  ;;  %v8561_v61 = vpop.f32.mrf.mxu1  ;;  %v11010_v4 = vpop.f32.mrf.mxu0 }
 0x257   : > { %v7075_v40 = vrot.slane %v7067_v21, %v9042_v14  ;;  %v7098_v35 = vcombine.low %v6046_v57, %v6070_v42  ;;  %7837 = vst [vmem:[%s10809_s23 + $0x50] sm:$0xff] %v7020_v30  ;;  %v7082_v15 = vrot.slane %v7068_v27, %v9042_v14  ;;  %v6096_v26 = vcombine.high %v10992_v50, %v10992_v50 }
 0x258   : > { %v6091_v11 = vrot.slane %v6063_v29, %v9042_v14  ;;  %v6093_v38 = vcombine.high %v6077_v48, %v6077_v48  ;;  %v6094_v28 = vcombine.high %v6084_v44, %v6084_v44  ;;  %v7099_v36 = vcombine.low %v6084_v44, %v6092_v2  ;;  %v11015_v37 = vpop.f32.mrf.mxu1  ;;  %v8505_v55 = vpop.f32.mrf.mxu0 }
 0x259   : > { %v7108_v51 = vrot.slane %v7098_v35, %v9042_v14  ;;  %v6103_v57 = vrot.slane %v10992_v50, %v9042_v14  ;;  %v7083_v0 = vcombine.low %v7075_v40, %v7082_v15  ;;  %v6110_v32 = vrot.slane %v6096_v26, %v9042_v14 }
 0x25a   : > { %v6095_v7 = vcombine.high %v6091_v11, %v6091_v11  ;;  %v7101_v22 = vcombine.low %v6091_v11, %v6093_v38  ;;  %v7100_v34 = vcombine.low %v6094_v28, %v6077_v48  ;;  %v7115_v5 = vrot.slane %v7099_v36, %v9042_v14  ;;  %v8562_v21 = vpop.f32.mrf.mxu1  ;;  %v11024_v29 = vpop.f32.mrf.mxu0 }
 0x25b   : > { %v6111_v3 = vcombine.high %v6103_v57, %v6103_v57  ;;  %v6119_v1 = vrot.slane %v6103_v57, %v9042_v14  ;;  %7839 = vst [vmem:[%s10809_s23 + $0x60] sm:$0xff] %v7083_v0  ;;  %v6112_v30 = vcombine.high %v6110_v32, %v6110_v32  ;;  %v6126_v27 = vrot.slane %v6110_v32, %v9042_v14 }
 0x25c   : > { %v7129_v23 = vrot.slane %v7101_v22, %v9042_v14  ;;  %v7153_v42 = vrot.slane %v6095_v7, %v9042_v14  ;;  %v7122_v41 = vrot.slane %v7100_v34, %v9042_v14  ;;  %v7130_v48 = vcombine.low %v7108_v51, %v7115_v5  ;;  %v11031_v2 = vpop.f32.mrf.mxu1  ;;  %v8506_v38 = vpop.f32.mrf.mxu0 }
 0x25d   : > { %v6133_v40 = vrot.slane %v6111_v3, %v9042_v14  ;;  %v11029_v44 = vadd.f32 %v10931_v16, %v4822_v33  ;;  %v6140_v35 = vrot.slane %v6112_v30, %v9042_v14  ;;  %v4823_v61 = vadd.f32 %v10923_v45, %v10755_v10 }
 0x25e   : > { %8237 = vst.sshfl [vmem:[%s10809_s23 + $0x78] sm:$0x1 pattern:$0x73625140] %v7153_v42  ;;  %v11039_v15 = vadd.f32 %v10938_v25, %v10757_v19  ;;  %v11043_v11 = vadd.f32 %v10956_v46, %v10759_v20  ;;  %v7131_v26 = vcombine.low %v7122_v41, %v7129_v23  ;;  %v7138_v16 = vrot.slane %v7130_v48, %v9042_v14  ;;  %v8565_v36 = vpop.f32.mrf.mxu1  ;;  %v11050_v45 = vpop.f32.mrf.mxu0 }
 0x25f   : > { %v7161_v33 = vcombine.low %v6119_v1, %v6133_v40  ;;  %v8220_v28 = vcombine.high %v6119_v1, %v6133_v40  ;;  %v7163_v51 = vcombine.low %v6126_v27, %v6140_v35  ;;  %v8221_v57 = vcombine.high %v6126_v27, %v6140_v35 }
 0x260   : > { %v6145_v10 = vcombine.high %v11029_v44, %v11029_v44  ;;  %v6152_v19 = vrot.slane %v11029_v44, %v9042_v14  ;;  %v7145_v20 = vrot.slane %v7131_v26, %v9042_v14  ;;  %v11056_v0 = vadd.f32 %v10946_v13, %v4823_v61  ;;  %v11058_v7 = vpop.f32.mrf.mxu1  ;;  %v8509_v5 = vpop.f32.mrf.mxu0 }
 0x261   : > { %v7171_v25 = vrot.slane %v7161_v33, %v9042_v14  ;;  %v7178_v46 = vrot.slane %v8220_v28, %v9042_v14  ;;  %v7185_v22 = vrot.slane %v7163_v51, %v9042_v14  ;;  %v7192_v32 = vrot.slane %v8221_v57, %v9042_v14 }
 0x262   : > { %v6159_v55 = vrot.slane %v6145_v10, %v9042_v14  ;;  %v6160_v34 = vcombine.high %v6152_v19, %v6152_v19  ;;  %v7146_v3 = vcombine.low %v7138_v16, %v7145_v20  ;;  %v6168_v21 = vrot.slane %v6152_v19, %v9042_v14  ;;  %v8566_v13 = vpop.f32.mrf.mxu1  ;;  %v11068_v48 = vpop.f32.mrf.mxu0 }
 0x263   : > { %v7193_v1 = vcombine.low %v7171_v25, %v7178_v46  ;;  %v6194_v23 = vcombine.high %v11056_v0, %v11056_v0  ;;  %v7194_v42 = vcombine.low %v7185_v22, %v7192_v32  ;;  %v6201_v38 = vrot.slane %v11056_v0, %v9042_v14 }
 0x264   : > { %v6161_v30 = vcombine.high %v6159_v55, %v6159_v55  ;;  %v6175_v27 = vrot.slane %v6159_v55, %v9042_v14  ;;  %v6182_v41 = vrot.slane %v6160_v34, %v9042_v14  ;;  %7841 = vst [vmem:[%s10809_s23 + $0x70] sm:$0xff] %v7146_v3  ;;  %v6190_v35 = vcombine.high %v6168_v21, %v6168_v21  ;;  %v11075_v26 = vpop.f32.mrf.mxu1  ;;  %v8510_v51 = vpop.f32.mrf.mxu0 }
 0x265   : > { %v7201_v40 = vrot.slane %v7193_v1, %v9042_v14  ;;  %v7216_v61 = vrot.slane %v6168_v21, %v9042_v14  ;;  %v7208_v16 = vrot.slane %v7194_v42, %v9042_v14  ;;  %v6208_v10 = vrot.slane %v6194_v23, %v9042_v14 }
 0x266   : > { %v6189_v33 = vrot.slane %v6161_v30, %v9042_v14  ;;  %v6191_v28 = vcombine.high %v6175_v27, %v6175_v27  ;;  %v6192_v36 = vcombine.high %v6182_v41, %v6182_v41  ;;  %v7224_v57 = vcombine.low %v6182_v41, %v6190_v35  ;;  %v8569_v25 = vpop.f32.mrf.mxu1  ;;  %v11082_v34 = vpop.f32.mrf.mxu0 }
 0x267   : > { %8238 = vst.sshfl [vmem:[%s10809_s23 + $0x88] sm:$0x1 pattern:$0x73625140] %v7216_v61  ;;  %v6209_v19 = vcombine.high %v6201_v38, %v6201_v38  ;;  %v6217_v20 = vrot.slane %v6201_v38, %v9042_v14  ;;  %v7209_v46 = vcombine.low %v7201_v40, %v7208_v16  ;;  %v6210_v3 = vcombine.high %v6208_v10, %v6208_v10 }
 0x268   : > { %v7225_v22 = vcombine.low %v6192_v36, %v6175_v27  ;;  %v7226_v32 = vcombine.low %v6189_v33, %v6191_v28  ;;  %v6193_v55 = vcombine.high %v6189_v33, %v6189_v33  ;;  %v7234_v5 = vrot.slane %v7224_v57, %v9042_v14  ;;  %v11087_v13 = vpop.f32.mrf.mxu1  ;;  %v8513_v41 = vpop.f32.mrf.mxu0 }
 0x269   : > { %v6224_v1 = vrot.slane %v6208_v10, %v9042_v14  ;;  %v6231_v21 = vrot.slane %v6209_v19, %v9042_v14  ;;  %7843 = vst [vmem:[%s10809_s23 + $0x80] sm:$0xff] %v7209_v46  ;;  %v11094_v27 = vadd.f32 %v10959_v18, %v11039_v15  ;;  %v6238_v40 = vrot.slane %v6210_v3, %v9042_v14 }
 0x26a   : > { %v7241_v23 = vrot.slane %v7225_v22, %v9042_v14  ;;  %v7227_v42 = vcombine.low %v6193_v55, %v6217_v20  ;;  %v7248_v30 = vrot.slane %v7226_v32, %v9042_v14  ;;  %v11100_v38 = vadd.f32 %v10979_v24, %v11043_v11  ;;  %v8570_v16 = vpop.f32.mrf.mxu1  ;;  %v4809_v15 = vpop.f32.mrf.mxu0 }
 0x26b   : > { %v7279_v35 = vrot.slane %v6231_v21, %v9042_v14  ;;  %v8222_v61 = vcombine.high %v6217_v20, %v6231_v21  ;;  %v6243_v36 = vcombine.high %v11094_v27, %v11094_v27  ;;  %v6250_v18 = vrot.slane %v11094_v27, %v9042_v14 }
 0x26c   : > { %v7256_v33 = vcombine.low %v7234_v5, %v7241_v23  ;;  %v7255_v28 = vrot.slane %v7227_v42, %v9042_v14  ;;  %v7288_v51 = vcombine.low %v6224_v1, %v6238_v40  ;;  %v8223_v57 = vcombine.high %v6224_v1, %v6238_v40  ;;  %v11111_v11 = vpop.f32.mrf.mxu1  ;;  %v8514_v22 = vpop.f32.mrf.mxu0 }
 0x26d   : > { %v7297_v10 = vrot.slane %v8222_v61, %v9042_v14  ;;  %8239 = vst.sshfl [vmem:[%s10809_s23 + $0x98] sm:$0x1 pattern:$0x73625140] %v7279_v35  ;;  %v6292_v24 = vcombine.high %v11100_v38, %v11100_v38  ;;  %v6257_v25 = vrot.slane %v6243_v36, %v9042_v14  ;;  %v6258_v46 = vcombine.high %v6250_v18, %v6250_v18 }
 0x26e   : > { %v7264_v19 = vrot.slane %v7256_v33, %v9042_v14  ;;  %v7257_v20 = vcombine.low %v7248_v30, %v7255_v28  ;;  %v7304_v32 = vrot.slane %v7288_v51, %v9042_v14  ;;  %v7311_v55 = vrot.slane %v8223_v57, %v9042_v14  ;;  %v8573_v1 = vpop.f32.mrf.mxu1 }
 0x26f   : > { %v6266_v5 = vrot.slane %v6250_v18, %v9042_v14  ;;  %v6299_v3 = vrot.slane %v11100_v38, %v9042_v14  ;;  %v6259_v23 = vcombine.high %v6257_v25, %v6257_v25  ;;  %v6273_v42 = vrot.slane %v6257_v25, %v9042_v14 }
 0x270   : > { %v7271_v21 = vrot.slane %v7257_v20, %v9042_v14  ;;  %v6280_v30 = vrot.slane %v6258_v46, %v9042_v14  ;;  %v7319_v41 = vcombine.low %v7297_v10, %v7304_v32  ;;  %v6306_v35 = vrot.slane %v6292_v24, %v9042_v14  ;;  %v5610_v16 = vpop.f32.mrf.mxu1 }
 0x271   : > { %v6288_v40 = vcombine.high %v6266_v5, %v6266_v5  ;;  %v6307_v61 = vcombine.high %v6299_v3, %v6299_v3  ;;  %v6287_v28 = vrot.slane %v6259_v23, %v9042_v14  ;;  %v6289_v36 = vcombine.high %v6273_v42, %v6273_v42 }
 0x272   : > { %v7272_v33 = vcombine.low %v7264_v19, %v7271_v21  ;;  %v6290_v18 = vcombine.high %v6280_v30, %v6280_v30  ;;  %v7327_v15 = vrot.slane %v7319_v41, %v9042_v14  ;;  %v7290_v51 = vcombine.low %v6266_v5, %v6280_v30  ;;  %v8574_v25 = vpop.f32.mrf.mxu1 }
 0x273   : > { %v7342_v57 = vrot.slane %v6288_v40, %v9042_v14  ;;  %v6308_v20 = vcombine.high %v6306_v35, %v6306_v35  ;;  %v7351_v46 = vcombine.low %v6287_v28, %v6289_v36  ;;  %v6291_v22 = vcombine.high %v6287_v28, %v6287_v28 }
 0x274   : > { %7845 = vst [vmem:[%s10809_s23 + $0x90] sm:$0xff] %v7272_v33  ;;  %v7350_v10 = vcombine.low %v6290_v18, %v6273_v42  ;;  %v6315_v24 = vrot.slane %v6299_v3, %v9042_v14  ;;  %v7318_v32 = vrot.slane %v7290_v51, %v9042_v14  ;;  %v6322_v19 = vrot.slane %v6306_v35, %v9042_v14 }
 0x275   : > { %8240 = vst.sshfl [vmem:[%s10809_s23 + $0xa8] sm:$0x1 pattern:$0x73625140] %v7342_v57  ;;  %v6329_v1 = vrot.slane %v6307_v61, %v9042_v14  ;;  %v6336_v21 = vrot.slane %v6308_v20, %v9042_v14  ;;  %v7367_v23 = vrot.slane %v7351_v46, %v9042_v14  ;;  %v4826_v35 = vadd.f32 %v10974_v59, %v10761_v49 }
 0x276   : > { %v7360_v5 = vrot.slane %v7350_v10, %v9042_v14  ;;  %v6337_v30 = vcombine.high %v6315_v24, %v6315_v24  ;;  %v7352_v41 = vcombine.low %v6291_v22, %v6315_v24  ;;  %v7320_v42 = vcombine.low %v7311_v55, %v7318_v32 }
 0x277   : > { %v6339_v40 = vcombine.high %v6329_v1, %v6329_v1  ;;  %v7413_v16 = vcombine.low %v6322_v19, %v6336_v21  ;;  %v8224_v3 = vcombine.high %v6322_v19, %v6336_v21  ;;  %v11146_v25 = vadd.f32 %v11000_v8, %v4826_v35 }
 0x278   : > { %v7382_v33 = vcombine.low %v7360_v5, %v7367_v23  ;;  %v7353_v28 = vcombine.low %v6329_v1, %v6337_v30  ;;  %v7374_v36 = vrot.slane %v7352_v41, %v9042_v14  ;;  %v7334_v61 = vrot.slane %v7320_v42, %v9042_v14 }
 0x279   : > { %v7405_v18 = vrot.slane %v6339_v40, %v9042_v14  ;;  %v7423_v51 = vrot.slane %v7413_v16, %v9042_v14  ;;  %v7430_v55 = vrot.slane %v8224_v3, %v9042_v14  ;;  %v4827_v10 = vadd.f32 %v10994_v6, %v10763_v52 }
 0x27a   : > { %v7390_v57 = vrot.slane %v7382_v33, %v9042_v14  ;;  %v7381_v20 = vrot.slane %v7353_v28, %v9042_v14  ;;  %v7335_v49 = vcombine.low %v7327_v15, %v7334_v61  ;;  %v4828_v46 = vadd.f32 %v11010_v4, %v10765_v9 }
 0x27b   : > { %v7445_v59 = vcombine.low %v7423_v51, %v7430_v55  ;;  %8241 = vst.sshfl [vmem:[%s10809_s23 + $0xb8] sm:$0x1 pattern:$0x73625140] %v7405_v18  ;;  %v4829_v22 = vadd.f32 %v11024_v29, %v10767_v39  ;;  %v6341_v32 = vcombine.high %v11146_v25, %v11146_v25  ;;  %v6348_v8 = vrot.slane %v11146_v25, %v9042_v14 }
 0x27c   : > { %v7383_v24 = vcombine.low %v7374_v36, %v7381_v20  ;;  %v11160_v19 = vadd.f32 %v11015_v37, %v4827_v10  ;;  %7847 = vst [vmem:[%s10809_s23 + $0xa0] sm:$0xff] %v7335_v49  ;;  %v11167_v6 = vadd.f32 %v11031_v2, %v4828_v46  ;;  %v11171_v9 = vmul.f32 %v11146_v25, %v11146_v25 }
 0x27d   : > { %v11164_v52 = vrot.slane %v7445_v59, %v9042_v14  ;;  %v11174_v39 = vadd.f32 %v11058_v7, %v4829_v22  ;;  %v6355_v37 = vrot.slane %v6341_v32, %v9042_v14  ;;  %v6356_v29 = vcombine.high %v6348_v8, %v6348_v8 }
 0x27e   : > { %v7397_v4 = vrot.slane %v7383_v24, %v9042_v14  ;;  %v6364_v15 = vrot.slane %v6348_v8, %v9042_v14  ;;  %v6390_v1 = vcombine.high %v11160_v19, %v11160_v19  ;;  %v6397_v2 = vrot.slane %v11160_v19, %v9042_v14 }
 0x27f   : > { %v6439_v21 = vcombine.high %v11167_v6, %v11167_v6  ;;  %v6446_v7 = vrot.slane %v11167_v6, %v9042_v14  ;;  %v6357_v23 = vcombine.high %v6355_v37, %v6355_v37  ;;  %v6371_v30 = vrot.slane %v6355_v37, %v9042_v14 }
 0x280   : > { %v7398_v5 = vcombine.low %v7390_v57, %v7397_v4  ;;  %v6378_v41 = vrot.slane %v6356_v29, %v9042_v14  ;;  %v6404_v42 = vrot.slane %v6390_v1, %v9042_v14  ;;  %v6405_v40 = vcombine.high %v6397_v2, %v6397_v2 }
 0x281   : > { %v6413_v16 = vrot.slane %v6397_v2, %v9042_v14  ;;  %v6453_v3 = vrot.slane %v6439_v21, %v9042_v14  ;;  %v6385_v33 = vrot.slane %v6357_v23, %v9042_v14  ;;  %v6387_v28 = vcombine.high %v6371_v30, %v6371_v30 }
 0x282   : > { %7849 = vst [vmem:[%s10809_s23 + $0xb0] sm:$0xff] %v7398_v5  ;;  %v7415_v36 = vcombine.low %v6364_v15, %v6378_v41  ;;  %v8225_v35 = vcombine.high %v6364_v15, %v6378_v41  ;;  %v7468_v61 = vrot.slane %v6371_v30, %v9042_v14  ;;  %v6406_v18 = vcombine.high %v6404_v42, %v6404_v42 }
 0x283   : > { %v6420_v51 = vrot.slane %v6404_v42, %v9042_v14  ;;  %v6427_v55 = vrot.slane %v6405_v40, %v9042_v14  ;;  %v7476_v10 = vcombine.low %v6385_v33, %v6387_v28  ;;  %v6389_v49 = vcombine.high %v6385_v33, %v6385_v33 }
 0x284   : > { %v7437_v57 = vrot.slane %v7415_v36, %v9042_v14  ;;  %v7444_v20 = vrot.slane %v8225_v35, %v9042_v14  ;;  %8242 = vst.sshfl [vmem:[%s10809_s23 + $0xc8] sm:$0x1 pattern:$0x73625140] %v7468_v61  ;;  %v6434_v59 = vrot.slane %v6406_v18, %v9042_v14  ;;  %v6435_v46 = vcombine.high %v6413_v16, %v6413_v16 }
 0x285   : > { %v6437_v22 = vcombine.high %v6427_v55, %v6427_v55  ;;  %v6454_v24 = vcombine.high %v6446_v7, %v6446_v7  ;;  %v7477_v8 = vcombine.low %v6389_v49, %v6413_v16  ;;  %v7486_v4 = vrot.slane %v7476_v10, %v9042_v14 }
 0x286   : > { %v7446_v32 = vcombine.low %v7437_v57, %v7444_v20  ;;  %v6455_v37 = vcombine.high %v6453_v3, %v6453_v3  ;;  %v7478_v29 = vcombine.low %v6427_v55, %v6435_v46  ;;  %v7531_v1 = vrot.slane %v6434_v59, %v9042_v14 }
 0x287   : > { %v7479_v15 = vcombine.low %v6437_v22, %v6420_v51  ;;  %v8226_v2 = vcombine.high %v6420_v51, %v6434_v59  ;;  %v7493_v5 = vrot.slane %v7477_v8, %v9042_v14  ;;  %v6462_v23 = vrot.slane %v6446_v7, %v9042_v14 }
 0x288   : > { %v7460_v21 = vrot.slane %v7446_v32, %v9042_v14  ;;  %v6469_v30 = vrot.slane %v6453_v3, %v9042_v14  ;;  %v7500_v41 = vrot.slane %v7478_v29, %v9042_v14  ;;  %8243 = vst.sshfl [vmem:[%s10809_s23 + $0xd8] sm:$0x1 pattern:$0x73625140] %v7531_v1  ;;  %v6476_v16 = vrot.slane %v6454_v24, %v9042_v14 }
 0x289   : > { %v7507_v42 = vrot.slane %v7479_v15, %v9042_v14  ;;  %v7549_v40 = vrot.slane %v8226_v2, %v9042_v14  ;;  %v7508_v28 = vcombine.low %v7486_v4, %v7493_v5  ;;  %v6483_v36 = vrot.slane %v6455_v37, %v9042_v14 }
 0x28a   : > { %v7461_v33 = vcombine.low %v11164_v52, %v7460_v21  ;;  %v6485_v35 = vcombine.high %v6469_v30, %v6469_v30  ;;  %v7540_v7 = vcombine.low %v6462_v23, %v6476_v16  ;;  %v8227_v18 = vcombine.high %v6462_v23, %v6476_v16 }
 0x28b   : > { %v7509_v61 = vcombine.low %v7500_v41, %v7507_v42  ;;  %v7878_v3 = vmul.f32 %v11160_v19, %v11160_v19  ;;  %v7516_v51 = vrot.slane %v7508_v28, %v9042_v14  ;;  %v7542_v55 = vcombine.low %v6469_v30, %v6483_v36 }
 0x28c   : > { %7851 = vst [vmem:[%s10809_s23 + $0xc0] sm:$0xff] %v7461_v33  ;;  %v7594_v57 = vrot.slane %v6485_v35, %v9042_v14  ;;  %v6487_v20 = vcombine.high %v6483_v36, %v6483_v36  ;;  %v7556_v10 = vrot.slane %v7540_v7, %v9042_v14  ;;  %v7563_v49 = vrot.slane %v8227_v18, %v9042_v14 }
 0x28d   : > { %v7523_v52 = vrot.slane %v7509_v61, %v9042_v14  ;;  %7894 = vmatprep.subr.mxu0 %v7878_v3  ;;  %v6488_v59 = vcombine.high %v11174_v39, %v11174_v39  ;;  %v7570_v46 = vrot.slane %v7542_v55, %v9042_v14  ;;  %v6495_v22 = vrot.slane %v11174_v39, %v9042_v14 }
 0x28e   : > { %8244 = vst.sshfl [vmem:[%s10809_s23 + $0xe8] sm:$0x1 pattern:$0x73625140] %v7594_v57  ;;  %7895 = vmatpush1.msra.mxu0 %v11160_v19  ;;  %v7876_v24 = vmul.f32 %v11100_v38, %v11100_v38  ;;  %v4830_v32 = vadd.f32 %v11050_v45, %v10769_v12  ;;  %v7571_v4 = vcombine.low %v7549_v40, %v7556_v10 }
 0x28f   : > { %v7524_v8 = vcombine.low %v7516_v51, %v7523_v52  ;;  %7896 = vmatprep.subr.mxu0 %v11171_v9  ;;  %v6502_v37 = vrot.slane %v6488_v59, %v9042_v14  ;;  %v7875_v29 = vmul.f32 %v11094_v27, %v11094_v27  ;;  %v7572_v15 = vcombine.low %v7563_v49, %v7570_v46 }
 0x290   : > { %v6503_v19 = vcombine.high %v6495_v22, %v6495_v22  ;;  %v6511_v1 = vrot.slane %v6495_v22, %v9042_v14  ;;  %7897 = vmatpush1.msra.mxu0 %v11146_v25  ;;  %v11240_v2 = vadd.f32 %v11075_v26, %v4830_v32  ;;  %v7579_v12 = vrot.slane %v7571_v4, %v9042_v14 }
 0x291   : > { %7853 = vst [vmem:[%s10809_s23 + $0xd0] sm:$0xff] %v7524_v8  ;;  %v6504_v45 = vcombine.high %v6502_v37, %v6502_v37  ;;  %v6518_v9 = vrot.slane %v6502_v37, %v9042_v14  ;;  %7898 = vmatprep.subr.mxu0 %v7876_v24  ;;  %v7874_v21 = vmul.f32 %v11056_v0, %v11056_v0 }
 0x292   : > { %v7586_v5 = vrot.slane %v7572_v15, %v9042_v14  ;;  %v6525_v23 = vrot.slane %v6503_v19, %v9042_v14  ;;  %v6533_v30 = vcombine.high %v6511_v1, %v6511_v1  ;;  %v7602_v41 = vcombine.low %v6487_v20, %v6511_v1  ;;  %7899 = vmatpush1.msra.mxu0 %v11100_v38 }
 0x293   : > { %v6532_v26 = vrot.slane %v6504_v45, %v9042_v14  ;;  %v6534_v25 = vcombine.high %v6518_v9, %v6518_v9  ;;  %7900 = vmatprep.subr.mxu0 %v7875_v29  ;;  %v6537_v42 = vcombine.high %v11240_v2, %v11240_v2  ;;  %v6544_v40 = vrot.slane %v11240_v2, %v9042_v14 }
 0x294   : > { %v7587_v16 = vcombine.low %v7579_v12, %v7586_v5  ;;  %v6535_v33 = vcombine.high %v6525_v23, %v6525_v23  ;;  %v7603_v28 = vcombine.low %v6525_v23, %v6533_v30  ;;  %v7612_v36 = vrot.slane %v7602_v41, %v9042_v14  ;;  %7901 = vmatpush1.msra.mxu0 %v11094_v27 }
 0x295   : > { %v6536_v35 = vcombine.high %v6532_v26, %v6532_v26  ;;  %v7605_v38 = vcombine.low %v6532_v26, %v6534_v25  ;;  %v6551_v61 = vrot.slane %v6537_v42, %v9042_v14  ;;  %v6552_v7 = vcombine.high %v6544_v40, %v6544_v40  ;;  %7902 = vmatprep.subr.mxu0 %v7874_v21 }
 0x296   : > { %7855 = vst [vmem:[%s10809_s23 + $0xe0] sm:$0xff] %v7587_v16  ;;  %v7604_v18 = vcombine.low %v6535_v33, %v6518_v9  ;;  %v7619_v3 = vrot.slane %v7603_v28, %v9042_v14  ;;  %v6560_v51 = vrot.slane %v6544_v40, %v9042_v14  ;;  %v4831_v55 = vadd.f32 %v11068_v48, %v10771_v31 }
 0x297   : > { %7903 = vmatpush1.msra.mxu0 %v11056_v0  ;;  %v7633_v27 = vrot.slane %v7605_v38, %v9042_v14  ;;  %v7657_v57 = vrot.slane %v6536_v35, %v9042_v14  ;;  %v6553_v20 = vcombine.high %v6551_v61, %v6551_v61  ;;  %v6567_v52 = vrot.slane %v6551_v61, %v9042_v14 }
 0x298   : > { %v7626_v10 = vrot.slane %v7604_v18, %v9042_v14  ;;  %v7634_v49 = vcombine.low %v7612_v36, %v7619_v3  ;;  %v6574_v59 = vrot.slane %v6552_v7, %v9042_v14  ;;  %v7873_v46 = vmul.f32 %v11029_v44, %v11029_v44 }
 0x299   : > { %8245 = vst.sshfl [vmem:[%s10809_s23 + $0xf8] sm:$0x1 pattern:$0x73625140] %v7657_v57  ;;  %v6581_v31 = vrot.slane %v6553_v20, %v9042_v14  ;;  %v11274_v0 = vadd.f32 %v11087_v13, %v4831_v55  ;;  %v7872_v48 = vmul.f32 %v10992_v50, %v10992_v50  ;;  %v4832_v22 = vadd.f32 %v11082_v34, %v10773_v53 }
 0x29a   : > { %v7635_v24 = vcombine.low %v7626_v10, %v7633_v27  ;;  %v7642_v32 = vrot.slane %v7634_v49, %v9042_v14  ;;  %v7665_v8 = vcombine.low %v6560_v51, %v6574_v59  ;;  %v8228_v4 = vcombine.high %v6560_v51, %v6574_v59  ;;  %7904 = vmatprep.subr.mxu0 %v7873_v46 }
 0x29b   : > { %v7667_v37 = vcombine.low %v6567_v52, %v6581_v31  ;;  %v8229_v29 = vcombine.high %v6567_v52, %v6581_v31  ;;  %v6586_v15 = vcombine.high %v11274_v0, %v11274_v0  ;;  %v6593_v13 = vrot.slane %v11274_v0, %v9042_v14  ;;  %7905 = vmatpush1.msra.mxu0 %v11029_v44 }
 0x29c   : > { %v7649_v19 = vrot.slane %v7635_v24, %v9042_v14  ;;  %v7675_v53 = vrot.slane %v7665_v8, %v9042_v14  ;;  %v7682_v34 = vrot.slane %v8228_v4, %v9042_v14  ;;  %7906 = vmatprep.subr.mxu0 %v7872_v48  ;;  %v7871_v1 = vmul.f32 %v10972_v17, %v10972_v17 }
 0x29d   : > { %v7689_v12 = vrot.slane %v7667_v37, %v9042_v14  ;;  %v7696_v45 = vrot.slane %v8229_v29, %v9042_v14  ;;  %v6600_v9 = vrot.slane %v6586_v15, %v9042_v14  ;;  %v6601_v21 = vcombine.high %v6593_v13, %v6593_v13  ;;  %7907 = vmatpush1.msra.mxu0 %v10992_v50  ;;  %v11737_v29 = vld [vmem:[#allocation12_spill] sm:$0xff] }
 0x29e   : > { %v7650_v44 = vcombine.low %v7642_v32, %v7649_v19  ;;  %v7697_v5 = vcombine.low %v7675_v53, %v7682_v34  ;;  %v6609_v23 = vrot.slane %v6593_v13, %v9042_v14  ;;  %7908 = vmatprep.subr.mxu0 %v7871_v1  ;;  %v11297_v30 = vadd.f32 %v11111_v11, %v4832_v22 }
 0x29f   : > { %v7698_v41 = vcombine.low %v7689_v12, %v7696_v45  ;;  %v6602_v26 = vcombine.high %v6600_v9, %v6600_v9  ;;  %v6616_v25 = vrot.slane %v6600_v9, %v9042_v14  ;;  %v6623_v42 = vrot.slane %v6601_v21, %v9042_v14  ;;  %7909 = vmatpush1.msra.mxu0 %v10972_v17 }
 0x2a0   : > { %7857 = vst [vmem:[%s10809_s23 + $0xf0] sm:$0xff] %v7650_v44  ;;  %v7705_v50 = vrot.slane %v7697_v5, %v9042_v14  ;;  %v6631_v40 = vcombine.high %v6609_v23, %v6609_v23  ;;  %v7720_v16 = vrot.slane %v6609_v23, %v9042_v14  ;;  %v6641_v11 = vrot.slane %v11297_v30, %v9042_v14 }
 0x2a1   : > { %v7712_v33 = vrot.slane %v7698_v41, %v9042_v14  ;;  %v6632_v28 = vcombine.high %v6616_v25, %v6616_v25  ;;  %v6633_v36 = vcombine.high %v6623_v42, %v6623_v42  ;;  %v6630_v35 = vrot.slane %v6602_v26, %v9042_v14 }
 0x2a2   : > { %v7728_v38 = vcombine.low %v6623_v42, %v6631_v40  ;;  %8246 = vst.sshfl [vmem:[%s10809_s23 + $0x108] sm:$0x1 pattern:$0x73625140] %v7720_v16  ;;  %v6642_v61 = vcombine.high %v6641_v11, %v6641_v11  ;;  %v6649_v17 = vrot.slane %v6641_v11, %v9042_v14  ;;  %v7870_v27 = vmul.f32 %v10929_v43, %v10929_v43 }
 0x2a3   : > { %v7713_v7 = vcombine.low %v7705_v50, %v7712_v33  ;;  %v7729_v18 = vcombine.low %v6633_v36, %v6616_v25  ;;  %v6634_v3 = vcombine.high %v6630_v35, %v6630_v35  ;;  %v7730_v51 = vcombine.low %v6630_v35, %v6632_v28 }
 0x2a4   : > { %v6656_v55 = vrot.slane %v6642_v61, %v9042_v14  ;;  %v7738_v57 = vrot.slane %v7728_v38, %v9042_v14  ;;  %7910 = vmatprep.subr.mxu0 %v7870_v27  ;;  %v7869_v49 = vmul.f32 %v10904_v47, %v10904_v47  ;;  %v7868_v48 = vmul.f32 %v10885_v58, %v10885_v58 }
 0x2a5   : > { %7859 = vst [vmem:[%s10809_s23 + $0x100] sm:$0xff] %v7713_v7  ;;  %v7745_v20 = vrot.slane %v7729_v18, %v9042_v14  ;;  %v7731_v52 = vcombine.low %v6634_v3, %v6649_v17  ;;  %v7752_v46 = vrot.slane %v7730_v51, %v9042_v14  ;;  %7911 = vmatpush1.msra.mxu0 %v10929_v43  ;;  %v8827_v32 = vmov 1.0  }
 0x2a6   : > { %v7783_v10 = vrot.slane %v6656_v55, %v9042_v14  ;;  %7912 = vmatprep.subr.mxu0 %v7869_v49  ;;  %v7867_v24 = vmul.f32 %v10847_v63, %v10847_v63  ;;  %8250 = vmatprep.mubr.msk.f32.mxu0 %vm7884_vm1, %v8827_v32  ;;  %v7866_v4 = vmul.f32 %v10831_v54, %v10831_v54 }
 0x2a7   : > { %v7760_v59 = vcombine.low %v7738_v57, %v7745_v20  ;;  %v7759_v31 = vrot.slane %v7731_v52, %v9042_v14  ;;  %7913 = vmatpush1.msra.mxu0 %v10904_v47  ;;  %v7865_v47 = vmul.f32 %v10801_v60, %v10801_v60 }
 0x2a8   : > { %8247 = vst.sshfl [vmem:[%s10809_s23 + $0x118] sm:$0x1 pattern:$0x73625140] %v7783_v10  ;;  %7914 = vmatprep.subr.mxu0 %v7868_v48 }
 0x2a9   : > { %v7761_v22 = vcombine.low %v7752_v46, %v7759_v31  ;;  %v7768_v8 = vrot.slane %v7760_v59, %v9042_v14  ;;  %7915 = vmatpush1.msra.mxu0 %v10885_v58  ;;  %v7863_v58 = vmul.f32 %v10777_v62, %v10777_v62 }
 0x2aa   : > { %7916 = vmatprep.subr.mxu0 %v7867_v24 }
 0x2ab   : > { %v7775_v43 = vrot.slane %v7761_v22, %v9042_v14  ;;  %7917 = vmatpush1.msra.mxu0 %v10847_v63  ;;  %v7864_v14 = vmul.f32 %v10787_v56, %v10787_v56  ;;  %v7883_v63 = vmul.f32 %v11297_v30, %v11297_v30 }
 0x2ac   : > { %7918 = vmatprep.subr.mxu0 %v7866_v4 }
 0x2ad   : > { %v7776_v37 = vcombine.low %v7768_v8, %v7775_v43  ;;  %7919 = vmatpush1.msra.mxu0 %v10831_v54  ;;  %v7882_v54 = vmul.f32 %v11274_v0, %v11274_v0 }
 0x2ae   : > { %7920 = vmatprep.subr.mxu0 %v7865_v47 }
 0x2af   : > { %7861 = vst [vmem:[%s10809_s23 + $0x110] sm:$0xff] %v7776_v37  ;;  %7921 = vmatpush1.msra.mxu0 %v10801_v60  ;;  %v7881_v60 = vmul.f32 %v11240_v2, %v11240_v2 }
 0x2b0   : > { %7922 = vmatprep.subr.mxu0 %v7864_v14 }
 0x2b1   : > { %7923 = vmatpush1.msra.mxu0 %v10787_v56  ;;  %v7880_v56 = vmul.f32 %v11174_v39, %v11174_v39 }
 0x2b2   : > { %7924 = vmatprep.subr.mxu0 %v7863_v58 }
 0x2b3   : > { %7925 = vmatpush1.msra.mxu0 %v10777_v62  ;;  %v7879_v62 = vmul.f32 %v11167_v6, %v11167_v6 }
 0x2b4   : > { %8248 = vmatprep.subr.msk.mxu0 %vm7888_vm2, %v7883_v63 }
 0x2b5   : > { %8249 = vmatpush2.msk.msra.mxu0 %vm7888_vm2, %v11297_v30 }
 0x2b6   : > { %7950 = vmatprep.subr.mxu0 %v7882_v54 }
 0x2b7   : > { %7951 = vmatpush2.msra.mxu0 %v11274_v0  ;;  %v7967_v0 = vsub.s32 0, %v11737_v29 }
 0x2b8   : > { %7952 = vmatprep.subr.mxu0 %v7881_v60 }
 0x2b9   : > { %7953 = vmatpush2.msra.mxu0 %v11240_v2 }
 0x2ba   : > { %7954 = vmatprep.subr.mxu0 %v7880_v56 }
 0x2bb   : > { %7955 = vmatpush2.msra.mxu0 %v11174_v39 }
 0x2bc   : > { %7956 = vmatprep.subr.mxu0 %v7879_v62 }
 0x2bd   : > { %7957 = vmatpush2.msra.mxu0 %v11167_v6 }
 0x2be   : > { %7959 = vmatmul.mubr.f32.vlgmr.msra.gmra.mxu0 %v8827_v32 }
 0x37e   : > { %v7960_v15 = vpop.f32.mrf.mxu0 }
 0x37f   : > { %v7968_v2 = vrot.slane %v7960_v15, %v7967_v0 }
 0x380   : > { %v7962_v13 = vpop.f32.mrf.mxu0 }
 0x381   : > { %7973 = vst [vmem:[%s213_s4] sm:$0xff] %v7968_v2  ;;  %v7972_v19 = vrot.slane %v7962_v13, %v7967_v0 }
 0x383   : > { %7974 = vst [vmem:[%s213_s4 + $0x8] sm:$0xff] %v7972_v19 }
 0x384   : > { %8761 = shalt.err (!%p8758_p5)
}
 0x385   : > { %s8762_s29 = scalar_lea.hbm %s7998_s10, 256  ;;  %s8766_s20 = scalar_lea.hbm %s11401_s3, 512 }
 0x386   : > { %p8763_p9 = scmp.ne.s32.totalorder %s7998_s10, %s8762_s29  ;;  %p8767_p6 = scmp.lt.s32.totalorder %s7998_s10, %s11401_s3 }
 0x387   : > { %p8768_p8 = scmp.lt.s32.totalorder %s8766_s20, %s8762_s29 }
 0x388   : > { %p8764_p1 = pnand %p8763_p9, %p11738_p7 }
 0x389   : > { %p8769_p3 = por %p8768_p8, %p8767_p6 }
 0x38a   : > { %p8765_p4 = pneg %p8764_p1 }
 0x38c   : > { %p8770_p11 = pnand %p8769_p3, %p8765_p4 }
 0x38e   : > { %8773 = shalt.err (!%p8770_p11)
}
 0x38f   : > { %8582 = dma.vmem_to_hbm [thread:$0]  (%p11738_p7), %s8001_s7, 256, %s7998_s10, %s7982_s11  }
 0x390 PF: > { %s8021_s23 = sand.u32 1, %s8804_s12   ;;  %p11739_p12 = scmp.ne.s32.totalorder %s11512_s19, 0 }
 0x391   : > { %p11740_p10 = scmp.ge.s32.totalorder %s8816_s15, 2  ;;  %s8022_s25 = scalar_lea.sflag [#allocation5], %s8021_s23 }
 0x393   : > { %p8593_p2 = pnand %p11740_p10, %p11739_p12 }
 0x395   : > { %p8594_p13 = pneg %p8593_p2 }
 0x397   : > { %8799 = dma.done.wait (%p8594_p13), %s8022_s25, 256  }
 0x398   : > { %8801 = vsyncadd (%p8594_p13), %s8022_s25, 4294967040  ;;  %p18_p0 = scmp.ge.s32.totalorder %s8903_s24, 4   ;;  %s11741_s12 = smov %s8808_s13 }
 0x399   : > { %s11742_s13 = smov %s8812_s14  ;;  %s11743_s14 = smov %s8920_s5 }
 0x39a   : > { %s11744_s15 = smov %s8903_s24  ;;  %20 = sbr.rel (!%p18_p0) target bundleno = 6 (0x6), region = 94 }
 0x39f   :  { %8027 = vsyncpa [#allocation4], 1 }
 0x3a0   :  { %8029 = vsyncpa [#allocation4 + $0x1], 1 }
 0x3a1   :  { %8030 = vsyncpa [#allocation7], 1 }
 0x3a2   :  { %8031 = vsyncpa [#allocation5], 1 }
 0x3a3   :  { %8033 = vsyncpa [#allocation5 + $0x1], 1 }

</bundles_post_ra>
